<compile_context>
chip_gen: v7x
topology: tpu7x:2x2x1
jax: 0.10.0
libtpu: 0.0.40
codegen_flags: <defaults>
</compile_context>

<pallas_src>
import functools

import jax
import jax.numpy as jnp
import numpy as np
from jax.experimental import pallas as pl
from jax.experimental.pallas import tpu as pltpu

EPS = 1e-5      # nn.BatchNorm2d default eps
LANE = 128      # TPU lane width; channel tiles are kept lane-dense


def _round_up(x, m):
    return (x + m - 1) // m * m


def _pick_rows_tile(n_images, rows_per_image, cap=4096):
    """Largest ipt*rows_per_image <= cap that divides the total row count and is
    a multiple of 8; falls back to the full extent (always legal)."""
    best = None
    for ipt in range(1, n_images + 1):
        if n_images % ipt:
            continue
        rt = ipt * rows_per_image
        if rt % 8 == 0 and rt <= cap:
            best = rt
    return best if best is not None else n_images * rows_per_image


# ---------------------------------------------------------------------------
# Kernel A: conv1 (3x3, stride s) [+ conv_main (1x1, stride s) if downsample]
#           -> raw (pre-BN) bf16 outputs + per-tile f32 sum / sum-of-squares.
# Grid: (batch, cout_tiles).  Weights are fully resident (constant index_map);
# the j-th 128-lane output column is picked with a dynamic leading-axis index.
# ---------------------------------------------------------------------------
def _conv1_kernel(x_ref, w1_ref, *rest, stride, ho, wo, downsample):
    if downsample:
        wm_ref, y_ref, s1_ref, q1_ref, sc_ref, sm_ref, qm_ref, acc_ref = rest
    else:
        y_ref, s1_ref, q1_ref, acc_ref = rest
    j = pl.program_id(1)
    cin = x_ref.shape[-1]
    ct = y_ref.shape[-1]

    first = True
    for dy in range(3):                       # unrolled 9-tap conv: 9 MXU dots
        for dx in range(3):
            p = (dy % stride) * stride + (dx % stride)     # space-to-depth phase
            r0, c0 = dy // stride, dx // stride
            win = x_ref[p, 0, r0:r0 + ho, c0:c0 + wo, :].reshape(ho * wo, cin)
            contrib = jnp.dot(win, w1_ref[j, dy * 3 + dx],
                              preferred_element_type=jnp.float32)
            if first:
                acc_ref[...] = contrib
                first = False
            else:
                acc_ref[...] += contrib

    acc = acc_ref[...]                                     # f32 (ho*wo, ct)
    s1_ref[...] = jnp.sum(acc, axis=0).reshape(1, 1, ct)   # stats from f32 acc
    q1_ref[...] = jnp.sum(acc * acc, axis=0).reshape(1, 1, ct)
    y_ref[0] = acc.astype(jnp.bfloat16).reshape(ho, wo, ct)

    if downsample:
        # 1x1 stride-2 conv reads exactly the (odd, odd) phase at offset 0.
        winm = x_ref[stride * stride - 1, 0, 0:ho, 0:wo, :].reshape(ho * wo, cin)
        accm = jnp.dot(winm, wm_ref[j], preferred_element_type=jnp.float32)
        sm_ref[...] = jnp.sum(accm, axis=0).reshape(1, 1, ct)
        qm_ref[...] = jnp.sum(accm * accm, axis=0).reshape(1, 1, ct)
        sc_ref[0] = accm.astype(jnp.bfloat16).reshape(ho, wo, ct)


# ---------------------------------------------------------------------------
# Kernel B: bn1-affine + relu fused with conv2 (3x3, stride 1, dx-folded) and
#           bn2 partial stats.  The padded slab + im2col are built once per
#           image (j == 0) into persistent VMEM scratch and reused for all
#           cout tiles (j axis is "arbitrary").
# ---------------------------------------------------------------------------
def _conv2_kernel(y1_ref, sc1_ref, sh1_ref, w2_ref,
                  y2_ref, s2_ref, q2_ref,
                  pad_ref, col_ref, acc_ref, *, ho, wo):
    j = pl.program_id(1)
    cop = y1_ref.shape[-1]
    ct = y2_ref.shape[-1]

    @pl.when(j == 0)
    def _build_per_image():
        y1 = y1_ref[0].astype(jnp.float32)                          # (ho, wo, cop)
        y1n = jnp.maximum(y1 * sc1_ref[...] + sh1_ref[...], 0.0)    # bn1 + relu
        pad_ref[...] = jnp.zeros(pad_ref.shape, pad_ref.dtype)      # once / image
        pad_ref[1:ho + 1, 1:wo + 1, :] = y1n
        for dy in range(3):
            for dx in range(3):
                win = pad_ref[dy:dy + ho, dx:dx + wo, :].astype(jnp.bfloat16)
                col_ref[dy, :, dx * cop:(dx + 1) * cop] = win.reshape(ho * wo, cop)

    # conv2 for this cout tile: 3 MXU dots with K = 3*cop (dx folded).
    acc_ref[...] = jnp.dot(col_ref[0], w2_ref[j, 0],
                           preferred_element_type=jnp.float32)
    for dy in range(1, 3):
        acc_ref[...] += jnp.dot(col_ref[dy], w2_ref[j, dy],
                                preferred_element_type=jnp.float32)

    acc = acc_ref[...]
    s2_ref[...] = jnp.sum(acc, axis=0).reshape(1, 1, ct)
    q2_ref[...] = jnp.sum(acc * acc, axis=0).reshape(1, 1, ct)
    y2_ref[0] = acc.astype(jnp.bfloat16).reshape(ho, wo, ct)


# ---------------------------------------------------------------------------
# Kernel C: bn2-affine (+ bn_main-affine) + residual add + relu, on a
#           flattened lane-dense (rows, cop) view.
# ---------------------------------------------------------------------------
def _bn_add_relu_kernel(y2_ref, sc2_ref, sh2_ref, *rest, downsample):
    if downsample:
        res_ref, scm_ref, shm_ref, o_ref = rest
    else:
        res_ref, o_ref = rest
    y2 = y2_ref[...].astype(jnp.float32) * sc2_ref[...] + sh2_ref[...]
    res = res_ref[...].astype(jnp.float32)
    if downsample:
        res = res * scm_ref[...] + shm_ref[...]
    o_ref[...] = jnp.maximum(y2 + res, 0.0)


# ---------------------------------------------------------------------------
# BottleNeck forward (training-mode BatchNorm, matches the PyTorch module)
# ---------------------------------------------------------------------------
def bottleneck_forward(x_nchw, params, downsample):
    stride = 2 if downsample else 1
    n, cin, h, w = x_nchw.shape
    cout = params["conv1_w"].shape[0]
    if not downsample:
        assert cin == cout, "non-downsample block requires in_channels == out_channels"
    else:
        assert h % 2 == 0 and w % 2 == 0, "downsample path assumes even spatial dims"
    ho = (h + 2 - 3) // stride + 1
    wo = (w + 2 - 3) // stride + 1

    cip = _round_up(cin, LANE)
    cop = _round_up(cout, LANE)
    n_ct = cop // LANE
    m_rows = n * ho * wo
    f32 = jnp.float32
    bf16 = jnp.bfloat16

    # ---- XLA glue: NHWC + bf16 first, then channel/spatial pad + phase split
    x = jnp.transpose(x_nchw, (0, 2, 3, 1)).astype(bf16)
    xcp = jnp.pad(x, ((0, 0), (0, 0), (0, 0), (0, cip - cin)))   # bf16; identity shortcut
    xsp = jnp.pad(xcp, ((0, 0), (1, 1), (1, 1), (0, 0)))
    phases = [xsp[:, hp::stride, wp::stride, :]
              for hp in range(stride) for wp in range(stride)]
    xph = jnp.stack(phases, axis=0)                               # (s*s, N, Hp, Wp, cip)
    hpn, wpn = xph.shape[2], xph.shape[3]

    # ---- weights laid out for in-kernel residency
    def prep_conv1(w_oihw):                   # -> (n_ct, 9, cip, LANE)
        w_ = jnp.transpose(w_oihw, (2, 3, 1, 0))                   # (3,3,cin,cout)
        w_ = jnp.pad(w_, ((0, 0), (0, 0), (0, cip - cin), (0, cop - cout)))
        w_ = w_.reshape(9, cip, n_ct, LANE)
        return jnp.transpose(w_, (2, 0, 1, 3)).astype(bf16)

    def prep_conv2(w_oihw):                   # -> (n_ct, 3, 3*cop, LANE), dx folded
        w_ = jnp.transpose(w_oihw, (2, 3, 1, 0))                   # (3,3,cout,cout)
        w_ = jnp.pad(w_, ((0, 0), (0, 0), (0, cop - cout), (0, cop - cout)))
        w_ = w_.reshape(3, 3 * cop, n_ct, LANE)                    # (dy, dx*cin, j, lane)
        return jnp.transpose(w_, (2, 0, 1, 3)).astype(bf16)

    w1 = prep_conv1(params["conv1_w"])
    w2 = prep_conv2(params["conv2_w"])

    def bn_affine(sums, ssqs, gamma, beta):
        # cross-tile reduction of per-tile partials + fold BN into y*scale+shift
        mean = jnp.sum(sums, axis=0) / m_rows                      # (1, cop)
        var = jnp.maximum(jnp.sum(ssqs, axis=0) / m_rows - mean * mean, 0.0)
        g = jnp.pad(gamma, (0, cop - gamma.shape[0])).reshape(1, cop)
        b = jnp.pad(beta, (0, cop - beta.shape[0])).reshape(1, cop)
        scale = g * jax.lax.rsqrt(var + EPS)
        return scale.astype(f32), (b - mean * scale).astype(f32)

    # ---- per-generation VMEM budget
    try:
        vmem_cap = int(pltpu.get_tpu_info().vmem_capacity_bytes)
    except Exception:
        vmem_cap = 64 * 1024 * 1024
    vmem_limit = int(min(vmem_cap * 3 // 4, 100 * 1024 * 1024))

    cparams_par = pltpu.CompilerParams(
        dimension_semantics=("parallel", "parallel"), vmem_limit_bytes=vmem_limit)
    cparams_arb = pltpu.CompilerParams(     # kernel B reuses per-image scratch over j
        dimension_semantics=("parallel", "arbitrary"), vmem_limit_bytes=vmem_limit)

    # ---- common specs
    x_spec = pl.BlockSpec((stride * stride, 1, hpn, wpn, cip),
                          lambda i, j: (0, i, 0, 0, 0))
    w1_spec = pl.BlockSpec(w1.shape, lambda i, j: (0, 0, 0, 0))    # resident, one DMA
    w2_spec = pl.BlockSpec(w2.shape, lambda i, j: (0, 0, 0, 0))
    y_spec = pl.BlockSpec((1, ho, wo, LANE), lambda i, j: (i, 0, 0, j))
    y_full_spec = pl.BlockSpec((1, ho, wo, cop), lambda i, j: (i, 0, 0, 0))
    stat_spec = pl.BlockSpec((1, 1, LANE), lambda i, j: (i, 0, j))
    vec_full_spec = pl.BlockSpec((1, cop), lambda i, j: (0, 0))

    y_shape = jax.ShapeDtypeStruct((n, ho, wo, cop), bf16)
    st_shape = jax.ShapeDtypeStruct((n, 1, cop), f32)

    # ---- kernel A: conv1 (+ conv_main) + BN partial stats --------------------
    a_in_specs = [x_spec, w1_spec]
    a_inputs = [xph, w1]
    a_out_shape = [y_shape, st_shape, st_shape]
    a_out_specs = [y_spec, stat_spec, stat_spec]
    flops_a = 2 * m_rows * cip * cop * 9
    bytes_a = xph.size * 2 + w1.size * 2 + n * ho * wo * cop * 2 + 2 * n * cop * 4
    if downsample:
        wm = jnp.transpose(params["conv_main_w"][:, :, 0, 0], (1, 0))   # (cin, cout)
        wm = jnp.pad(wm, ((0, cip - cin), (0, cop - cout)))
        wm = jnp.transpose(wm.reshape(cip, n_ct, LANE), (1, 0, 2)).astype(bf16)
        a_in_specs.append(pl.BlockSpec(wm.shape, lambda i, j: (0, 0, 0)))
        a_inputs.append(wm)
        a_out_shape += [y_shape, st_shape, st_shape]
        a_out_specs += [y_spec, stat_spec, stat_spec]
        flops_a += 2 * m_rows * cip * cop
        bytes_a += wm.size * 2 + n * ho * wo * cop * 2 + 2 * n * cop * 4

    a_out = pl.pallas_call(
        functools.partial(_conv1_kernel, stride=stride, ho=ho, wo=wo,
                          downsample=downsample),
        grid=(n, n_ct),
        in_specs=a_in_specs,
        out_specs=a_out_specs,
        out_shape=a_out_shape,
        scratch_shapes=[pltpu.VMEM((ho * wo, LANE), f32)],         # accumulator
        compiler_params=cparams_par,
        cost_estimate=pl.CostEstimate(flops=int(flops_a), transcendentals=0,
                                      bytes_accessed=int(bytes_a)),
    )(*a_inputs)
    if downsample:
        y1_raw, s1, q1, sc_raw, sm, qm = a_out
    else:
        y1_raw, s1, q1 = a_out

    scale1, shift1 = bn_affine(s1, q1, params["bn1_g"], params["bn1_b"])

    # ---- kernel B: bn1 + relu + conv2 (dx-folded) + BN partial stats ---------
    flops_b = 2 * m_rows * cop * cop * 9
    bytes_b = y1_raw.size * 2 + w2.size * 2 + n * ho * wo * cop * 2 + 2 * n * cop * 4
    y2_raw, s2, q2 = pl.pallas_call(
        functools.partial(_conv2_kernel, ho=ho, wo=wo),
        grid=(n, n_ct),
        in_specs=[y_full_spec, vec_full_spec, vec_full_spec, w2_spec],
        out_specs=[y_spec, stat_spec, stat_spec],
        out_shape=[y_shape, st_shape, st_shape],
        scratch_shapes=[pltpu.VMEM((ho + 2, wo + 2, cop), f32),    # zero-padded y1 (per image)
                        pltpu.VMEM((3, ho * wo, 3 * cop), bf16),   # dx-folded im2col slab
                        pltpu.VMEM((ho * wo, LANE), f32)],         # accumulator
        compiler_params=cparams_arb,
        cost_estimate=pl.CostEstimate(flops=int(flops_b), transcendentals=0,
                                      bytes_accessed=int(bytes_b)),
    )(y1_raw, scale1, shift1, w2)

    scale2, shift2 = bn_affine(s2, q2, params["bn2_g"], params["bn2_b"])

    # ---- kernel C: bn2 (+ bn_main) + residual add + relu (flattened 2D) ------
    rows = n * ho * wo
    rows_tile = _pick_rows_tile(n, ho * wo)
    row2d_spec = pl.BlockSpec((rows_tile, LANE), lambda r, j: (r, j))
    vec_spec = pl.BlockSpec((1, LANE), lambda r, j: (0, j))

    c_in_specs = [row2d_spec, vec_spec, vec_spec]
    c_inputs = [y2_raw.reshape(rows, cop), scale2, shift2]
    if downsample:
        scale_m, shift_m = bn_affine(sm, qm, params["bn_main_g"], params["bn_main_b"])
        c_in_specs += [row2d_spec, vec_spec, vec_spec]
        c_inputs += [sc_raw.reshape(rows, cop), scale_m, shift_m]
    else:
        c_in_specs += [row2d_spec]
        c_inputs += [xcp.reshape(rows, cop)]              # bf16 identity shortcut

    out2d = pl.pallas_call(
        functools.partial(_bn_add_relu_kernel, downsample=downsample),
        grid=(rows // rows_tile, n_ct),
        in_specs=c_in_specs,
        out_specs=row2d_spec,
        out_shape=jax.ShapeDtypeStruct((rows, cop), f32),
        compiler_params=cparams_par,
    )(*c_inputs)

    out = out2d.reshape(n, ho, wo, cop)[..., :cout]       # drop channel pad
    return jnp.transpose(out, (0, 3, 1, 2))               # back to NCHW


# ---------------------------------------------------------------------------
# Pure-JAX f32 reference (lax.conv) for correctness checking
# ---------------------------------------------------------------------------
def _ref_forward(x, params, downsample):
    stride = 2 if downsample else 1

    def conv(x_, w_, s, pad):
        return jax.lax.conv_general_dilated(
            x_, w_, (s, s), [(pad, pad), (pad, pad)],
            dimension_numbers=("NCHW", "OIHW", "NCHW"))

    def bn(x_, g, b):
        mean = jnp.mean(x_, axis=(0, 2, 3), keepdims=True)
        var = jnp.mean(jnp.square(x_ - mean), axis=(0, 2, 3), keepdims=True)
        return (x_ - mean) * jax.lax.rsqrt(var + EPS) * g.reshape(1, -1, 1, 1) + \
               b.reshape(1, -1, 1, 1)

    if downsample:
        sc = bn(conv(x, params["conv_main_w"], stride, 0),
                params["bn_main_g"], params["bn_main_b"])
    else:
        sc = x
    h = jnp.maximum(bn(conv(x, params["conv1_w"], stride, 1),
                       params["bn1_g"], params["bn1_b"]), 0.0)
    h = bn(conv(h, params["conv2_w"], 1, 1), params["bn2_g"], params["bn2_b"])
    return jnp.maximum(h + sc, 0.0)


# ---------------------------------------------------------------------------
# Deterministic parameter construction (shapes from the module's __init__)
# ---------------------------------------------------------------------------
def make_params(key, in_channels, out_channels):
    k1, k2, k3 = jax.random.split(key, 3)

    def kaiming(k, shape):
        fan_in = shape[1] * shape[2] * shape[3]
        return (jax.random.normal(k, shape, jnp.float32) *
                jnp.sqrt(2.0 / fan_in)).astype(jnp.float32)

    return {
        "conv_main_w": kaiming(k1, (out_channels, in_channels, 1, 1)),
        "bn_main_g": jnp.ones((out_channels,), jnp.float32),
        "bn_main_b": jnp.zeros((out_channels,), jnp.float32),
        "conv1_w": kaiming(k2, (out_channels, in_channels, 3, 3)),
        "bn1_g": jnp.ones((out_channels,), jnp.float32),
        "bn1_b": jnp.zeros((out_channels,), jnp.float32),
        "conv2_w": kaiming(k3, (out_channels, out_channels, 3, 3)),
        "bn2_g": jnp.ones((out_channels,), jnp.float32),
        "bn2_b": jnp.zeros((out_channels,), jnp.float32),
    }


if __name__ == "__main__":
    key = jax.random.PRNGKey(0)
    kx1, kp1, kx2, kp2 = jax.random.split(key, 4)

    # Case 1: no downsample (in == out == 4)
    x1 = jax.random.normal(kx1, (2, 4, 16, 16), jnp.float32)
    p1 = make_params(kp1, 4, 4)
    out1 = jax.block_until_ready(bottleneck_forward(x1, p1, downsample=False))
    ref1 = _ref_forward(x1, p1, downsample=False)
    np.testing.assert_allclose(np.asarray(out1), np.asarray(ref1),
                               atol=5e-2, rtol=5e-2)   # bf16 MXU inputs
    assert out1.shape == (2, 4, 16, 16)

    # Case 2: downsample (in=4 -> out=8, spatial halved)
    x2 = jax.random.normal(kx2, (2, 4, 16, 16), jnp.float32)
    p2 = make_params(kp2, 4, 8)
    out2 = jax.block_until_ready(bottleneck_forward(x2, p2, downsample=True))
    ref2 = _ref_forward(x2, p2, downsample=True)
    np.testing.assert_allclose(np.asarray(out2), np.asarray(ref2),
                               atol=5e-2, rtol=5e-2)
    assert out2.shape == (2, 8, 8, 8)

    print("KERNEL_OK")
</pallas_src>

<mosaic_0001>
module attributes {stable_mosaic.version = 11 : i64} {
  func.func @_conv1_kernel(%arg0: i32, %arg1: i32, %arg2: memref<1x1x18x18x128xbf16, #tpu.memory_space<vmem>>, %arg3: memref<1x9x128x128xbf16, #tpu.memory_space<vmem>>, %arg4: memref<1x16x16x128xbf16, #tpu.memory_space<vmem>>, %arg5: memref<1x1x128xf32, #tpu.memory_space<vmem>>, %arg6: memref<1x1x128xf32, #tpu.memory_space<vmem>>, %arg7: memref<256x128xf32, #tpu.memory_space<vmem>>) attributes {dimension_semantics = [#tpu.dimension_semantics<parallel>, #tpu.dimension_semantics<parallel>], iteration_bounds = array<i64: 2, 1>, scalar_prefetch = 0 : i64, scratch_operands = 1 : i64, tpu.core_type = #tpu.core_type<tc>, window_params = [{transform_indices = @transform_0, window_bounds = array<i64: 1, 1, 18, 18, 128>}, {pipeline_mode = #tpu.pipeline_mode<synchronous>, transform_indices = @transform_1, window_bounds = array<i64: 1, 9, 128, 128>}, {transform_indices = @transform_2, window_bounds = array<i64: 1, 16, 16, 128>}, {transform_indices = @transform_3, window_bounds = array<i64: 1, 1, 128>}, {transform_indices = @transform_4, window_bounds = array<i64: 1, 1, 128>}]} {
    %c0 = arith.constant 0 : index
    %c0_0 = arith.constant 0 : index
    %c0_1 = arith.constant 0 : index
    %c0_2 = arith.constant 0 : index
    %c0_3 = arith.constant 0 : index
    %0 = vector.load %arg2[%c0, %c0_0, %c0_1, %c0_2, %c0_3] : memref<1x1x18x18x128xbf16, #tpu.memory_space<vmem>>, vector<1x1x16x16x128xbf16>
    %1 = vector.shape_cast %0 : vector<1x1x16x16x128xbf16> to vector<16x16x128xbf16>
    %2 = vector.shape_cast %1 : vector<16x16x128xbf16> to vector<256x128xbf16>
    %3 = arith.index_cast %arg1 : i32 to index
    %c0_4 = arith.constant 0 : index
    %c0_5 = arith.constant 0 : index
    %c0_6 = arith.constant 0 : index
    %4 = vector.load %arg3[%3, %c0_4, %c0_5, %c0_6] : memref<1x9x128x128xbf16, #tpu.memory_space<vmem>>, vector<1x1x128x128xbf16>
    %5 = vector.shape_cast %4 : vector<1x1x128x128xbf16> to vector<128x128xbf16>
    %cst = arith.constant dense<0.000000e+00> : vector<256x128xf32>
    %6 = tpu.matmul %2, %5, %cst {dimension_numbers = #tpu.dot_dimension_numbers<[1], [0], [0], [1], [0, 0, 1, 1], [], []>} : vector<256x128xbf16>, vector<128x128xbf16>, vector<256x128xf32> -> vector<256x128xf32>
    %c0_7 = arith.constant 0 : index
    %c0_8 = arith.constant 0 : index
    %7 = vector.load %arg7[%c0_7, %c0_8] : memref<256x128xf32, #tpu.memory_space<vmem>>, vector<256x128xf32>
    tpu.vector_store %arg7[%c0_7, %c0_8], %6 {strides = array<i32>} : memref<256x128xf32, #tpu.memory_space<vmem>>, vector<256x128xf32>,
    %c0_9 = arith.constant 0 : index
    %c0_10 = arith.constant 0 : index
    %c0_11 = arith.constant 0 : index
    %c1 = arith.constant 1 : index
    %c0_12 = arith.constant 0 : index
    %8 = vector.load %arg2[%c0_9, %c0_10, %c0_11, %c1, %c0_12] : memref<1x1x18x18x128xbf16, #tpu.memory_space<vmem>>, vector<1x1x16x16x128xbf16>
    %9 = vector.shape_cast %8 : vector<1x1x16x16x128xbf16> to vector<16x16x128xbf16>
    %10 = vector.shape_cast %9 : vector<16x16x128xbf16> to vector<256x128xbf16>
    %11 = arith.index_cast %arg1 : i32 to index
    %c1_13 = arith.constant 1 : index
    %c0_14 = arith.constant 0 : index
    %c0_15 = arith.constant 0 : index
    %12 = vector.load %arg3[%11, %c1_13, %c0_14, %c0_15] : memref<1x9x128x128xbf16, #tpu.memory_space<vmem>>, vector<1x1x128x128xbf16>
    %13 = vector.shape_cast %12 : vector<1x1x128x128xbf16> to vector<128x128xbf16>
    %cst_16 = arith.constant dense<0.000000e+00> : vector<256x128xf32>
    %14 = tpu.matmul %10, %13, %cst_16 {dimension_numbers = #tpu.dot_dimension_numbers<[1], [0], [0], [1], [0, 0, 1, 1], [], []>} : vector<256x128xbf16>, vector<128x128xbf16>, vector<256x128xf32> -> vector<256x128xf32>
    %c0_17 = arith.constant 0 : index
    %c0_18 = arith.constant 0 : index
    %15 = vector.load %arg7[%c0_17, %c0_18] : memref<256x128xf32, #tpu.memory_space<vmem>>, vector<256x128xf32>
    %16 = arith.addf %15, %14 : vector<256x128xf32>
    %c0_19 = arith.constant 0 : index
    %c0_20 = arith.constant 0 : index
    %17 = vector.load %arg7[%c0_19, %c0_20] : memref<256x128xf32, #tpu.memory_space<vmem>>, vector<256x128xf32>
    tpu.vector_store %arg7[%c0_19, %c0_20], %16 {strides = array<i32>} : memref<256x128xf32, #tpu.memory_space<vmem>>, vector<256x128xf32>,
    %c0_21 = arith.constant 0 : index
    %c0_22 = arith.constant 0 : index
    %c0_23 = arith.constant 0 : index
    %c2 = arith.constant 2 : index
    %c0_24 = arith.constant 0 : index
    %18 = vector.load %arg2[%c0_21, %c0_22, %c0_23, %c2, %c0_24] : memref<1x1x18x18x128xbf16, #tpu.memory_space<vmem>>, vector<1x1x16x16x128xbf16>
    %19 = vector.shape_cast %18 : vector<1x1x16x16x128xbf16> to vector<16x16x128xbf16>
    %20 = vector.shape_cast %19 : vector<16x16x128xbf16> to vector<256x128xbf16>
    %21 = arith.index_cast %arg1 : i32 to index
    %c2_25 = arith.constant 2 : index
    %c0_26 = arith.constant 0 : index
    %c0_27 = arith.constant 0 : index
    %22 = vector.load %arg3[%21, %c2_25, %c0_26, %c0_27] : memref<1x9x128x128xbf16, #tpu.memory_space<vmem>>, vector<1x1x128x128xbf16>
    %23 = vector.shape_cast %22 : vector<1x1x128x128xbf16> to vector<128x128xbf16>
    %cst_28 = arith.constant dense<0.000000e+00> : vector<256x128xf32>
    %24 = tpu.matmul %20, %23, %cst_28 {dimension_numbers = #tpu.dot_dimension_numbers<[1], [0], [0], [1], [0, 0, 1, 1], [], []>} : vector<256x128xbf16>, vector<128x128xbf16>, vector<256x128xf32> -> vector<256x128xf32>
    %c0_29 = arith.constant 0 : index
    %c0_30 = arith.constant 0 : index
    %25 = vector.load %arg7[%c0_29, %c0_30] : memref<256x128xf32, #tpu.memory_space<vmem>>, vector<256x128xf32>
    %26 = arith.addf %25, %24 : vector<256x128xf32>
    %c0_31 = arith.constant 0 : index
    %c0_32 = arith.constant 0 : index
    %27 = vector.load %arg7[%c0_31, %c0_32] : memref<256x128xf32, #tpu.memory_space<vmem>>, vector<256x128xf32>
    tpu.vector_store %arg7[%c0_31, %c0_32], %26 {strides = array<i32>} : memref<256x128xf32, #tpu.memory_space<vmem>>, vector<256x128xf32>,
    %c0_33 = arith.constant 0 : index
    %c0_34 = arith.constant 0 : index
    %c1_35 = arith.constant 1 : index
    %c0_36 = arith.constant 0 : index
    %c0_37 = arith.constant 0 : index
    %28 = vector.load %arg2[%c0_33, %c0_34, %c1_35, %c0_36, %c0_37] : memref<1x1x18x18x128xbf16, #tpu.memory_space<vmem>>, vector<1x1x16x16x128xbf16>
    %29 = vector.shape_cast %28 : vector<1x1x16x16x128xbf16> to vector<16x16x128xbf16>
    %30 = vector.shape_cast %29 : vector<16x16x128xbf16> to vector<256x128xbf16>
    %31 = arith.index_cast %arg1 : i32 to index
    %c3 = arith.constant 3 : index
    %c0_38 = arith.constant 0 : index
    %c0_39 = arith.constant 0 : index
    %32 = vector.load %arg3[%31, %c3, %c0_38, %c0_39] : memref<1x9x128x128xbf16, #tpu.memory_space<vmem>>, vector<1x1x128x128xbf16>
    %33 = vector.shape_cast %32 : vector<1x1x128x128xbf16> to vector<128x128xbf16>
    %cst_40 = arith.constant dense<0.000000e+00> : vector<256x128xf32>
    %34 = tpu.matmul %30, %33, %cst_40 {dimension_numbers = #tpu.dot_dimension_numbers<[1], [0], [0], [1], [0, 0, 1, 1], [], []>} : vector<256x128xbf16>, vector<128x128xbf16>, vector<256x128xf32> -> vector<256x128xf32>
    %c0_41 = arith.constant 0 : index
    %c0_42 = arith.constant 0 : index
    %35 = vector.load %arg7[%c0_41, %c0_42] : memref<256x128xf32, #tpu.memory_space<vmem>>, vector<256x128xf32>
    %36 = arith.addf %35, %34 : vector<256x128xf32>
    %c0_43 = arith.constant 0 : index
    %c0_44 = arith.constant 0 : index
    %37 = vector.load %arg7[%c0_43, %c0_44] : memref<256x128xf32, #tpu.memory_space<vmem>>, vector<256x128xf32>
    tpu.vector_store %arg7[%c0_43, %c0_44], %36 {strides = array<i32>} : memref<256x128xf32, #tpu.memory_space<vmem>>, vector<256x128xf32>,
    %c0_45 = arith.constant 0 : index
    %c0_46 = arith.constant 0 : index
    %c1_47 = arith.constant 1 : index
    %c1_48 = arith.constant 1 : index
    %c0_49 = arith.constant 0 : index
    %38 = vector.load %arg2[%c0_45, %c0_46, %c1_47, %c1_48, %c0_49] : memref<1x1x18x18x128xbf16, #tpu.memory_space<vmem>>, vector<1x1x16x16x128xbf16>
    %39 = vector.shape_cast %38 : vector<1x1x16x16x128xbf16> to vector<16x16x128xbf16>
    %40 = vector.shape_cast %39 : vector<16x16x128xbf16> to vector<256x128xbf16>
    %41 = arith.index_cast %arg1 : i32 to index
    %c4 = arith.constant 4 : index
    %c0_50 = arith.constant 0 : index
    %c0_51 = arith.constant 0 : index
    %42 = vector.load %arg3[%41, %c4, %c0_50, %c0_51] : memref<1x9x128x128xbf16, #tpu.memory_space<vmem>>, vector<1x1x128x128xbf16>
    %43 = vector.shape_cast %42 : vector<1x1x128x128xbf16> to vector<128x128xbf16>
    %cst_52 = arith.constant dense<0.000000e+00> : vector<256x128xf32>
    %44 = tpu.matmul %40, %43, %cst_52 {dimension_numbers = #tpu.dot_dimension_numbers<[1], [0], [0], [1], [0, 0, 1, 1], [], []>} : vector<256x128xbf16>, vector<128x128xbf16>, vector<256x128xf32> -> vector<256x128xf32>
    %c0_53 = arith.constant 0 : index
    %c0_54 = arith.constant 0 : index
    %45 = vector.load %arg7[%c0_53, %c0_54] : memref<256x128xf32, #tpu.memory_space<vmem>>, vector<256x128xf32>
    %46 = arith.addf %45, %44 : vector<256x128xf32>
    %c0_55 = arith.constant 0 : index
    %c0_56 = arith.constant 0 : index
    %47 = vector.load %arg7[%c0_55, %c0_56] : memref<256x128xf32, #tpu.memory_space<vmem>>, vector<256x128xf32>
    tpu.vector_store %arg7[%c0_55, %c0_56], %46 {strides = array<i32>} : memref<256x128xf32, #tpu.memory_space<vmem>>, vector<256x128xf32>,
    %c0_57 = arith.constant 0 : index
    %c0_58 = arith.constant 0 : index
    %c1_59 = arith.constant 1 : index
    %c2_60 = arith.constant 2 : index
    %c0_61 = arith.constant 0 : index
    %48 = vector.load %arg2[%c0_57, %c0_58, %c1_59, %c2_60, %c0_61] : memref<1x1x18x18x128xbf16, #tpu.memory_space<vmem>>, vector<1x1x16x16x128xbf16>
    %49 = vector.shape_cast %48 : vector<1x1x16x16x128xbf16> to vector<16x16x128xbf16>
    %50 = vector.shape_cast %49 : vector<16x16x128xbf16> to vector<256x128xbf16>
    %51 = arith.index_cast %arg1 : i32 to index
    %c5 = arith.constant 5 : index
    %c0_62 = arith.constant 0 : index
    %c0_63 = arith.constant 0 : index
    %52 = vector.load %arg3[%51, %c5, %c0_62, %c0_63] : memref<1x9x128x128xbf16, #tpu.memory_space<vmem>>, vector<1x1x128x128xbf16>
    %53 = vector.shape_cast %52 : vector<1x1x128x128xbf16> to vector<128x128xbf16>
    %cst_64 = arith.constant dense<0.000000e+00> : vector<256x128xf32>
    %54 = tpu.matmul %50, %53, %cst_64 {dimension_numbers = #tpu.dot_dimension_numbers<[1], [0], [0], [1], [0, 0, 1, 1], [], []>} : vector<256x128xbf16>, vector<128x128xbf16>, vector<256x128xf32> -> vector<256x128xf32>
    %c0_65 = arith.constant 0 : index
    %c0_66 = arith.constant 0 : index
    %55 = vector.load %arg7[%c0_65, %c0_66] : memref<256x128xf32, #tpu.memory_space<vmem>>, vector<256x128xf32>
    %56 = arith.addf %55, %54 : vector<256x128xf32>
    %c0_67 = arith.constant 0 : index
    %c0_68 = arith.constant 0 : index
    %57 = vector.load %arg7[%c0_67, %c0_68] : memref<256x128xf32, #tpu.memory_space<vmem>>, vector<256x128xf32>
    tpu.vector_store %arg7[%c0_67, %c0_68], %56 {strides = array<i32>} : memref<256x128xf32, #tpu.memory_space<vmem>>, vector<256x128xf32>,
    %c0_69 = arith.constant 0 : index
    %c0_70 = arith.constant 0 : index
    %c2_71 = arith.constant 2 : index
    %c0_72 = arith.constant 0 : index
    %c0_73 = arith.constant 0 : index
    %58 = vector.load %arg2[%c0_69, %c0_70, %c2_71, %c0_72, %c0_73] : memref<1x1x18x18x128xbf16, #tpu.memory_space<vmem>>, vector<1x1x16x16x128xbf16>
    %59 = vector.shape_cast %58 : vector<1x1x16x16x128xbf16> to vector<16x16x128xbf16>
    %60 = vector.shape_cast %59 : vector<16x16x128xbf16> to vector<256x128xbf16>
    %61 = arith.index_cast %arg1 : i32 to index
    %c6 = arith.constant 6 : index
    %c0_74 = arith.constant 0 : index
    %c0_75 = arith.constant 0 : index
    %62 = vector.load %arg3[%61, %c6, %c0_74, %c0_75] : memref<1x9x128x128xbf16, #tpu.memory_space<vmem>>, vector<1x1x128x128xbf16>
    %63 = vector.shape_cast %62 : vector<1x1x128x128xbf16> to vector<128x128xbf16>
    %cst_76 = arith.constant dense<0.000000e+00> : vector<256x128xf32>
    %64 = tpu.matmul %60, %63, %cst_76 {dimension_numbers = #tpu.dot_dimension_numbers<[1], [0], [0], [1], [0, 0, 1, 1], [], []>} : vector<256x128xbf16>, vector<128x128xbf16>, vector<256x128xf32> -> vector<256x128xf32>
    %c0_77 = arith.constant 0 : index
    %c0_78 = arith.constant 0 : index
    %65 = vector.load %arg7[%c0_77, %c0_78] : memref<256x128xf32, #tpu.memory_space<vmem>>, vector<256x128xf32>
    %66 = arith.addf %65, %64 : vector<256x128xf32>
    %c0_79 = arith.constant 0 : index
    %c0_80 = arith.constant 0 : index
    %67 = vector.load %arg7[%c0_79, %c0_80] : memref<256x128xf32, #tpu.memory_space<vmem>>, vector<256x128xf32>
    tpu.vector_store %arg7[%c0_79, %c0_80], %66 {strides = array<i32>} : memref<256x128xf32, #tpu.memory_space<vmem>>, vector<256x128xf32>,
    %c0_81 = arith.constant 0 : index
    %c0_82 = arith.constant 0 : index
    %c2_83 = arith.constant 2 : index
    %c1_84 = arith.constant 1 : index
    %c0_85 = arith.constant 0 : index
    %68 = vector.load %arg2[%c0_81, %c0_82, %c2_83, %c1_84, %c0_85] : memref<1x1x18x18x128xbf16, #tpu.memory_space<vmem>>, vector<1x1x16x16x128xbf16>
    %69 = vector.shape_cast %68 : vector<1x1x16x16x128xbf16> to vector<16x16x128xbf16>
    %70 = vector.shape_cast %69 : vector<16x16x128xbf16> to vector<256x128xbf16>
    %71 = arith.index_cast %arg1 : i32 to index
    %c7 = arith.constant 7 : index
    %c0_86 = arith.constant 0 : index
    %c0_87 = arith.constant 0 : index
    %72 = vector.load %arg3[%71, %c7, %c0_86, %c0_87] : memref<1x9x128x128xbf16, #tpu.memory_space<vmem>>, vector<1x1x128x128xbf16>
    %73 = vector.shape_cast %72 : vector<1x1x128x128xbf16> to vector<128x128xbf16>
    %cst_88 = arith.constant dense<0.000000e+00> : vector<256x128xf32>
    %74 = tpu.matmul %70, %73, %cst_88 {dimension_numbers = #tpu.dot_dimension_numbers<[1], [0], [0], [1], [0, 0, 1, 1], [], []>} : vector<256x128xbf16>, vector<128x128xbf16>, vector<256x128xf32> -> vector<256x128xf32>
    %c0_89 = arith.constant 0 : index
    %c0_90 = arith.constant 0 : index
    %75 = vector.load %arg7[%c0_89, %c0_90] : memref<256x128xf32, #tpu.memory_space<vmem>>, vector<256x128xf32>
    %76 = arith.addf %75, %74 : vector<256x128xf32>
    %c0_91 = arith.constant 0 : index
    %c0_92 = arith.constant 0 : index
    %77 = vector.load %arg7[%c0_91, %c0_92] : memref<256x128xf32, #tpu.memory_space<vmem>>, vector<256x128xf32>
    tpu.vector_store %arg7[%c0_91, %c0_92], %76 {strides = array<i32>} : memref<256x128xf32, #tpu.memory_space<vmem>>, vector<256x128xf32>,
    %c0_93 = arith.constant 0 : index
    %c0_94 = arith.constant 0 : index
    %c2_95 = arith.constant 2 : index
    %c2_96 = arith.constant 2 : index
    %c0_97 = arith.constant 0 : index
    %78 = vector.load %arg2[%c0_93, %c0_94, %c2_95, %c2_96, %c0_97] : memref<1x1x18x18x128xbf16, #tpu.memory_space<vmem>>, vector<1x1x16x16x128xbf16>
    %79 = vector.shape_cast %78 : vector<1x1x16x16x128xbf16> to vector<16x16x128xbf16>
    %80 = vector.shape_cast %79 : vector<16x16x128xbf16> to vector<256x128xbf16>
    %81 = arith.index_cast %arg1 : i32 to index
    %c8 = arith.constant 8 : index
    %c0_98 = arith.constant 0 : index
    %c0_99 = arith.constant 0 : index
    %82 = vector.load %arg3[%81, %c8, %c0_98, %c0_99] : memref<1x9x128x128xbf16, #tpu.memory_space<vmem>>, vector<1x1x128x128xbf16>
    %83 = vector.shape_cast %82 : vector<1x1x128x128xbf16> to vector<128x128xbf16>
    %cst_100 = arith.constant dense<0.000000e+00> : vector<256x128xf32>
    %84 = tpu.matmul %80, %83, %cst_100 {dimension_numbers = #tpu.dot_dimension_numbers<[1], [0], [0], [1], [0, 0, 1, 1], [], []>} : vector<256x128xbf16>, vector<128x128xbf16>, vector<256x128xf32> -> vector<256x128xf32>
    %c0_101 = arith.constant 0 : index
    %c0_102 = arith.constant 0 : index
    %85 = vector.load %arg7[%c0_101, %c0_102] : memref<256x128xf32, #tpu.memory_space<vmem>>, vector<256x128xf32>
    %86 = arith.addf %85, %84 : vector<256x128xf32>
    %c0_103 = arith.constant 0 : index
    %c0_104 = arith.constant 0 : index
    %87 = vector.load %arg7[%c0_103, %c0_104] : memref<256x128xf32, #tpu.memory_space<vmem>>, vector<256x128xf32>
    tpu.vector_store %arg7[%c0_103, %c0_104], %86 {strides = array<i32>} : memref<256x128xf32, #tpu.memory_space<vmem>>, vector<256x128xf32>,
    %c0_105 = arith.constant 0 : index
    %c0_106 = arith.constant 0 : index
    %88 = vector.load %arg7[%c0_105, %c0_106] : memref<256x128xf32, #tpu.memory_space<vmem>>, vector<256x128xf32>
    %cst_107 = arith.constant dense<0.000000e+00> : vector<128xf32>
    %89 = vector.multi_reduction <add>, %88, %cst_107 [0] : vector<256x128xf32> to vector<128xf32>
    %90 = vector.shape_cast %89 : vector<128xf32> to vector<1x1x128xf32>
    %c0_108 = arith.constant 0 : index
    %c0_109 = arith.constant 0 : index
    %c0_110 = arith.constant 0 : index
    %91 = vector.load %arg5[%c0_108, %c0_109, %c0_110] : memref<1x1x128xf32, #tpu.memory_space<vmem>>, vector<1x1x128xf32>
    tpu.vector_store %arg5[%c0_108, %c0_109, %c0_110], %90 {strides = array<i32>} : memref<1x1x128xf32, #tpu.memory_space<vmem>>, vector<1x1x128xf32>,
    %92 = arith.mulf %88, %88 : vector<256x128xf32>
    %cst_111 = arith.constant dense<0.000000e+00> : vector<128xf32>
    %93 = vector.multi_reduction <add>, %92, %cst_111 [0] : vector<256x128xf32> to vector<128xf32>
    %94 = vector.shape_cast %93 : vector<128xf32> to vector<1x1x128xf32>
    %c0_112 = arith.constant 0 : index
    %c0_113 = arith.constant 0 : index
    %c0_114 = arith.constant 0 : index
    %95 = vector.load %arg6[%c0_112, %c0_113, %c0_114] : memref<1x1x128xf32, #tpu.memory_space<vmem>>, vector<1x1x128xf32>
    tpu.vector_store %arg6[%c0_112, %c0_113, %c0_114], %94 {strides = array<i32>} : memref<1x1x128xf32, #tpu.memory_space<vmem>>, vector<1x1x128xf32>,
    %96 = arith.truncf %88 : vector<256x128xf32> to vector<256x128xbf16>
    %97 = vector.shape_cast %96 : vector<256x128xbf16> to vector<16x16x128xbf16>
    %c0_115 = arith.constant 0 : index
    %c0_116 = arith.constant 0 : index
    %c0_117 = arith.constant 0 : index
    %c0_118 = arith.constant 0 : index
    %98 = vector.load %arg4[%c0_115, %c0_116, %c0_117, %c0_118] : memref<1x16x16x128xbf16, #tpu.memory_space<vmem>>, vector<1x16x16x128xbf16>
    %99 = vector.shape_cast %98 : vector<1x16x16x128xbf16> to vector<16x16x128xbf16>
    %100 = vector.shape_cast %97 : vector<16x16x128xbf16> to vector<1x16x16x128xbf16>
    tpu.vector_store %arg4[%c0_115, %c0_116, %c0_117, %c0_118], %100 {strides = array<i32>} : memref<1x16x16x128xbf16, #tpu.memory_space<vmem>>, vector<1x16x16x128xbf16>,
    return
  }
  func.func @transform_0(%arg0: i32, %arg1: i32) -> (i32, i32, i32, i32, i32) {
    %c0_i32 = arith.constant 0 : i32
    %c0_i32_0 = arith.constant 0 : i32
    %c0_i32_1 = arith.constant 0 : i32
    %c0_i32_2 = arith.constant 0 : i32
    %c0_i32_3 = arith.constant 0 : i32
    return %c0_i32, %arg0, %c0_i32_0, %c0_i32_1, %c0_i32_2 : i32, i32, i32, i32, i32
  }
  func.func @transform_1(%arg0: i32, %arg1: i32) -> (i32, i32, i32, i32) {
    %c0_i32 = arith.constant 0 : i32
    %c0_i32_0 = arith.constant 0 : i32
    %c0_i32_1 = arith.constant 0 : i32
    %c0_i32_2 = arith.constant 0 : i32
    %c0_i32_3 = arith.constant 0 : i32
    return %c0_i32, %c0_i32_0, %c0_i32_1, %c0_i32_2 : i32, i32, i32, i32
  }
  func.func @transform_2(%arg0: i32, %arg1: i32) -> (i32, i32, i32, i32) {
    %c0_i32 = arith.constant 0 : i32
    %c0_i32_0 = arith.constant 0 : i32
    %c0_i32_1 = arith.constant 0 : i32
    return %arg0, %c0_i32, %c0_i32_0, %arg1 : i32, i32, i32, i32
  }
  func.func @transform_3(%arg0: i32, %arg1: i32) -> (i32, i32, i32) {
    %c0_i32 = arith.constant 0 : i32
    %c0_i32_0 = arith.constant 0 : i32
    return %arg0, %c0_i32, %arg1 : i32, i32, i32
  }
  func.func @transform_4(%arg0: i32, %arg1: i32) -> (i32, i32, i32) {
    %c0_i32 = arith.constant 0 : i32
    %c0_i32_0 = arith.constant 0 : i32
    return %arg0, %c0_i32, %arg1 : i32, i32, i32
  }
}

</mosaic_0001>

<bundles_post_ra>
// kernel: tpu_custom_call.1
= control target key start
LH: loop header
LB: loop body
LE: loop exit
PB: predicated region body
PF: predicated region fallthrough
CT: control target
= control target key end

     0   :  { %10 = vsyncpa [#allocation4], 0  ;;  %s9704_s0 = inlined_call_operand.vmem [shape: bf16[1,2,18,18,128], index: 0, kind: input, shape index: {}]   ;;  %s9705_s1 = inlined_call_operand.vmem [shape: bf16[1,9,128,128], index: 1, kind: input, shape index: {}]   ;;  %s9706_s2 = inlined_call_operand.hbm [shape: bf16[2,16,16,128], index: 2, kind: output, shape index: {0}]   ;;  %s9707_s3 = inlined_call_operand.hbm [shape: f32[2,1,128], index: 3, kind: output, shape index: {1}]   ;;  %s9708_s4 = inlined_call_operand.hbm [shape: f32[2,1,128], index: 4, kind: output, shape index: {2}]  }
   0x1   :  { %12 = vsyncpa [#allocation4 + $0x1], 0 }
   0x2   :  { %13 = vsyncpa [#allocation6], 0 }
   0x3   :  { %15 = vsyncpa [#allocation6 + $0x1], 0  ;;  %s8399_s15 = smov 0   ;;  %s8401_s16 = smov 0  }
   0x4   :  { %s8403_s17 = smov 0   ;;  %s8405_s18 = smov 0  }
   0x5   :  { %s8407_s19 = smov 0   ;;  %s8409_s20 = smov 0  }
   0x6 LB: > { %s6291_s21 = sadd.s32 4294967295, %s8367_s20   ;;  %s6292_s22 = sadd.s32 4294967294, %s8367_s20   ;;  %s8367_s20 = sphi %s8409_s20, %s21_s20   ;;  %s8363_s19 = sphi %s8407_s19, %s9719_s19   ;;  %s8359_s18 = sphi %s8405_s18, %s9718_s18   ;;  %s8355_s17 = sphi %s8403_s17, %s9717_s17   ;;  %s8351_s16 = sphi %s8401_s16, %s9716_s16   ;;  %s8347_s15 = sphi %s8399_s15, %s9715_s15  }
   0x7   : > { %s33_s23 = sadd.s32 1, %s8363_s19  ;;  %s89_s24 = sadd.s32 1, %s8355_s17 }
   0x8   : > { %p35_p0 = scmp.ge.s32.totalorder %s33_s23, 2  ;;  %p99_p1 = scmp.ne.s32.totalorder %s8355_s17, %s8351_s16 }
   0x9   : > { %p100_p2 = scmp.eq.s32.totalorder %s6291_s21, 1  ;;  %p105_p3 = scmp.ne.s32.totalorder %s8351_s16, %s8347_s15 }
   0xa   : > { %s9721_s23 = smov (%p35_p0, %s33_s23), 0  ;;  %p106_p5 = scmp.eq.s32.totalorder %s6292_s22, 1 }
   0xb   : > { %p8441_p4 = por %p100_p2, %p99_p1  ;;  %s84_s26 = ssub.s32 %s8363_s19, %s9721_s23 }
   0xc   : > { %p6295_p6 = scmp.ge.s32.totalorder %s8367_s20, 1  ;;  %p87_p7 = scmp.eq.s32.totalorder %s84_s26, 0 }
   0xd   : > { %p8450_p8 = por %p106_p5, %p105_p3  ;;  %p191_p9 = scmp.lt.s32.totalorder %s8367_s20, 3 }
   0xe   : > { %s8456_s28 = scalar_select %p87_p7, %s8355_s17, %s89_s24  }
   0xf   : > { %p192_p10 = pnand %p6295_p6, %p191_p9 }
  0x10   : > { %v8101_v0 = vld [vmem:[%s9705_s1] sm:$0xff] (!%p192_p10)   ;;  %v8103_v2 = vld [vmem:[%s9705_s1 + $0x8] sm:$0xff] (!%p192_p10)   ;;  %p225_p11 = scmp.lt.s32.totalorder (!%p192_p10), %s8359_s18, 1  ;;  %v8105_v4 = vld [vmem:[%s9705_s1 + $0x10] sm:$0xff] (!%p192_p10)   ;;  %vm667_vm0 = vsmask.f32 (!%p192_p10), 3328 }
  0x11   : > { %195 = sbr.rel (%p192_p10) target bundleno = 627 (0x273), region = 28  ;;  %v8102_v1 = vld [vmem:[%s9705_s1 + $0x100] sm:$0xff] (!%p192_p10)   ;;  %7329 = vmatprep.subr.bf16.mxu1 (!%p192_p10), %v8101_v0  ;;  %v8104_v3 = vld [vmem:[%s9705_s1 + $0x108] sm:$0xff] (!%p192_p10)   ;;  %v8106_v5 = vld [vmem:[%s9705_s1 + $0x110] sm:$0xff] (!%p192_p10)   ;;  %vm668_vm1 = vsmask.f32 (!%p192_p10), 7440 }
  0x12   : > { %7521 = vmatprep.subr.bf16.mxu0 (!%p192_p10), %v8102_v1  ;;  %7330 = vmatpush3.bf16.msra.mxu1 (!%p192_p10), %v8101_v0  ;;  %v8107_v6 = vld [vmem:[%s9705_s1 + $0x18] sm:$0xff] (!%p192_p10)   ;;  %v8109_v8 = vld [vmem:[%s9705_s1 + $0x20] sm:$0xff] (!%p192_p10)   ;;  %v8111_v10 = vld [vmem:[%s9705_s1 + $0x28] sm:$0xff] (!%p192_p10)   ;;  %vm1538_vm3 = vcmask (!%p192_p10), 1042432   ;;  %vm1539_vm4 = vcmask (!%p192_p10), 1046532   ;;  %s7017_s12 = sshll.u32 (!%p192_p10), %s8359_s18, 11 }
  0x13   : > { %7522 = vmatpush3.bf16.msra.mxu0 (!%p192_p10), %v8102_v1  ;;  %7331 = vmatprep.subr.bf16.mxu1 (!%p192_p10), %v8103_v2  ;;  %v8108_v7 = vld [vmem:[%s9705_s1 + $0x118] sm:$0xff] (!%p192_p10)   ;;  %v8110_v9 = vld [vmem:[%s9705_s1 + $0x120] sm:$0xff] (!%p192_p10)   ;;  %v8112_v11 = vld [vmem:[%s9705_s1 + $0x128] sm:$0xff] (!%p192_p10)   ;;  %s9578_s29 = scalar_lea.hbm (!%p192_p10), %s9706_s2, %s7017_s12 }
  0x14   : > { %7523 = vmatprep.subr.bf16.mxu0 (!%p192_p10), %v8104_v3  ;;  %v8113_v18 = vld [vmem:[%s9705_s1 + $0x30] sm:$0xff] (!%p192_p10)   ;;  %v8115_v32 = vld [vmem:[%s9705_s1 + $0x38] sm:$0xff] (!%p192_p10)   ;;  %vm8519_vm2 = vmor (!%p192_p10), %vm667_vm0, %vm668_vm1 }
  0x15   : > { %v8114_v24 = vld [vmem:[%s9705_s1 + $0x130] sm:$0xff] (!%p192_p10)   ;;  %v8116_v38 = vld [vmem:[%s9705_s1 + $0x138] sm:$0xff] (!%p192_p10)   ;;  %v8119_v47 = vld [vmem:[%s9705_s1 + $0x40] sm:$0xff] (!%p192_p10)  }
  0x16   : > { %7332 = vmatpush3.bf16.msra.mxu1 (!%p192_p10), %v8103_v2  ;;  %v8120_v52 = vld [vmem:[%s9705_s1 + $0x140] sm:$0xff] (!%p192_p10)   ;;  %vm8619_vm5 = vmor (!%p192_p10), %vm1538_vm3, %vm1539_vm4 }
  0x17   : > { %7524 = vmatpush3.bf16.msra.mxu0 (!%p192_p10), %v8104_v3  ;;  %7333 = vmatprep.subr.bf16.mxu1 (!%p192_p10), %v8105_v4 }
  0x18   : > { %s226_s24 = scalar_select %p225_p11, %s8359_s18, 1  ;;  %7525 = vmatprep.subr.bf16.mxu0 %v8106_v5 }
  0x1a   : > { %s8033_s6 = smul.u32 216, %s226_s24  ;;  %7334 = vmatpush3.bf16.msra.mxu1 %v8105_v4 }
  0x1b   : > { %7526 = vmatpush3.bf16.msra.mxu0 %v8106_v5  ;;  %7335 = vmatprep.subr.bf16.mxu1 %v8107_v6 }
  0x1c   : > { %7527 = vmatprep.subr.bf16.mxu0 %v8108_v7  ;;  %s8496_s24 = scalar_lea.vmem %s9704_s0, %s8033_s6  ;;  %s8369_s6 = smov [#allocation3]  }
  0x1d   : > { %v8117_v12 = vld [vmem:[%s8496_s24] sm:$0xff]   ;;  %v6490_v13 = vld [vmem:[%s8496_s24 + $0xc] sm:$0xf]  ;;  %v6491_v14 = vld [vmem:[%s8496_s24 + $0x10] sm:$0xf]  ;;  %s8233_s7 = sshll.u32 %s8369_s6, 4  ;;  %s8234_s7 = int_to_ptr.vmem [resolvable:$false] %s8233_s7 }
  0x1e   : > { %7336 = vmatpush3.bf16.msra.mxu1 %v8107_v6  ;;  %7345 = vmatprep.mubr.bf16.mxu1 %v8117_v12  ;;  %v6492_v15 = vld [vmem:[%s8496_s24 + $0x14] sm:$0x1]  ;;  %v2543_v16 = vshrl.u32 %v6490_v13, 16  ;;  %v2546_v17 = vshll.u32 %v6490_v13, 16  ;;  %v2552_v19 = vshll.u32 %v6491_v14, 16  ;;  %v2556_v20 = vshrl.u32 %v6491_v14, 16 }
  0x1f   : > { %7528 = vmatpush3.bf16.msra.mxu0 %v8108_v7  ;;  %7337 = vmatprep.subr.bf16.mxu1 %v8109_v8  ;;  %v2562_v21 = vshll.u32 %v6492_v15, 16  ;;  %v6493_v29 = vld [vmem:[%s8496_s24 + $0x18] sm:$0xf]  ;;  %v6494_v30 = vld [vmem:[%s8496_s24 + $0x1c] sm:$0xf]  ;;  %v8118_v55 = vld [vmem:[%s8496_s24 + $0xc] sm:$0xff]  }
  0x20   : > { %7529 = vmatprep.subr.bf16.mxu0 %v8110_v9  ;;  %v2545_v22 = vrot.slane %v2543_v16, 4  ;;  %v2548_v23 = vrot.slane %v2546_v17, 5  ;;  %v2554_v25 = vrot.slane %v2552_v19, 5  ;;  %v2558_v26 = vrot.slane %v2556_v20, 4  ;;  %v6495_v31 = vld [vmem:[%s8496_s24 + $0x20] sm:$0x1] }
  0x21   : > { %v2564_v27 = vrot.slane %v2562_v21, 5  ;;  %v2567_v35 = vshrl.u32 %v6493_v29, 16  ;;  %v2570_v36 = vshll.u32 %v6493_v29, 16  ;;  %v2576_v37 = vshll.u32 %v6494_v30, 16  ;;  %v6496_v53 = vld [vmem:[%s8496_s24 + $0x24] sm:$0xf] }
  0x22   : > { %7338 = vmatpush3.bf16.msra.mxu1 %v8109_v8  ;;  %v2549_v28 = vor.u32 %v2548_v23, %v2545_v22  ;;  %v2559_v34 = vor.u32 %v2558_v26, %v2554_v25  ;;  %v2580_v40 = vshrl.u32 %v6494_v30, 16  ;;  %v2586_v41 = vshll.u32 %v6495_v31, 16  ;;  %v6497_v57 = vld [vmem:[%s8496_s24 + $0x28] sm:$0xf]  ;;  %v6498_v58 = vld [vmem:[%s8496_s24 + $0x2c] sm:$0x1] }
  0x23   : > { %7530 = vmatpush3.bf16.msra.mxu0 %v8110_v9  ;;  %7339 = vmatprep.subr.bf16.mxu1 %v8111_v10  ;;  %v2569_v43 = vrot.slane %v2567_v35, 4  ;;  %v2572_v44 = vrot.slane %v2570_v36, 5  ;;  %v2578_v45 = vrot.slane %v2576_v37, 5  ;;  %v2591_v59 = vshrl.u32 %v6496_v53, 16  ;;  %v8122_v2 = vld [vmem:[%s8496_s24 + $0x18] sm:$0xff]   ;;  %v8121_v6 = vld [vmem:[%s9705_s1 + $0x148] sm:$0xff]  }
  0x24   : > { %7531 = vmatprep.subr.bf16.mxu0 %v8112_v11  ;;  %v2550_v39 = vrot.slane %v2549_v28, 4  ;;  %v2560_v42 = vrot.slane %v2559_v34, 4  ;;  %v2582_v48 = vrot.slane %v2580_v40, 4  ;;  %v2588_v51 = vrot.slane %v2586_v41, 5  ;;  %v6499_v13 = vld [vmem:[%s8496_s24 + $0x30] sm:$0xf] }
  0x25   : > { %v2573_v50 = vor.u32 %v2572_v44, %v2569_v43  ;;  %v2594_v60 = vshll.u32 %v6496_v53, 16  ;;  %v2600_v62 = vshll.u32 %v6497_v57, 16  ;;  %v2604_v63 = vshrl.u32 %v6497_v57, 16  ;;  %v6500_v14 = vld [vmem:[%s8496_s24 + $0x34] sm:$0xf]  ;;  %v8123_v28 = vld [vmem:[%s8496_s24 + $0x24] sm:$0xff]  }
  0x26   : > { %7340 = vmatpush3.bf16.msra.mxu1 %v8111_v10  ;;  %v2555_v46 = vsel %vm8519_vm2, %v2550_v39, %v2554_v25  ;;  %v2565_v49 = vsel %vm8519_vm2, %v2560_v42, %v2564_v27  ;;  %v2583_v56 = vor.u32 %v2582_v48, %v2578_v45  ;;  %v2610_v0 = vshll.u32 %v6498_v58, 16  ;;  %v8124_v10 = vld [vmem:[%s9705_s1 + $0x48] sm:$0xff]   ;;  %v6501_v17 = vld [vmem:[%s8496_s24 + $0x38] sm:$0x1]  ;;  %v8125_v31 = vld [vmem:[%s9705_s1 + $0x150] sm:$0xff]   ;;  %s8235_s8 = scalar_lea.vmem %s8234_s7, 4096 }
  0x27   : > { %7532 = vmatpush3.bf16.msra.mxu0 %v8112_v11  ;;  %7341 = vmatprep.subr.bf16.mxu1 %v8113_v18  ;;  %v6554_v54 = vcombine.low %v2555_v46, %v2565_v49  ;;  %v2574_v61 = vrot.slane %v2573_v50, 4  ;;  %v2593_v3 = vrot.slane %v2591_v59, 4  ;;  %v2596_v4 = vrot.slane %v2594_v60, 5  ;;  %v8127_v36 = vld [vmem:[%s8496_s24 + $0x30] sm:$0xff]   ;;  %v6502_v39 = vld [vmem:[%s8496_s24 + $0x3c] sm:$0xf] }
  0x28   : > { %7533 = vmatprep.subr.bf16.mxu0 %v8114_v24  ;;  %v2584_v1 = vrot.slane %v2583_v56, 4  ;;  %v2602_v7 = vrot.slane %v2600_v62, 5  ;;  %v2606_v8 = vrot.slane %v2604_v63, 4  ;;  %v2612_v9 = vrot.slane %v2610_v0, 5  ;;  %v6503_v40 = vld [vmem:[%s8496_s24 + $0x40] sm:$0xf] }
  0x29   : > { %7537 = vmatprep.mubr.bf16.mxu0 %v6554_v54  ;;  %v2579_v5 = vsel %vm8519_vm2, %v2574_v61, %v2578_v45  ;;  %v2597_v12 = vor.u32 %v2596_v4, %v2593_v3  ;;  %v2618_v19 = vshll.u32 %v6499_v13, 16  ;;  %v2624_v21 = vshll.u32 %v6500_v14, 16  ;;  %v6504_v41 = vld [vmem:[%s8496_s24 + $0x44] sm:$0x1]  ;;  %v8129_v54 = vld [vmem:[%s9705_s1 + $0x50] sm:$0xff]  }
  0x2a   : > { %7342 = vmatpush3.bf16.msra.mxu1 %v8113_v18  ;;  %v2589_v11 = vsel %vm8519_vm2, %v2584_v1, %v2588_v51  ;;  %v2607_v16 = vor.u32 %v2606_v8, %v2602_v7  ;;  %v2615_v18 = vshrl.u32 %v6499_v13, 16  ;;  %v2628_v22 = vshrl.u32 %v6500_v14, 16  ;;  %v6505_v58 = vld [vmem:[%s8496_s24 + $0x48] sm:$0xf]  ;;  %v6506_v61 = vld [vmem:[%s8496_s24 + $0x4c] sm:$0xf] }
  0x2b   : > { %7534 = vmatpush3.bf16.msra.mxu0 %v8114_v24  ;;  %7343 = vmatprep.subr.bf16.mxu1 %v8115_v32  ;;  %v6555_v15 = vcombine.low %v2579_v5, %v2589_v11  ;;  %v2598_v20 = vrot.slane %v2597_v12, 4  ;;  %v2634_v23 = vshll.u32 %v6501_v17, 16  ;;  %v2620_v26 = vrot.slane %v2618_v19, 5  ;;  %v6507_v62 = vld [vmem:[%s8496_s24 + $0x50] sm:$0x1]  ;;  %v8130_v8 = vld [vmem:[%s9705_s1 + $0x160] sm:$0xff]  }
  0x2c   : > { %7535 = vmatprep.subr.bf16.mxu0 %v8116_v38  ;;  %v2608_v24 = vrot.slane %v2607_v16, 4  ;;  %v2617_v25 = vrot.slane %v2615_v18, 4  ;;  %v2626_v29 = vrot.slane %v2624_v21, 5  ;;  %v2630_v30 = vrot.slane %v2628_v22, 4  ;;  %v8132_v18 = vld [vmem:[%s8496_s24 + $0x48] sm:$0xff]  }
  0x2d   : > { %v2603_v27 = vsel %vm8519_vm2, %v2598_v20, %v2602_v7  ;;  %v2636_v35 = vrot.slane %v2634_v23, 5  ;;  %v2639_v43 = vshrl.u32 %v6502_v39, 16  ;;  %v2642_v44 = vshll.u32 %v6502_v39, 16  ;;  %v6508_v19 = vld [vmem:[%s8496_s24 + $0x54] sm:$0xf]  ;;  %v8131_v23 = vld [vmem:[%s9705_s1 + $0x168] sm:$0xff]  }
  0x2e   : > { %7344 = vmatpush3.bf16.msra.mxu1 %v8115_v32  ;;  %v2613_v32 = vsel %vm8519_vm2, %v2608_v24, %v2612_v9  ;;  %v2621_v34 = vor.u32 %v2620_v26, %v2617_v25  ;;  %v2648_v45 = vshll.u32 %v6503_v40, 16  ;;  %v2652_v48 = vshrl.u32 %v6503_v40, 16  ;;  %v6509_v20 = vld [vmem:[%s8496_s24 + $0x58] sm:$0xf]  ;;  %v6510_v24 = vld [vmem:[%s8496_s24 + $0x5c] sm:$0x1] }
  0x2f   : > { %7536 = vmatpush3.bf16.msra.mxu0 %v8116_v38  ;;  %7377 = vmatprep.subr.bf16.mxu1 %v8119_v47  ;;  %v6556_v37 = vcombine.low %v2603_v27, %v2613_v32  ;;  %v2631_v38 = vor.u32 %v2630_v30, %v2626_v29  ;;  %v2658_v49 = vshll.u32 %v6504_v41, 16  ;;  %v2641_v51 = vrot.slane %v2639_v43, 4  ;;  %v8133_v39 = vld [vmem:[%s8496_s24 + $0x54] sm:$0xff]   ;;  %v6511_v43 = vld [vmem:[%s8496_s24 + $0x60] sm:$0xf] }
  0x30   : > { %7569 = vmatprep.subr.bf16.mxu0 %v8120_v52  ;;  %v2622_v42 = vrot.slane %v2621_v34, 4  ;;  %v2650_v53 = vrot.slane %v2648_v45, 5  ;;  %v2654_v56 = vrot.slane %v2652_v48, 4  ;;  %v2663_v63 = vshrl.u32 %v6505_v58, 16  ;;  %v8134_v40 = vld [vmem:[%s9705_s1 + $0x58] sm:$0xff]  }
  0x31   : > { %7346 = vmatmul.mubr.bf16.vlgmr.msra.gmra.mrb[0].mxu1 %v8118_v55  ;;  %v2632_v46 = vrot.slane %v2631_v38, 4  ;;  %v2660_v57 = vrot.slane %v2658_v49, 5  ;;  %v2666_v0 = vshll.u32 %v6505_v58, 16  ;;  %v2676_v3 = vshrl.u32 %v6506_v61, 16  ;;  %v6513_v45 = vld [vmem:[%s8496_s24 + $0x68] sm:$0x1] }
  0x32   : > { %7538 = vmatmul.mubr.bf16.vlgmr.msra.gmra.mrb[0].mxu0 %v6555_v15  ;;  %7378 = vmatpush3.bf16.msra.mxu1 %v8119_v47  ;;  %v8126_v47 = vld [vmem:[%s9705_s1 + $0x158] sm:$0xff]   ;;  %v2627_v50 = vsel %vm8519_vm2, %v2622_v42, %v2626_v29  ;;  %v2655_v1 = vor.u32 %v2654_v56, %v2650_v53  ;;  %v2682_v4 = vshll.u32 %v6507_v62, 16  ;;  %v2687_v25 = vshrl.u32 %v6508_v19, 16 }
  0x33   : > { %7570 = vmatpush3.bf16.msra.mxu0 %v8120_v52  ;;  %7349 = vmatprep.mubr.bf16.mxu1 %v8122_v2  ;;  %v2644_v52 = vrot.slane %v2642_v44, 5  ;;  %v2637_v55 = vsel %vm8519_vm2, %v2632_v46, %v2636_v35  ;;  %v2672_v2 = vshll.u32 %v6506_v61, 16  ;;  %v2668_v7 = vrot.slane %v2666_v0, 5  ;;  %v6512_v44 = vld [vmem:[%s8496_s24 + $0x64] sm:$0xf] }
  0x34   : > { %7571 = vmatprep.subr.bf16.mxu0 %v8121_v6  ;;  %7379 = vmatprep.subr.bf16.mxu1 %v8124_v10  ;;  %v6557_v59 = vcombine.low %v2627_v50, %v2637_v55  ;;  %v2656_v9 = vrot.slane %v2655_v1, 4  ;;  %v2678_v12 = vrot.slane %v2676_v3, 4  ;;  %v2684_v17 = vrot.slane %v2682_v4, 5  ;;  %v8135_v50 = vld [vmem:[%s9705_s1 + $0x170] sm:$0xff]   ;;  %v6578_v0 = vld [vmem:[%s8496_s24 + $0xc] sm:$0xe] }
  0x35   : > { %7541 = vmatprep.mubr.bf16.mxu0 %v6556_v37  ;;  %v2645_v60 = vor.u32 %v2644_v52, %v2641_v51  ;;  %v2674_v11 = vrot.slane %v2672_v2, 5  ;;  %v2690_v26 = vshll.u32 %v6508_v19, 16  ;;  %v2700_v29 = vshrl.u32 %v6509_v20, 16 }
  0x36   : > { %7380 = vmatpush3.bf16.msra.mxu1 %v8124_v10  ;;  %v8128_v10 = vld [vmem:[%s8496_s24 + $0x3c] sm:$0xff]   ;;  %v2661_v15 = vsel %vm8519_vm2, %v2656_v9, %v2660_v57  ;;  %v2706_v30 = vshll.u32 %v6510_v24, 16  ;;  %v2689_v32 = vrot.slane %v2687_v25, 4  ;;  %v2714_v48 = vshll.u32 %v6511_v43, 16 }
  0x37   : > { %7572 = vmatpush3.bf16.msra.mxu0 %v8121_v6  ;;  %7381 = vmatprep.subr.bf16.mxu1 %v8129_v54  ;;  %v2646_v5 = vrot.slane %v2645_v60, 4  ;;  %v2665_v6 = vrot.slane %v2663_v63, 4  ;;  %v2679_v16 = vor.u32 %v2678_v12, %v2674_v11  ;;  %v2692_v34 = vrot.slane %v2690_v26, 5  ;;  %v8136_v60 = vld [vmem:[%s9705_s1 + $0x178] sm:$0xff]   ;;  %v8137_v63 = vld [vmem:[%s8496_s24 + $0x60] sm:$0xff]  }
  0x38   : > { %7573 = vmatprep.subr.bf16.mxu0 %v8125_v31  ;;  %v2702_v37 = vrot.slane %v2700_v29, 4  ;;  %v2708_v38 = vrot.slane %v2706_v30, 5  ;;  %v2720_v49 = vshll.u32 %v6512_v44, 16  ;;  %v2724_v52 = vshrl.u32 %v6512_v44, 16  ;;  %v6584_v29 = vld [vmem:[%s8496_s24 + $0x24] sm:$0xe] }
  0x39   : > { %7350 = vmatmul.mubr.bf16.gmra.mrb[4].mxu1 %v8123_v28  ;;  %v2651_v13 = vsel %vm8519_vm2, %v2646_v5, %v2650_v53  ;;  %v2669_v14 = vor.u32 %v2668_v7, %v2665_v6  ;;  %v2680_v27 = vrot.slane %v2679_v16, 4  ;;  %v2696_v28 = vshll.u32 %v6509_v20, 16  ;;  %v6579_v5 = vld [vmem:[%s8496_s24 + $0x10] sm:$0xf]  ;;  %v6580_v6 = vld [vmem:[%s8496_s24 + $0x14] sm:$0x1] }
  0x3a   : > { %7353 = vmatprep.mubr.bf16.mxu1 %v8127_v36  ;;  %7382 = vmatpush3.bf16.msra.mxu1 %v8129_v54  ;;  %v6558_v21 = vcombine.low %v2651_v13, %v2661_v15  ;;  %v2693_v42 = vor.u32 %v2692_v34, %v2689_v32  ;;  %v2730_v53 = vshll.u32 %v6513_v45, 16  ;;  %v2716_v56 = vrot.slane %v2714_v48, 5  ;;  %v8140_v13 = vld [vmem:[%s9705_s1 + $0x180] sm:$0xff]   ;;  %v6582_v20 = vld [vmem:[%s8496_s24 + $0x1c] sm:$0xf]  ;;  %v8144_v48 = vld [vmem:[%s9705_s1 + $0x188] sm:$0xff]  }
  0x3b   : > { %7574 = vmatpush3.bf16.msra.mxu0 %v8125_v31  ;;  %v2670_v22 = vrot.slane %v2669_v14, 4  ;;  %v2685_v35 = vsel %vm8519_vm2, %v2680_v27, %v2684_v17  ;;  %v2698_v36 = vrot.slane %v2696_v28, 5  ;;  %7383 = vmatprep.subr.bf16.mxu1 %v8134_v40  ;;  %v2722_v57 = vrot.slane %v2720_v49, 5  ;;  %v8138_v17 = vld [vmem:[%s8496_s24 + $0x6c] sm:$0xff]   ;;  %v6588_v44 = vld [vmem:[%s8496_s24 + $0x34] sm:$0xf] }
  0x3c   : > { %7542 = vmatmul.mubr.bf16.gmra.mrb[4].mxu0 %v6557_v59  ;;  %7575 = vmatprep.subr.bf16.mxu0 %v8126_v47  ;;  %v2694_v51 = vrot.slane %v2693_v42, 4  ;;  %v2726_v59 = vrot.slane %v2724_v52, 4  ;;  %v2732_v3 = vrot.slane %v2730_v53, 5  ;;  %v6626_v7 = vrot.slane %v6578_v0, 9  ;;  %v6586_v32 = vld [vmem:[%s8496_s24 + $0x2c] sm:$0x1] }
  0x3d   : > { %7545 = vmatprep.mubr.bf16.mxu0 %v6558_v21  ;;  %v2675_v31 = vsel %vm8519_vm2, %v2670_v22, %v2674_v11  ;;  %v2703_v46 = vor.u32 %v2702_v37, %v2698_v36  ;;  %v3412_v9 = vrot.slane %v6579_v5, 5  ;;  %v8139_v11 = vld [vmem:[%s9705_s1 + $0x60] sm:$0xff]   ;;  %v3419_v26 = vrot.slane %v6582_v20, 5  ;;  %v6593_v0 = vld [vmem:[%s8496_s24 + $0x48] sm:$0xe] }
  0x3e   : > { %v6559_v41 = vcombine.low %v2675_v31, %v2685_v35  ;;  %7384 = vmatpush3.bf16.msra.mxu1 %v8134_v40  ;;  %v2699_v58 = vsel %vm8519_vm2, %v2694_v51, %v2698_v36  ;;  %v2727_v2 = vor.u32 %v2726_v59, %v2722_v57  ;;  %v6583_v21 = vld [vmem:[%s8496_s24 + $0x20] sm:$0x1]  ;;  %v6585_v31 = vld [vmem:[%s8496_s24 + $0x28] sm:$0xf]  ;;  %v6628_v34 = vrot.slane %v6584_v29, 9  ;;  %v8147_v59 = vld [vmem:[%s9705_s1 + $0x70] sm:$0xff]  }
  0x3f   : > { %7576 = vmatpush3.bf16.msra.mxu0 %v8126_v47  ;;  %v2711_v47 = vshrl.u32 %v6511_v43, 16  ;;  %v2704_v54 = vrot.slane %v2703_v46, 4  ;;  %v3413_v15 = vsel %vm8619_vm5, %v6626_v7, %v3412_v9  ;;  %v3414_v16 = vrot.slane %v3412_v9, 4  ;;  %7385 = vmatprep.subr.bf16.mxu1 %v8139_v11  ;;  %v8142_v42 = vld [vmem:[%s8496_s24 + $0x84] sm:$0xff]   ;;  %v6587_v43 = vld [vmem:[%s8496_s24 + $0x30] sm:$0xe] }
  0x40   : > { %7577 = vmatprep.subr.bf16.mxu0 %v8130_v8  ;;  %v2728_v12 = vrot.slane %v2727_v2, 4  ;;  %v3422_v27 = vrot.slane %v6583_v21, 5  ;;  %v3421_v30 = vrot.slane %v3419_v26, 4  ;;  %v3426_v36 = vrot.slane %v6585_v31, 5  ;;  %v6589_v46 = vld [vmem:[%s8496_s24 + $0x38] sm:$0x1] }
  0x41   : > { %7354 = vmatmul.mubr.bf16.gmra.mrb[8].mxu1 %v8128_v10  ;;  %v2713_v55 = vrot.slane %v2711_v47, 4  ;;  %v2709_v61 = vsel %vm8519_vm2, %v2704_v54, %v2708_v38  ;;  %v3415_v10 = vrot.slane %v6580_v6, 5  ;;  %v3429_v37 = vrot.slane %v6586_v32, 5  ;;  %v8145_v54 = vld [vmem:[%s8496_s24 + $0x90] sm:$0xff]   ;;  %v6594_v5 = vld [vmem:[%s8496_s24 + $0x4c] sm:$0xf] }
  0x42   : > { %7357 = vmatprep.mubr.bf16.mxu1 %v8132_v18  ;;  %v6560_v1 = vcombine.low %v2699_v58, %v2709_v61  ;;  %v6581_v18 = vld [vmem:[%s8496_s24 + $0x18] sm:$0xe]  ;;  %v2733_v19 = vsel %vm8519_vm2, %v2728_v12, %v2732_v3  ;;  %7386 = vmatpush3.bf16.msra.mxu1 %v8139_v11  ;;  %v3423_v38 = vsel %vm8619_vm5, %v3421_v30, %v3422_v27  ;;  %v3433_v47 = vrot.slane %v6588_v44, 5  ;;  %v8146_v3 = vld [vmem:[%s8496_s24 + $0x9c] sm:$0xff]   ;;  %v6595_v6 = vld [vmem:[%s8496_s24 + $0x50] sm:$0x1] }
  0x43   : > { %7578 = vmatpush3.bf16.msra.mxu0 %v8130_v8  ;;  %v2717_v62 = vor.u32 %v2716_v56, %v2713_v55  ;;  %v6627_v22 = vrot.slane %v6581_v18, 9  ;;  %v3416_v25 = vsel %vm8619_vm5, %v3414_v16, %v3415_v10  ;;  %v3427_v40 = vsel %vm8619_vm5, %v6628_v34, %v3426_v36  ;;  %v6590_v55 = vld [vmem:[%s8496_s24 + $0x3c] sm:$0xe]  ;;  %v6591_v56 = vld [vmem:[%s8496_s24 + $0x40] sm:$0xf]  ;;  %v8148_v12 = vld [vmem:[%s9705_s1 + $0x190] sm:$0xff]  }
  0x44   : > { %7579 = vmatprep.subr.bf16.mxu0 %v8131_v23  ;;  %7546 = vmatmul.mubr.bf16.gmra.mrb[8].mxu0 %v6559_v41  ;;  %v6658_v28 = vcombine.low %v3413_v15, %v3416_v25  ;;  %v3428_v41 = vrot.slane %v3426_v36, 4  ;;  %v3436_v51 = vrot.slane %v6589_v46, 5  ;;  %v3435_v53 = vrot.slane %v3433_v47, 4  ;;  %v8149_v15 = vld [vmem:[%s8496_s24 + $0xa8] sm:$0xff]   ;;  %v6596_v16 = vld [vmem:[%s8496_s24 + $0x54] sm:$0xe] }
  0x45   : > { %v2718_v8 = vrot.slane %v2717_v62, 4  ;;  %7549 = vmatprep.mubr.bf16.mxu0 %v6560_v1  ;;  %v3420_v35 = vsel %vm8619_vm5, %v6627_v22, %v3419_v26  ;;  %v6630_v58 = vrot.slane %v6590_v55, 9  ;;  %v6631_v7 = vrot.slane %v6593_v0, 9  ;;  %v6598_v18 = vld [vmem:[%s8496_s24 + $0x5c] sm:$0x1]  ;;  %v8150_v34 = vld [vmem:[%s8496_s24 + $0xb4] sm:$0xff]  }
  0x46   : > { %v6659_v45 = vcombine.low %v3420_v35, %v3423_v38  ;;  %v3430_v49 = vsel %vm8619_vm5, %v3428_v41, %v3429_v37  ;;  %v3450_v11 = vrot.slane %v6595_v6, 5  ;;  %v3457_v21 = vrot.slane %v6598_v18, 5  ;;  %v8151_v26 = vld [vmem:[%s9705_s1 + $0x78] sm:$0xff]   ;;  %v6599_v27 = vld [vmem:[%s8496_s24 + $0x60] sm:$0xe] }
  0x47   : > { %7580 = vmatpush3.bf16.msra.mxu0 %v8131_v23  ;;  %v2723_v14 = vsel %vm8519_vm2, %v2718_v8, %v2722_v57  ;;  %v8141_v23 = vld [vmem:[%s8496_s24 + $0x78] sm:$0xff]   ;;  %v6660_v52 = vcombine.low %v3427_v40, %v3430_v49  ;;  %v6592_v57 = vld [vmem:[%s8496_s24 + $0x44] sm:$0x1]  ;;  %v3447_v8 = vrot.slane %v6594_v5, 5  ;;  %v6601_v29 = vld [vmem:[%s8496_s24 + $0x68] sm:$0x1] }
  0x48   : > { %7581 = vmatprep.subr.bf16.mxu0 %v8135_v50  ;;  %v6561_v24 = vcombine.low %v2723_v14, %v2733_v19  ;;  %v3443_v61 = vrot.slane %v6592_v57, 5  ;;  %v6632_v19 = vrot.slane %v6596_v16, 9  ;;  %v6633_v30 = vrot.slane %v6599_v27, 9  ;;  %v8152_v31 = vld [vmem:[%s9705_s1 + $0x198] sm:$0xff]   ;;  %v620_v40 = vld [vmem:[%s8496_s24 + $0x4] sm:$0xf] }
  0x49   : > { %7358 = vmatmul.mubr.bf16.gmra.mrb[12].mxu1 %v8133_v39  ;;  %v8143_v39 = vld [vmem:[%s9705_s1 + $0x68] sm:$0xff]   ;;  %v3449_v14 = vrot.slane %v3447_v8, 4  ;;  %v3448_v22 = vsel %vm8619_vm5, %v6631_v7, %v3447_v8  ;;  %v3464_v36 = vrot.slane %v6601_v29, 5  ;;  %v684_v49 = vshrl.u32 %v620_v40, 16  ;;  %v623_v5 = vld [vmem:[%s8496_s24 + $0x10] sm:$0xf] }
  0x4a   : > { %7361 = vmatprep.mubr.bf16.mxu1 %v8137_v63  ;;  %7387 = vmatprep.subr.bf16.mxu1 %v8143_v39  ;;  %v3437_v63 = vsel %vm8619_vm5, %v3435_v53, %v3436_v51  ;;  %v621_v41 = vld [vmem:[%s8496_s24 + $0x8] sm:$0x1]  ;;  %v6602_v46 = vld [vmem:[%s8496_s24 + $0x6c] sm:$0xe]  ;;  %v6603_v51 = vld [vmem:[%s8496_s24 + $0x70] sm:$0xf] }
  0x4b   : > { %7582 = vmatpush3.bf16.msra.mxu0 %v8135_v50  ;;  %v6629_v50 = vrot.slane %v6587_v43, 9  ;;  %7388 = vmatpush3.bf16.msra.mxu1 %v8143_v39  ;;  %v619_v39 = vld [vmem:[%s8496_s24] sm:$0xf]  ;;  %v3468_v57 = vrot.slane %v6603_v51, 5  ;;  %v624_v6 = vld [vmem:[%s8496_s24 + $0x14] sm:$0x1] }
  0x4c   : > { %7583 = vmatprep.subr.bf16.mxu0 %v8136_v60  ;;  %7550 = vmatmul.mubr.bf16.gmra.mrb[12].mxu0 %v6561_v24  ;;  %v671_v44 = vshrl.u32 %v619_v39, 16  ;;  %v6607_v29 = vld [vmem:[%s8496_s24 + $0x80] sm:$0x1] }
  0x4d   : > { %7585 = vmatprep.mubr.bf16.mxu0 %v6658_v28  ;;  %v3434_v62 = vsel %vm8619_vm5, %v6629_v50, %v3433_v47  ;;  %7389 = vmatprep.subr.bf16.mxu1 %v8147_v59  ;;  %v6600_v28 = vld [vmem:[%s8496_s24 + $0x64] sm:$0xf]  ;;  %v690_v50 = vshll.u32 %v621_v41, 16  ;;  %v626_v41 = vld [vmem:[%s8496_s24 + $0x1c] sm:$0xf] }
  0x4e   : > { %v6661_v9 = vcombine.low %v3434_v62, %v3437_v63  ;;  %v3461_v35 = vrot.slane %v6600_v28, 5  ;;  %v8720_v47 = vld [vmem:[%s9705_s1 + $0x80] sm:$0xff]   ;;  %v622_v63 = vld [vmem:[%s8496_s24 + $0xc] sm:$0xf]  ;;  %v732_v51 = vshrl.u32 %v626_v41, 16 }
  0x4f   : > { %7584 = vmatpush3.bf16.msra.mxu0 %v8136_v60  ;;  %v3440_v60 = vrot.slane %v6591_v56, 5  ;;  %7390 = vmatpush3.bf16.msra.mxu1 %v8147_v59  ;;  %v6604_v56 = vld [vmem:[%s8496_s24 + $0x74] sm:$0x1]  ;;  %v692_v62 = vrot.slane %v690_v50, 5  ;;  %v695_v8 = vshrl.u32 %v622_v63, 16 }
  0x50   : > { %7617 = vmatprep.subr.bf16.mxu0 %v8140_v13  ;;  %7391 = vmatprep.subr.bf16.mxu1 %v8151_v26  ;;  %v3463_v43 = vrot.slane %v3461_v35, 4 }
  0x51   : > { %7362 = vmatmul.mubr.bf16.gmra.mrb[16].mxu1 %v8138_v17  ;;  %v3441_v1 = vsel %vm8619_vm5, %v6630_v58, %v3440_v60  ;;  %v3442_v2 = vrot.slane %v3440_v60, 4  ;;  %v6597_v17 = vld [vmem:[%s8496_s24 + $0x58] sm:$0xf]  ;;  %v8154_v58 = vld [vmem:[%s9705_s1 + $0x1a0] sm:$0xff]   ;;  %v697_v18 = vrot.slane %v695_v8, 4 }
  0x52   : > { %7365 = vmatprep.mubr.bf16.mxu1 %v8141_v23  ;;  %v3454_v20 = vrot.slane %v6597_v17, 5  ;;  %v3451_v23 = vsel %vm8619_vm5, %v3449_v14, %v3450_v11  ;;  %v3465_v53 = vsel %vm8619_vm5, %v3463_v43, %v3464_v36  ;;  %v8156_v11 = vld [vmem:[%s9705_s1 + $0x1a8] sm:$0xff]   ;;  %v708_v14 = vshrl.u32 %v623_v5, 16  ;;  %v625_v36 = vld [vmem:[%s8496_s24 + $0x18] sm:$0xf] }
  0x53   : > { %v3444_v10 = vsel %vm8619_vm5, %v3442_v2, %v3443_v61  ;;  %v6663_v37 = vcombine.low %v3448_v22, %v3451_v23  ;;  %7392 = vmatpush3.bf16.msra.mxu1 %v8151_v26  ;;  %v686_v61 = vrot.slane %v684_v49, 4  ;;  %v3470_v2 = vrot.slane %v3468_v57, 4  ;;  %v6606_v26 = vld [vmem:[%s8496_s24 + $0x7c] sm:$0xf] }
  0x54   : > { %7586 = vmatmul.mubr.bf16.vlgmr.msra.gmra.mrb[0].mxu0 %v6659_v45  ;;  %v3455_v24 = vsel %vm8619_vm5, %v6632_v19, %v3454_v20  ;;  %v3456_v25 = vrot.slane %v3454_v20, 4  ;;  %v674_v45 = vshll.u32 %v619_v39, 16  ;;  %7425 = vmatprep.subr.bf16.mxu1 %v8720_v47  ;;  %v6605_v20 = vld [vmem:[%s8496_s24 + $0x78] sm:$0xe] }
  0x55   : > { %7618 = vmatpush3.bf16.msra.mxu0 %v8140_v13  ;;  %7589 = vmatprep.mubr.bf16.mxu0 %v6660_v52  ;;  %v6662_v13 = vcombine.low %v3441_v1, %v3444_v10  ;;  %v6634_v52 = vrot.slane %v6602_v46, 9  ;;  %v704_v10 = vshll.u32 %v623_v5, 16  ;;  %v728_v46 = vshll.u32 %v626_v41, 16 }
  0x56   : > { %7619 = vmatprep.subr.bf16.mxu0 %v8144_v48  ;;  %v3458_v32 = vsel %vm8619_vm5, %v3456_v25, %v3457_v21  ;;  %v676_v55 = vrot.slane %v674_v45, 5  ;;  %v8158_v21 = vld [vmem:[%s9705_s1 + $0x1b0] sm:$0xff]   ;;  %v722_v45 = vshll.u32 %v625_v36, 16 }
  0x57   : > { %v6664_v38 = vcombine.low %v3455_v24, %v3458_v32  ;;  %v3469_v1 = vsel %vm8619_vm5, %v6634_v52, %v3468_v57  ;;  %v706_v23 = vrot.slane %v704_v10, 5  ;;  %v710_v24 = vrot.slane %v708_v14, 4 }
  0x59   : > { %7366 = vmatmul.mubr.bf16.gmra.mrb[20].mxu1 %v8142_v42  ;;  %7620 = vmatpush3.bf16.msra.mxu0 %v8144_v48  ;;  %v8714_v42 = vsel %vm8619_vm5, %v6633_v30, %v3461_v35  ;;  %v680_v48 = vshll.u32 %v620_v40, 16  ;;  %v6635_v30 = vrot.slane %v6605_v20, 9  ;;  %v3478_v35 = vrot.slane %v6607_v29, 5 }
  0x5a   : > { %7369 = vmatprep.mubr.bf16.mxu1 %v8145_v54  ;;  %7621 = vmatprep.subr.bf16.mxu0 %v8148_v12  ;;  %v673_v54 = vrot.slane %v671_v44, 4  ;;  %v6665_v59 = vcombine.low %v8714_v42, %v3465_v53  ;;  %v627_v42 = vld [vmem:[%s8496_s24 + $0x20] sm:$0x1]  ;;  %v719_v44 = vshrl.u32 %v625_v36, 16  ;;  %v6609_v53 = vld [vmem:[%s8496_s24 + $0x88] sm:$0xf] }
  0x5b   : > { %v682_v60 = vrot.slane %v680_v48, 5  ;;  %v6608_v48 = vld [vmem:[%s8496_s24 + $0x84] sm:$0xe]  ;;  %v738_v52 = vshll.u32 %v627_v42, 16 }
  0x5c   : > { %7590 = vmatmul.mubr.bf16.gmra.mrb[4].mxu0 %v6661_v9  ;;  %v677_v0 = vor.u32 %v676_v55, %v673_v54  ;;  %v698_v9 = vshll.u32 %v622_v63, 16  ;;  %v6610_v54 = vld [vmem:[%s8496_s24 + $0x8c] sm:$0x1]  ;;  %v721_v57 = vrot.slane %v719_v44, 4  ;;  %v734_v63 = vrot.slane %v732_v51, 4 }
  0x5d   : > { %7593 = vmatprep.mubr.bf16.mxu0 %v6662_v13  ;;  %7622 = vmatpush3.bf16.msra.mxu0 %v8148_v12  ;;  %v687_v7 = vor.u32 %v686_v61, %v682_v60  ;;  %v6636_v5 = vrot.slane %v6608_v48, 9  ;;  %v6615_v51 = vld [vmem:[%s8496_s24 + $0xa0] sm:$0xf] }
  0x5e   : > { %7623 = vmatprep.subr.bf16.mxu0 %v8152_v31  ;;  %v678_v12 = vrot.slane %v677_v0, 4  ;;  %v700_v19 = vrot.slane %v698_v9, 5  ;;  %v740_v0 = vrot.slane %v738_v52, 5 }
  0x5f   : > { %v688_v16 = vrot.slane %v687_v7, 4  ;;  %v3485_v7 = vrot.slane %v6610_v54, 5 }
  0x60   : > { %v683_v22 = vsel %vm8519_vm2, %v678_v12, %v682_v60  ;;  %v701_v28 = vor.u32 %v700_v19, %v697_v18  ;;  %v629_v60 = vld [vmem:[%s8496_s24 + $0x28] sm:$0xf]  ;;  %v8157_v12 = vld [vmem:[%s9705_s1 + $0x90] sm:$0xff]   ;;  %v8784_v18 = vld [vmem:[%s9705_s1 + $0x1c0] sm:$0xff]  }
  0x61   : > { %7370 = vmatmul.mubr.bf16.gmra.mrb[24].mxu1 %v8146_v3  ;;  %7624 = vmatpush3.bf16.msra.mxu0 %v8152_v31  ;;  %v3471_v3 = vrot.slane %v6604_v56, 5  ;;  %v693_v27 = vsel %vm8519_vm2, %v688_v16, %v692_v62  ;;  %v3475_v31 = vrot.slane %v6606_v26, 5  ;;  %v730_v62 = vrot.slane %v728_v46, 5 }
  0x62   : > { %7373 = vmatprep.mubr.bf16.mxu1 %v8149_v15  ;;  %7625 = vmatprep.subr.bf16.mxu0 %v8154_v58  ;;  %v714_v15 = vshll.u32 %v624_v6, 16  ;;  %v6338_v32 = vcombine.low %v683_v22, %v693_v27  ;;  %v3482_v6 = vrot.slane %v6609_v53, 5  ;;  %v756_v16 = vshrl.u32 %v629_v60, 16  ;;  %v6613_v27 = vld [vmem:[%s8496_s24 + $0x98] sm:$0x1] }
  0x63   : > { %v3472_v13 = vsel %vm8619_vm5, %v3470_v2, %v3471_v3  ;;  %v3476_v39 = vsel %vm8619_vm5, %v6635_v30, %v3475_v31  ;;  %v3477_v40 = vrot.slane %v3475_v31, 4  ;;  %v8155_v2 = vld [vmem:[%s9705_s1 + $0x88] sm:$0xff]   ;;  %v735_v8 = vor.u32 %v734_v63, %v730_v62 }
  0x64   : > { %7594 = vmatmul.mubr.bf16.gmra.mrb[8].mxu0 %v6663_v37  ;;  %v6666_v17 = vcombine.low %v3469_v1, %v3472_v13  ;;  %v716_v25 = vrot.slane %v714_v15, 5  ;;  %v8160_v37 = vld [vmem:[%s9705_s1 + $0x1b8] sm:$0xff]   ;;  %v630_v1 = vld [vmem:[%s8496_s24 + $0x2c] sm:$0x1]  ;;  %v3483_v14 = vsel %vm8619_vm5, %v6636_v5, %v3482_v6  ;;  %v3484_v15 = vrot.slane %v3482_v6, 4  ;;  %v8162_v5 = vld [vmem:[%s9705_s1 + $0xa0] sm:$0xff]  }
  0x65   : > { %7597 = vmatprep.mubr.bf16.mxu0 %v6664_v38  ;;  %7626 = vmatpush3.bf16.msra.mxu0 %v8154_v58  ;;  %v702_v38 = vrot.slane %v701_v28, 4  ;;  %v3479_v50 = vsel %vm8619_vm5, %v3477_v40, %v3478_v35  ;;  %v724_v58 = vrot.slane %v722_v45, 5  ;;  %v736_v19 = vrot.slane %v735_v8, 4  ;;  %v633_v40 = vld [vmem:[%s8496_s24 + $0x38] sm:$0x1] }
  0x66   : > { %7627 = vmatprep.subr.bf16.mxu0 %v8156_v11  ;;  %v6667_v56 = vcombine.low %v3476_v39, %v3479_v50  ;;  %v762_v26 = vshll.u32 %v630_v1, 16  ;;  %v632_v39 = vld [vmem:[%s8496_s24 + $0x34] sm:$0xf]  ;;  %v3492_v42 = vrot.slane %v6613_v27, 5  ;;  %v6614_v45 = vld [vmem:[%s8496_s24 + $0x9c] sm:$0xe] }
  0x67   : > { %v707_v49 = vsel %vm8519_vm2, %v702_v38, %v706_v23  ;;  %v725_v3 = vor.u32 %v724_v58, %v721_v57  ;;  %v741_v28 = vsel %vm8519_vm2, %v736_v19, %v740_v0  ;;  %v776_v50 = vshll.u32 %v632_v39, 16 }
  0x68   : > { %v3496_v8 = vrot.slane %v6615_v51, 5 }
  0x69   : > { %7374 = vmatmul.mubr.bf16.gmra.mrb[28].mxu1 %v8150_v34  ;;  %v711_v34 = vor.u32 %v710_v24, %v706_v23  ;;  %7628 = vmatpush3.bf16.msra.mxu0 %v8156_v11  ;;  %v752_v11 = vshll.u32 %v629_v60, 16  ;;  %v726_v13 = vrot.slane %v725_v3, 4  ;;  %v3486_v24 = vsel %vm8619_vm5, %v3484_v15, %v3485_v7  ;;  %v636_v3 = vld [vmem:[%s8496_s24 + $0x44] sm:$0x1] }
  0x6a   : > { %7629 = vmatprep.subr.bf16.mxu0 %v8158_v21  ;;  %7393 = vmatprep.mubr.bf16.mxu1 %v6338_v32  ;;  %v6668_v29 = vcombine.low %v3483_v14, %v3486_v24  ;;  %v631_v32 = vld [vmem:[%s8496_s24 + $0x30] sm:$0xf]  ;;  %v786_v60 = vshll.u32 %v633_v40, 16  ;;  %v6638_v7 = vrot.slane %v6614_v45, 9  ;;  %v6617_v14 = vld [vmem:[%s8496_s24 + $0xa8] sm:$0xe] }
  0x6b   : > { %v712_v43 = vrot.slane %v711_v34, 4  ;;  %v754_v22 = vrot.slane %v752_v11, 5  ;;  %v731_v23 = vsel %vm8519_vm2, %v726_v13, %v730_v62  ;;  %v8159_v34 = vld [vmem:[%s9705_s1 + $0x98] sm:$0xff]   ;;  %v770_v44 = vshll.u32 %v631_v32, 16  ;;  %v635_v62 = vld [vmem:[%s8496_s24 + $0x40] sm:$0xf] }
  0x6c   : > { %7598 = vmatmul.mubr.bf16.gmra.mrb[12].mxu0 %v6665_v59  ;;  %v628_v59 = vld [vmem:[%s8496_s24 + $0x24] sm:$0xf]  ;;  %v6340_v35 = vcombine.low %v731_v23, %v741_v28  ;;  %v788_v6 = vrot.slane %v786_v60, 5  ;;  %v3497_v15 = vsel %vm8619_vm5, %v6638_v7, %v3496_v8  ;;  %v804_v19 = vshrl.u32 %v635_v62, 16  ;;  %v6619_v24 = vld [vmem:[%s8496_s24 + $0xb0] sm:$0x1] }
  0x6d   : > { %7601 = vmatprep.mubr.bf16.mxu0 %v6666_v17  ;;  %v717_v55 = vsel %vm8519_vm2, %v712_v43, %v716_v25  ;;  %7630 = vmatpush3.bf16.msra.mxu0 %v8158_v21  ;;  %v743_v9 = vshrl.u32 %v628_v59, 16  ;;  %v746_v10 = vshll.u32 %v628_v59, 16  ;;  %v6611_v17 = vld [vmem:[%s8496_s24 + $0x90] sm:$0xe]  ;;  %v758_v25 = vrot.slane %v756_v16, 4  ;;  %v8174_v7 = vld [vmem:[%s9705_s1 + $0xb8] sm:$0xff]  }
  0x6e   : > { %v6339_v61 = vcombine.low %v707_v49, %v717_v55  ;;  %7631 = vmatprep.subr.bf16.mxu0 %v8160_v37  ;;  %v6637_v31 = vrot.slane %v6611_v17, 9  ;;  %v767_v43 = vshrl.u32 %v631_v32, 16  ;;  %v772_v54 = vrot.slane %v770_v44, 5 }
  0x6f   : > { %v745_v20 = vrot.slane %v743_v9, 4  ;;  %v748_v21 = vrot.slane %v746_v10, 5  ;;  %v759_v36 = vor.u32 %v758_v25, %v754_v22  ;;  %v780_v55 = vshrl.u32 %v632_v39, 16  ;;  %v8166_v25 = vld [vmem:[%s9705_s1 + $0xa8] sm:$0xff]  }
  0x70   : > { %v769_v53 = vrot.slane %v767_v43, 4  ;;  %v778_v59 = vrot.slane %v776_v50, 5  ;;  %v3498_v16 = vrot.slane %v3496_v8, 4  ;;  %v800_v17 = vshll.u32 %v635_v62, 16 }
  0x71   : > { %7394 = vmatmul.mubr.bf16.vlgmr.msra.gmra.mrb[0].mxu1 %v6339_v61  ;;  %7632 = vmatpush3.bf16.msra.mxu0 %v8160_v37  ;;  %v749_v30 = vor.u32 %v748_v21, %v745_v20  ;;  %v764_v37 = vrot.slane %v762_v26, 5  ;;  %v760_v46 = vrot.slane %v759_v36, 4  ;;  %v634_v61 = vld [vmem:[%s8496_s24 + $0x3c] sm:$0xf]  ;;  %v6618_v20 = vld [vmem:[%s8496_s24 + $0xac] sm:$0xf] }
  0x72   : > { %7426 = vmatpush3.bf16.msra.mxu1 %v8720_v47  ;;  %v6612_v47 = vld [vmem:[%s8496_s24 + $0x94] sm:$0xf]  ;;  %7665 = vmatprep.subr.bf16.mxu0 %v8784_v18  ;;  %v773_v1 = vor.u32 %v772_v54, %v769_v53  ;;  %v794_v13 = vshll.u32 %v634_v61, 16  ;;  %v802_v27 = vrot.slane %v800_v17, 5  ;;  %v806_v28 = vrot.slane %v804_v19, 4 }
  0x73   : > { %7427 = vmatprep.subr.bf16.mxu1 %v8155_v2  ;;  %v3489_v38 = vrot.slane %v6612_v47, 5  ;;  %v750_v41 = vrot.slane %v749_v30, 4  ;;  %7397 = vmatprep.mubr.bf16.mxu1 %v6340_v35  ;;  %v765_v57 = vsel %vm8519_vm2, %v760_v46, %v764_v37  ;;  %v637_v35 = vld [vmem:[%s8496_s24 + $0x48] sm:$0xf]  ;;  %v8170_v36 = vld [vmem:[%s9705_s1 + $0xb0] sm:$0xff]   ;;  %v3503_v40 = vrot.slane %v6618_v20, 5 }
  0x74   : > { %7602 = vmatmul.mubr.bf16.gmra.mrb[16].mxu0 %v6667_v56  ;;  %v6616_v56 = vld [vmem:[%s8496_s24 + $0xa4] sm:$0x1]  ;;  %v774_v10 = vrot.slane %v773_v1, 4  ;;  %v796_v23 = vrot.slane %v794_v13, 5  ;;  %v3506_v44 = vrot.slane %v6619_v24, 5  ;;  %v815_v45 = vshrl.u32 %v637_v35, 16 }
  0x75   : > { %7605 = vmatprep.mubr.bf16.mxu0 %v6668_v29  ;;  %v3490_v48 = vsel %vm8619_vm5, %v6637_v31, %v3489_v38  ;;  %v3491_v49 = vrot.slane %v3489_v38, 4  ;;  %v755_v52 = vsel %vm8519_vm2, %v750_v41, %v754_v22  ;;  %v3499_v9 = vrot.slane %v6616_v56, 5  ;;  %v638_v41 = vld [vmem:[%s8496_s24 + $0x4c] sm:$0xf]  ;;  %v6621_v53 = vld [vmem:[%s8496_s24 + $0xb8] sm:$0xf] }
  0x76   : > { %7428 = vmatpush3.bf16.msra.mxu1 %v8155_v2  ;;  %v6341_v63 = vcombine.low %v755_v52, %v765_v57  ;;  %v782_v2 = vrot.slane %v780_v55, 4  ;;  %v779_v21 = vsel %vm8519_vm2, %v774_v10, %v778_v59  ;;  %v810_v29 = vshll.u32 %v636_v3, 16 }
  0x77   : > { %7429 = vmatprep.subr.bf16.mxu1 %v8157_v12  ;;  %v3493_v58 = vsel %vm8619_vm5, %v3491_v49, %v3492_v42  ;;  %v3500_v26 = vsel %vm8619_vm5, %v3498_v16, %v3499_v9  ;;  %v807_v38 = vor.u32 %v806_v28, %v802_v27  ;;  %v639_v42 = vld [vmem:[%s8496_s24 + $0x50] sm:$0x1]  ;;  %v818_v46 = vshll.u32 %v637_v35, 16  ;;  %v6623_v16 = vld [vmem:[%s8496_s24 + $0xc0] sm:$0xe] }
  0x78   : > { %v6669_v0 = vcombine.low %v3490_v48, %v3493_v58  ;;  %v783_v11 = vor.u32 %v782_v2, %v778_v59  ;;  %v6670_v31 = vcombine.low %v3497_v15, %v3500_v26  ;;  %v812_v39 = vrot.slane %v810_v29, 5  ;;  %v6620_v48 = vld [vmem:[%s8496_s24 + $0xb4] sm:$0xe]  ;;  %v6622_v58 = vld [vmem:[%s8496_s24 + $0xbc] sm:$0x1] }
  0x79   : > { %7398 = vmatmul.mubr.bf16.gmra.mrb[4].mxu1 %v6341_v63  ;;  %v808_v49 = vrot.slane %v807_v38, 4  ;;  %v3505_v51 = vrot.slane %v3503_v40, 4  ;;  %v824_v52 = vshll.u32 %v638_v41, 16  ;;  %v817_v55 = vrot.slane %v815_v45, 4  ;;  %v640_v63 = vld [vmem:[%s8496_s24 + $0x54] sm:$0xf] }
  0x7a   : > { %7430 = vmatpush3.bf16.msra.mxu1 %v8157_v12  ;;  %v791_v12 = vshrl.u32 %v634_v61, 16  ;;  %v784_v22 = vrot.slane %v783_v11, 4  ;;  %v820_v56 = vrot.slane %v818_v46, 5  ;;  %v828_v57 = vshrl.u32 %v638_v41, 16  ;;  %v6625_v26 = vld [vmem:[%s8496_s24 + $0xc8] sm:$0x1] }
  0x7b   : > { %7431 = vmatprep.subr.bf16.mxu1 %v8159_v34  ;;  %v813_v59 = vsel %vm8519_vm2, %v808_v49, %v812_v39  ;;  %v3507_v60 = vsel %vm8619_vm5, %v3505_v51, %v3506_v44  ;;  %v826_v61 = vrot.slane %v824_v52, 5  ;;  %v834_v62 = vshll.u32 %v639_v42, 16  ;;  %v644_v42 = vld [vmem:[%s8496_s24 + $0x64] sm:$0xf] }
  0x7c   : > { %7606 = vmatmul.mubr.bf16.gmra.mrb[20].mxu0 %v6669_v0  ;;  %v793_v47 = vrot.slane %v791_v12, 4  ;;  %v789_v30 = vsel %vm8519_vm2, %v784_v22, %v788_v6  ;;  %v641_v0 = vld [vmem:[%s8496_s24 + $0x58] sm:$0xf]  ;;  %v821_v3 = vor.u32 %v820_v56, %v817_v55  ;;  %v642_v6 = vld [vmem:[%s8496_s24 + $0x5c] sm:$0x1]  ;;  %v6640_v9 = vrot.slane %v6620_v48, 9 }
  0x7d   : > { %v6342_v37 = vcombine.low %v779_v21, %v789_v30  ;;  %7609 = vmatprep.mubr.bf16.mxu0 %v6670_v31  ;;  %v836_v8 = vrot.slane %v834_v62, 5  ;;  %v3510_v10 = vrot.slane %v6621_v53, 5  ;;  %v3513_v11 = vrot.slane %v6622_v58, 5  ;;  %v6624_v22 = vld [vmem:[%s8496_s24 + $0xc4] sm:$0xf] }
  0x7e   : > { %7432 = vmatpush3.bf16.msra.mxu1 %v8159_v34  ;;  %v797_v32 = vor.u32 %v796_v23, %v793_v47  ;;  %v6639_v34 = vrot.slane %v6617_v14, 9  ;;  %v822_v12 = vrot.slane %v821_v3, 4  ;;  %v839_v14 = vshrl.u32 %v640_v63, 16  ;;  %v646_v58 = vld [vmem:[%s8496_s24 + $0x6c] sm:$0xf] }
  0x7f   : > { %7433 = vmatprep.subr.bf16.mxu1 %v8162_v5  ;;  %7401 = vmatprep.mubr.bf16.mxu1 %v6342_v37  ;;  %v842_v15 = vshll.u32 %v640_v63, 16  ;;  %v3511_v17 = vsel %vm8619_vm5, %v6640_v9, %v3510_v10  ;;  %v3512_v19 = vrot.slane %v3510_v10, 4  ;;  %v848_v20 = vshll.u32 %v641_v0, 16  ;;  %v643_v37 = vld [vmem:[%s8496_s24 + $0x60] sm:$0xf] }
  0x80   : > { %v798_v43 = vrot.slane %v797_v32, 4  ;;  %v3504_v50 = vsel %vm8619_vm5, %v6639_v34, %v3503_v40  ;;  %v852_v21 = vshrl.u32 %v641_v0, 16  ;;  %v827_v47 = vsel %vm8519_vm2, %v822_v12, %v826_v61  ;;  %v647_v63 = vld [vmem:[%s8496_s24 + $0x70] sm:$0xf]  ;;  %v648_v0 = vld [vmem:[%s8496_s24 + $0x74] sm:$0x1] }
  0x81   : > { %v6671_v2 = vcombine.low %v3504_v50, %v3507_v60  ;;  %v841_v24 = vrot.slane %v839_v14, 4  ;;  %v3514_v28 = vsel %vm8619_vm5, %v3512_v19, %v3513_v11  ;;  %v850_v29 = vrot.slane %v848_v20, 5 }
  0x82   : > { %7434 = vmatpush3.bf16.msra.mxu1 %v8162_v5  ;;  %v803_v54 = vsel %vm8519_vm2, %v798_v43, %v802_v27  ;;  %v830_v5 = vrot.slane %v828_v57, 4  ;;  %v8865_v27 = vld [vmem:[%s9705_s1 + $0xc0] sm:$0xff]   ;;  %v854_v30 = vrot.slane %v852_v21, 4  ;;  %v858_v31 = vshll.u32 %v642_v6, 16  ;;  %v645_v43 = vld [vmem:[%s8496_s24 + $0x68] sm:$0x1] }
  0x83   : > { %7435 = vmatprep.subr.bf16.mxu1 %v8166_v25  ;;  %v6343_v1 = vcombine.low %v803_v54, %v813_v59  ;;  %v6672_v34 = vcombine.low %v3511_v17, %v3514_v28  ;;  %v3517_v41 = vrot.slane %v6624_v22, 5  ;;  %v3520_v45 = vrot.slane %v6625_v26, 5  ;;  %v8161_v57 = vld [vmem:[%s8496_s24 + $0x18] sm:$0xff]   ;;  %v8163_v22 = vld [vmem:[%s8496_s24 + $0x24] sm:$0xff]   ;;  %v8165_v26 = vld [vmem:[%s8496_s24 + $0x30] sm:$0xff]  }
  0x84   : > { %7610 = vmatmul.mubr.bf16.gmra.mrb[24].mxu0 %v6671_v2  ;;  %v831_v13 = vor.u32 %v830_v5, %v826_v61  ;;  %v855_v39 = vor.u32 %v854_v30, %v850_v29  ;;  %v860_v40 = vrot.slane %v858_v31, 5  ;;  %v863_v46 = vshrl.u32 %v643_v37, 16 }
  0x85   : > { %7402 = vmatmul.mubr.bf16.gmra.mrb[8].mxu1 %v6343_v1  ;;  %7613 = vmatprep.mubr.bf16.mxu0 %v6672_v34  ;;  %v866_v48 = vshll.u32 %v643_v37, 16  ;;  %v3519_v51 = vrot.slane %v3517_v41, 4  ;;  %v872_v52 = vshll.u32 %v644_v42, 16  ;;  %v876_v56 = vshrl.u32 %v644_v42, 16  ;;  %v652_v37 = vld [vmem:[%s8496_s24 + $0x84] sm:$0xf] }
  0x86   : > { %7436 = vmatpush3.bf16.msra.mxu1 %v8166_v25  ;;  %v832_v23 = vrot.slane %v831_v13, 4  ;;  %v844_v25 = vrot.slane %v842_v15, 5  ;;  %v856_v49 = vrot.slane %v855_v39, 4  ;;  %v865_v54 = vrot.slane %v863_v46, 4 }
  0x87   : > { %7437 = vmatprep.subr.bf16.mxu1 %v8170_v36  ;;  %v868_v55 = vrot.slane %v866_v48, 5  ;;  %v3521_v60 = vsel %vm8619_vm5, %v3519_v51, %v3520_v45  ;;  %v874_v61 = vrot.slane %v872_v52, 5  ;;  %v882_v62 = vshll.u32 %v645_v43, 16  ;;  %v653_v43 = vld [vmem:[%s8496_s24 + $0x88] sm:$0xf] }
  0x88   : > { %v837_v32 = vsel %vm8519_vm2, %v832_v23, %v836_v8  ;;  %v845_v35 = vor.u32 %v844_v25, %v841_v24  ;;  %v861_v59 = vsel %vm8519_vm2, %v856_v49, %v860_v40  ;;  %v878_v5 = vrot.slane %v876_v56, 4  ;;  %v649_v23 = vld [vmem:[%s8496_s24 + $0x78] sm:$0xf]  ;;  %v650_v24 = vld [vmem:[%s8496_s24 + $0x7c] sm:$0xf] }
  0x89   : > { %v6344_v38 = vcombine.low %v827_v47, %v837_v32  ;;  %v869_v3 = vor.u32 %v868_v55, %v865_v54  ;;  %v884_v6 = vrot.slane %v882_v62, 5  ;;  %v890_v8 = vshll.u32 %v646_v58, 16  ;;  %v651_v25 = vld [vmem:[%s8496_s24 + $0x80] sm:$0x1]  ;;  %v654_v48 = vld [vmem:[%s8496_s24 + $0x8c] sm:$0x1] }
  0x8a   : > { %7438 = vmatpush3.bf16.msra.mxu1 %v8170_v36  ;;  %v6641_v36 = vrot.slane %v6623_v16, 9  ;;  %v846_v44 = vrot.slane %v845_v35, 4  ;;  %v896_v9 = vshll.u32 %v647_v63, 16  ;;  %v879_v11 = vor.u32 %v878_v5, %v874_v61  ;;  %v8172_v54 = vld [vmem:[%s9705_s1 + $0x1d0] sm:$0xff]  }
  0x8b   : > { %7439 = vmatprep.subr.bf16.mxu1 %v8174_v7  ;;  %7405 = vmatprep.mubr.bf16.mxu1 %v6344_v38  ;;  %v870_v10 = vrot.slane %v869_v3, 4  ;;  %v900_v12 = vshrl.u32 %v647_v63, 16  ;;  %v906_v13 = vshll.u32 %v648_v0, 16  ;;  %v892_v15 = vrot.slane %v890_v8, 5  ;;  %v8168_v38 = vld [vmem:[%s9705_s1 + $0x1c8] sm:$0xff]   ;;  %v8167_v63 = vld [vmem:[%s8496_s24 + $0x3c] sm:$0xff]  }
  0x8c   : > { %v3518_v50 = vsel %vm8619_vm5, %v6641_v36, %v3517_v41  ;;  %v851_v53 = vsel %vm8519_vm2, %v846_v44, %v850_v29  ;;  %v898_v16 = vrot.slane %v896_v9, 5  ;;  %v880_v19 = vrot.slane %v879_v11, 4  ;;  %v8169_v3 = vld [vmem:[%s8496_s24 + $0x48] sm:$0xff]   ;;  %v656_v8 = vld [vmem:[%s8496_s24 + $0x94] sm:$0xf] }
  0x8d   : > { %v6345_v1 = vcombine.low %v851_v53, %v861_v59  ;;  %v6673_v2 = vcombine.low %v3518_v50, %v3521_v60  ;;  %v875_v17 = vsel %vm8519_vm2, %v870_v10, %v874_v61  ;;  %v902_v20 = vrot.slane %v900_v12, 4  ;;  %v657_v9 = vld [vmem:[%s8496_s24 + $0x98] sm:$0x1] }
  0x8e   : > { %7440 = vmatpush3.bf16.msra.mxu1 %v8174_v7  ;;  %v887_v7 = vshrl.u32 %v646_v58, 16  ;;  %v908_v21 = vrot.slane %v906_v13, 5  ;;  %v885_v28 = vsel %vm8519_vm2, %v880_v19, %v884_v6  ;;  %v911_v30 = vshrl.u32 %v649_v23, 16 }
  0x8f   : > { %7473 = vmatprep.subr.bf16.mxu1 %v8865_v27  ;;  %7406 = vmatmul.mubr.bf16.gmra.mrb[12].mxu1 %v6345_v1  ;;  %v903_v29 = vor.u32 %v902_v20, %v898_v16  ;;  %v914_v31 = vshll.u32 %v649_v23, 16  ;;  %v6346_v32 = vcombine.low %v875_v17, %v885_v28  ;;  %v920_v35 = vshll.u32 %v650_v24, 16  ;;  %v658_v20 = vld [vmem:[%s8496_s24 + $0x9c] sm:$0xf] }
  0x90   : > { %7614 = vmatmul.mubr.bf16.gmra.mrb[28].mxu0 %v6673_v2  ;;  %v889_v14 = vrot.slane %v887_v7, 4  ;;  %v924_v36 = vshrl.u32 %v650_v24, 16  ;;  %v913_v40 = vrot.slane %v911_v30, 4  ;;  %v930_v42 = vshll.u32 %v651_v25, 16  ;;  %v655_v2 = vld [vmem:[%s8496_s24 + $0x90] sm:$0xf] }
  0x91   : > { %7633 = vmatprep.mubr.bf16.mxu0 %v8161_v57  ;;  %v904_v39 = vrot.slane %v903_v29, 4  ;;  %v916_v41 = vrot.slane %v914_v31, 5  ;;  %7409 = vmatprep.mubr.bf16.mxu1 %v6346_v32  ;;  %v922_v45 = vrot.slane %v920_v35, 5  ;;  %v935_v49 = vshrl.u32 %v652_v37, 16  ;;  %v659_v24 = vld [vmem:[%s8496_s24 + $0xa0] sm:$0xf] }
  0x92   : > { %v893_v47 = vor.u32 %v892_v15, %v889_v14  ;;  %v926_v46 = vrot.slane %v924_v36, 4  ;;  %v932_v52 = vrot.slane %v930_v42, 5  ;;  %v938_v53 = vshll.u32 %v652_v37, 16  ;;  %v8176_v14 = vld [vmem:[%s9705_s1 + $0x1d8] sm:$0xff]   ;;  %v660_v29 = vld [vmem:[%s8496_s24 + $0xa4] sm:$0x1] }
  0x93   : > { %v909_v50 = vsel %vm8519_vm2, %v904_v39, %v908_v21  ;;  %v917_v51 = vor.u32 %v916_v41, %v913_v40  ;;  %v937_v57 = vrot.slane %v935_v49, 4  ;;  %v944_v58 = vshll.u32 %v653_v43, 16  ;;  %v8180_v36 = vld [vmem:[%s9705_s1 + $0x1e0] sm:$0xff]  }
  0x94   : > { %v894_v34 = vrot.slane %v893_v47, 4  ;;  %v927_v56 = vor.u32 %v926_v46, %v922_v45  ;;  %v940_v60 = vrot.slane %v938_v53, 5  ;;  %v948_v61 = vshrl.u32 %v653_v43, 16  ;;  %v661_v53 = vld [vmem:[%s8496_s24 + $0xa8] sm:$0xf] }
  0x95   : > { %v918_v59 = vrot.slane %v917_v51, 4  ;;  %v954_v62 = vshll.u32 %v654_v48, 16  ;;  %v946_v1 = vrot.slane %v944_v58, 5  ;;  %v959_v11 = vshrl.u32 %v655_v2, 16  ;;  %v663_v58 = vld [vmem:[%s8496_s24 + $0xb0] sm:$0x1] }
  0x96   : > { %v899_v44 = vsel %vm8519_vm2, %v894_v34, %v898_v16  ;;  %v928_v0 = vrot.slane %v927_v56, 4  ;;  %v941_v5 = vor.u32 %v940_v60, %v937_v57  ;;  %v950_v6 = vrot.slane %v948_v61, 4 }
  0x97   : > { %v6347_v55 = vcombine.low %v899_v44, %v909_v50  ;;  %v956_v7 = vrot.slane %v954_v62, 5  ;;  %v962_v12 = vshll.u32 %v655_v2, 16  ;;  %v968_v13 = vshll.u32 %v656_v8, 16  ;;  %v8173_v50 = vld [vmem:[%s8496_s24 + $0x60] sm:$0xff]  }
  0x98   : > { %7634 = vmatmul.mubr.bf16.vlgmr.msra.gmra.mrb[0].mxu0 %v8163_v22  ;;  %v933_v10 = vsel %vm8519_vm2, %v928_v0, %v932_v52  ;;  %v942_v16 = vrot.slane %v941_v5, 4  ;;  %v951_v17 = vor.u32 %v950_v6, %v946_v1  ;;  %v972_v19 = vshrl.u32 %v656_v8, 16  ;;  %v8184_v0 = vld [vmem:[%s9705_s1 + $0x1e8] sm:$0xff]   ;;  %v664_v5 = vld [vmem:[%s8496_s24 + $0xb4] sm:$0xf] }
  0x99   : > { %7666 = vmatpush3.bf16.msra.mxu0 %v8784_v18  ;;  %7637 = vmatprep.mubr.bf16.mxu0 %v8165_v26  ;;  %v923_v18 = vsel %vm8519_vm2, %v918_v59, %v922_v45  ;;  %v961_v21 = vrot.slane %v959_v11, 4  ;;  %v964_v22 = vrot.slane %v962_v12, 5  ;;  %v970_v47 = vrot.slane %v968_v13, 5  ;;  %v8171_v45 = vld [vmem:[%s8496_s24 + $0x54] sm:$0xff]  }
  0x9a   : > { %7667 = vmatprep.subr.bf16.mxu0 %v8168_v38  ;;  %7410 = vmatmul.mubr.bf16.gmra.mrb[16].mxu1 %v6347_v55  ;;  %v6348_v15 = vcombine.low %v923_v18, %v933_v10  ;;  %v978_v23 = vshll.u32 %v657_v9, 16  ;;  %v947_v25 = vsel %vm8519_vm2, %v942_v16, %v946_v1  ;;  %v952_v26 = vrot.slane %v951_v17, 4  ;;  %v665_v9 = vld [vmem:[%s8496_s24 + $0xb8] sm:$0xf]  ;;  %v666_v10 = vld [vmem:[%s8496_s24 + $0xbc] sm:$0x1] }
  0x9b   : > { %v974_v28 = vrot.slane %v972_v19, 4  ;;  %v983_v30 = vshrl.u32 %v658_v20, 16  ;;  %v965_v31 = vor.u32 %v964_v22, %v961_v21  ;;  %v986_v34 = vshll.u32 %v658_v20, 16 }
  0x9c   : > { %7413 = vmatprep.mubr.bf16.mxu1 %v6348_v15  ;;  %v980_v32 = vrot.slane %v978_v23, 5  ;;  %v992_v35 = vshll.u32 %v659_v24, 16  ;;  %v957_v37 = vsel %vm8519_vm2, %v952_v26, %v956_v7  ;;  %v996_v40 = vshrl.u32 %v659_v24, 16  ;;  %v8188_v15 = vld [vmem:[%s9705_s1 + $0x1f0] sm:$0xff]  }
  0x9d   : > { %7668 = vmatpush3.bf16.msra.mxu0 %v8168_v38  ;;  %v975_v38 = vor.u32 %v974_v28, %v970_v47  ;;  %v985_v39 = vrot.slane %v983_v30, 4  ;;  %v6349_v41 = vcombine.low %v947_v25, %v957_v37  ;;  %v966_v42 = vrot.slane %v965_v31, 4  ;;  %v8175_v24 = vld [vmem:[%s8496_s24 + $0x6c] sm:$0xff]   ;;  %v1442_v37 = vld [vmem:[%s8496_s24] sm:$0xe] }
  0x9e   : > { %7669 = vmatprep.subr.bf16.mxu0 %v8172_v54  ;;  %v988_v43 = vrot.slane %v986_v34, 5  ;;  %v994_v44 = vrot.slane %v992_v35, 5  ;;  %v998_v48 = vrot.slane %v996_v40, 4  ;;  %v1002_v49 = vshll.u32 %v660_v29, 16  ;;  %v8177_v29 = vld [vmem:[%s8496_s24 + $0x78] sm:$0xff]  }
  0x9f   : > { %v976_v46 = vrot.slane %v975_v38, 4  ;;  %v971_v51 = vsel %vm8519_vm2, %v966_v42, %v970_v47  ;;  %v1007_v59 = vshrl.u32 %v661_v53, 16  ;;  %v1010_v62 = vshll.u32 %v661_v53, 16  ;;  %v8192_v34 = vld [vmem:[%s9705_s1 + $0x1f8] sm:$0xff]   ;;  %v1443_v38 = vld [vmem:[%s8496_s24 + $0x4] sm:$0xf] }
  0xa0   : > { %7638 = vmatmul.mubr.bf16.gmra.mrb[4].mxu0 %v8167_v63  ;;  %v989_v52 = vor.u32 %v988_v43, %v985_v39  ;;  %v999_v56 = vor.u32 %v998_v48, %v994_v44  ;;  %v1004_v57 = vrot.slane %v1002_v49, 5  ;;  %v1026_v18 = vshll.u32 %v663_v58, 16  ;;  %v1444_v39 = vld [vmem:[%s8496_s24 + $0x8] sm:$0x1]  ;;  %v1445_v48 = vld [vmem:[%s8496_s24 + $0xc] sm:$0xe] }
  0xa1   : > { %7641 = vmatprep.mubr.bf16.mxu0 %v8169_v3  ;;  %7670 = vmatpush3.bf16.msra.mxu0 %v8172_v54  ;;  %v662_v54 = vld [vmem:[%s8496_s24 + $0xac] sm:$0xf]  ;;  %v981_v55 = vsel %vm8519_vm2, %v976_v46, %v980_v32  ;;  %v1009_v2 = vrot.slane %v1007_v59, 4  ;;  %v1012_v7 = vrot.slane %v1010_v62, 5  ;;  %v1034_v19 = vshll.u32 %v664_v5, 16 }
  0xa2   : > { %7671 = vmatprep.subr.bf16.mxu0 %v8176_v14  ;;  %7414 = vmatmul.mubr.bf16.gmra.mrb[20].mxu1 %v6349_v41  ;;  %v6350_v60 = vcombine.low %v971_v51, %v981_v55  ;;  %v990_v61 = vrot.slane %v989_v52, 4  ;;  %v1016_v63 = vshll.u32 %v662_v54, 16  ;;  %v1000_v1 = vrot.slane %v999_v56, 4  ;;  %v1446_v49 = vld [vmem:[%s8496_s24 + $0x10] sm:$0xf]  ;;  %v8179_v55 = vld [vmem:[%s8496_s24 + $0x84] sm:$0xff]  }
  0xa3   : > { %v1020_v3 = vshrl.u32 %v662_v54, 16  ;;  %v1028_v13 = vrot.slane %v1026_v18, 5  ;;  %v1013_v17 = vor.u32 %v1012_v7, %v1009_v2  ;;  %v1040_v20 = vshll.u32 %v665_v9, 16  ;;  %v1447_v53 = vld [vmem:[%s8496_s24 + $0x14] sm:$0x1]  ;;  %v8975_v56 = vld [vmem:[%s9705_s1 + $0x200] sm:$0xff]  }
  0xa4   : > { %7417 = vmatprep.mubr.bf16.mxu1 %v6350_v60  ;;  %v995_v6 = vsel %vm8519_vm2, %v990_v61, %v994_v44  ;;  %v1018_v8 = vrot.slane %v1016_v63, 5  ;;  %v1005_v11 = vsel %vm8519_vm2, %v1000_v1, %v1004_v57  ;;  %v1044_v47 = vshrl.u32 %v665_v9, 16  ;;  %v1448_v1 = vld [vmem:[%s8496_s24 + $0x18] sm:$0xe]  ;;  %v8181_v2 = vld [vmem:[%s8496_s24 + $0x90] sm:$0xff]  }
  0xa5   : > { %7672 = vmatpush3.bf16.msra.mxu0 %v8176_v14  ;;  %v1022_v12 = vrot.slane %v1020_v3, 4  ;;  %v1031_v14 = vshrl.u32 %v664_v5, 16  ;;  %v6351_v16 = vcombine.low %v995_v6, %v1005_v11  ;;  %v1050_v23 = vshll.u32 %v666_v10, 16  ;;  %v1449_v3 = vld [vmem:[%s8496_s24 + $0x1c] sm:$0xf] }
  0xa6   : > { %7673 = vmatprep.subr.bf16.mxu0 %v8180_v36  ;;  %v1014_v25 = vrot.slane %v1013_v17, 4  ;;  %v1036_v26 = vrot.slane %v1034_v19, 5  ;;  %v1042_v28 = vrot.slane %v1040_v20, 5  ;;  %v1046_v31 = vrot.slane %v1044_v47, 4  ;;  %v1450_v18 = vld [vmem:[%s8496_s24 + $0x20] sm:$0x1] }
  0xa7   : > { %v1023_v21 = vor.u32 %v1022_v12, %v1018_v8  ;;  %v1033_v22 = vrot.slane %v1031_v14, 4  ;;  %v1052_v32 = vrot.slane %v1050_v23, 5  ;;  %v6362_v42 = vrot.slane %v1442_v37, 9  ;;  %v1451_v10 = vld [vmem:[%s8496_s24 + $0x24] sm:$0xe]  ;;  %v8183_v47 = vld [vmem:[%s8496_s24 + $0x9c] sm:$0xff]  }
  0xa8   : > { %7642 = vmatmul.mubr.bf16.gmra.mrb[8].mxu0 %v8171_v45  ;;  %v1019_v35 = vsel %vm8519_vm2, %v1014_v25, %v1018_v8  ;;  %v1047_v41 = vor.u32 %v1046_v31, %v1042_v28  ;;  %v1543_v43 = vrot.slane %v1443_v38, 5  ;;  %v1546_v46 = vrot.slane %v1444_v39, 5  ;;  %v1452_v11 = vld [vmem:[%s8496_s24 + $0x28] sm:$0xf]  ;;  %v1453_v12 = vld [vmem:[%s8496_s24 + $0x2c] sm:$0x1] }
  0xa9   : > { %7645 = vmatprep.mubr.bf16.mxu0 %v8173_v50  ;;  %7674 = vmatpush3.bf16.msra.mxu0 %v8180_v36  ;;  %v1024_v30 = vrot.slane %v1023_v21, 4  ;;  %v1037_v36 = vor.u32 %v1036_v26, %v1033_v22  ;;  %v6363_v54 = vrot.slane %v1445_v48, 9  ;;  %v1550_v58 = vrot.slane %v1446_v49, 5  ;;  %v8182_v22 = vld [vmem:[%s9705_s1 + $0xc8] sm:$0xff]   ;;  %v1455_v25 = vld [vmem:[%s8496_s24 + $0x34] sm:$0xf] }
  0xaa   : > { %7675 = vmatprep.subr.bf16.mxu0 %v8184_v0  ;;  %7418 = vmatmul.mubr.bf16.gmra.mrb[24].mxu1 %v6351_v16  ;;  %v1048_v50 = vrot.slane %v1047_v41, 4  ;;  %v1544_v51 = vsel %vm8619_vm5, %v6362_v42, %v1543_v43  ;;  %v1545_v52 = vrot.slane %v1543_v43, 4  ;;  %v1553_v59 = vrot.slane %v1447_v53, 5  ;;  %v1456_v26 = vld [vmem:[%s8496_s24 + $0x38] sm:$0x1]  ;;  %v8185_v31 = vld [vmem:[%s8496_s24 + $0xa8] sm:$0xff]  }
  0xab   : > { %v1029_v40 = vsel %vm8519_vm2, %v1024_v30, %v1028_v13  ;;  %v1038_v45 = vrot.slane %v1037_v36, 4  ;;  %v6364_v5 = vrot.slane %v1448_v1, 9  ;;  %v1557_v6 = vrot.slane %v1449_v3, 5  ;;  %v1459_v36 = vld [vmem:[%s8496_s24 + $0x44] sm:$0x1]  ;;  %v8187_v48 = vld [vmem:[%s8496_s24 + $0xb4] sm:$0xff]  }
  0xac   : > { %v6352_v44 = vcombine.low %v1019_v35, %v1029_v40  ;;  %v1053_v60 = vsel %vm8519_vm2, %v1048_v50, %v1052_v32  ;;  %v1547_v61 = vsel %vm8619_vm5, %v1545_v52, %v1546_v46  ;;  %v1560_v7 = vrot.slane %v1450_v18, 5  ;;  %v1457_v32 = vld [vmem:[%s8496_s24 + $0x3c] sm:$0xe]  ;;  %v1458_v35 = vld [vmem:[%s8496_s24 + $0x40] sm:$0xf]  ;;  %v8186_v40 = vld [vmem:[%s9705_s1 + $0xd0] sm:$0xff]  }
  0xad   : > { %7676 = vmatpush3.bf16.msra.mxu0 %v8184_v0  ;;  %v1043_v57 = vsel %vm8519_vm2, %v1038_v45, %v1042_v28  ;;  %v6394_v63 = vcombine.low %v1544_v51, %v1547_v61  ;;  %v1552_v0 = vrot.slane %v1550_v58, 4  ;;  %v1551_v8 = vsel %vm8619_vm5, %v6363_v54, %v1550_v58  ;;  %v1461_v49 = vld [vmem:[%s8496_s24 + $0x4c] sm:$0xf]  ;;  %v1462_v50 = vld [vmem:[%s8496_s24 + $0x50] sm:$0x1]  ;;  %v8190_v52 = vld [vmem:[%s9705_s1 + $0xd8] sm:$0xff]  }
  0xae   : > { %7677 = vmatprep.subr.bf16.mxu0 %v8188_v15  ;;  %7421 = vmatprep.mubr.bf16.mxu1 %v6352_v44  ;;  %v6353_v62 = vcombine.low %v1043_v57, %v1053_v60  ;;  %v1558_v13 = vsel %vm8619_vm5, %v6364_v5, %v1557_v6  ;;  %v1559_v14 = vrot.slane %v1557_v6, 4  ;;  %v6365_v16 = vrot.slane %v1451_v10, 9  ;;  %v1460_v44 = vld [vmem:[%s8496_s24 + $0x48] sm:$0xe]  ;;  %v1463_v57 = vld [vmem:[%s8496_s24 + $0x54] sm:$0xe] }
  0xaf   : > { %v1554_v9 = vsel %vm8619_vm5, %v1552_v0, %v1553_v59  ;;  %v1567_v21 = vrot.slane %v1453_v12, 5  ;;  %v1574_v30 = vrot.slane %v1456_v26, 5  ;;  %v1578_v39 = vrot.slane %v1458_v35, 5  ;;  %v1464_v58 = vld [vmem:[%s8496_s24 + $0x58] sm:$0xf]  ;;  %v8189_v61 = vld [vmem:[%s8496_s24 + $0xc0] sm:$0xff]  }
  0xb0   : > { %7646 = vmatmul.mubr.bf16.gmra.mrb[12].mxu0 %v8175_v24  ;;  %v6395_v17 = vcombine.low %v1551_v8, %v1554_v9  ;;  %v1561_v19 = vsel %vm8619_vm5, %v1559_v14, %v1560_v7  ;;  %v1454_v24 = vld [vmem:[%s8496_s24 + $0x30] sm:$0xe]  ;;  %v6367_v42 = vrot.slane %v1457_v32, 9  ;;  %v1581_v43 = vrot.slane %v1459_v36, 5  ;;  %v1465_v59 = vld [vmem:[%s8496_s24 + $0x5c] sm:$0x1] }
  0xb1   : > { %7649 = vmatprep.mubr.bf16.mxu0 %v8177_v29  ;;  %7678 = vmatpush3.bf16.msra.mxu0 %v8188_v15  ;;  %v1564_v15 = vrot.slane %v1452_v11, 5  ;;  %v6396_v23 = vcombine.low %v1558_v13, %v1561_v19  ;;  %v6366_v28 = vrot.slane %v1454_v24, 9  ;;  %v1571_v29 = vrot.slane %v1455_v25, 5  ;;  %v8193_v6 = vld [vmem:[%s9705_s1 + $0xe0] sm:$0xff]   ;;  %v1468_v11 = vld [vmem:[%s8496_s24 + $0x68] sm:$0x1] }
  0xb2   : > { %7679 = vmatprep.subr.bf16.mxu0 %v8192_v34  ;;  %7422 = vmatmul.mubr.bf16.gmra.mrb[28].mxu1 %v6353_v62  ;;  %v1580_v46 = vrot.slane %v1578_v39, 4  ;;  %v6368_v51 = vrot.slane %v1460_v44, 9  ;;  %v1585_v54 = vrot.slane %v1461_v49, 5  ;;  %v6369_v62 = vrot.slane %v1463_v57, 9  ;;  %v1466_v7 = vld [vmem:[%s8496_s24 + $0x60] sm:$0xe] }
  0xb3   : > { %7441 = vmatprep.mubr.bf16.mxu1 %v6394_v63  ;;  %v1566_v20 = vrot.slane %v1564_v15, 4  ;;  %v1565_v37 = vsel %vm8619_vm5, %v6365_v16, %v1564_v15  ;;  %v1592_v63 = vrot.slane %v1464_v58, 5  ;;  %v1579_v0 = vsel %vm8619_vm5, %v6367_v42, %v1578_v39  ;;  %v1467_v8 = vld [vmem:[%s8496_s24 + $0x64] sm:$0xf]  ;;  %v6754_v13 = vld [vmem:[%s8496_s24 + $0x18] sm:$0xf] }
  0xb4   : > { %v1587_v60 = vrot.slane %v1585_v54, 4  ;;  %v1582_v1 = vsel %vm8619_vm5, %v1580_v46, %v1581_v43  ;;  %v1586_v3 = vsel %vm8619_vm5, %v6368_v51, %v1585_v54  ;;  %v1599_v12 = vrot.slane %v1467_v8, 5  ;;  %v8191_v16 = vld [vmem:[%s8496_s24 + $0xcc] sm:$0xff]   ;;  %v6755_v19 = vld [vmem:[%s8496_s24 + $0x1c] sm:$0xf] }
  0xb5   : > { %7680 = vmatpush3.bf16.msra.mxu0 %v8192_v34  ;;  %v1573_v34 = vrot.slane %v1571_v29, 4  ;;  %v1568_v38 = vsel %vm8619_vm5, %v1566_v20, %v1567_v21  ;;  %v1594_v5 = vrot.slane %v1592_v63, 4  ;;  %v6399_v9 = vcombine.low %v1579_v0, %v1582_v1  ;;  %v6756_v20 = vld [vmem:[%s8496_s24 + $0x20] sm:$0x1]  ;;  %v1469_v26 = vld [vmem:[%s8496_s24 + $0x6c] sm:$0xe] }
  0xb6   : > { %7713 = vmatprep.subr.bf16.mxu0 %v8975_v56  ;;  %v6397_v45 = vcombine.low %v1565_v37, %v1568_v38  ;;  %v9048_v10 = vsel %vm8619_vm5, %v6369_v62, %v1592_v63  ;;  %v4412_v21 = vshrl.u32 %v6754_v13, 16  ;;  %v4415_v24 = vshll.u32 %v6754_v13, 16  ;;  %v1471_v36 = vld [vmem:[%s8496_s24 + $0x74] sm:$0x1]  ;;  %v6757_v46 = vld [vmem:[%s8496_s24 + $0x24] sm:$0xf] }
  0xb7   : > { %v1575_v41 = vsel %vm8619_vm5, %v1573_v34, %v1574_v30  ;;  %v4421_v25 = vshll.u32 %v6755_v19, 16  ;;  %v4431_v30 = vshll.u32 %v6756_v20, 16  ;;  %v6371_v32 = vrot.slane %v1469_v26, 9  ;;  %v6759_v51 = vld [vmem:[%s8496_s24 + $0x2c] sm:$0x1] }
  0xb8   : > { %7650 = vmatmul.mubr.bf16.gmra.mrb[16].mxu0 %v8179_v55  ;;  %v1588_v55 = vrot.slane %v1462_v50, 5  ;;  %v4417_v34 = vrot.slane %v4415_v24, 5  ;;  %v6758_v50 = vld [vmem:[%s8496_s24 + $0x28] sm:$0xf]  ;;  %v1474_v8 = vld [vmem:[%s8496_s24 + $0x80] sm:$0x1] }
  0xb9   : > { %7653 = vmatprep.mubr.bf16.mxu0 %v8181_v2  ;;  %v1595_v2 = vrot.slane %v1465_v59, 5  ;;  %v4423_v35 = vrot.slane %v4421_v25, 5  ;;  %v4433_v44 = vrot.slane %v4431_v30, 5  ;;  %v4445_v57 = vshll.u32 %v6758_v50, 16  ;;  %v6762_v20 = vld [vmem:[%s8496_s24 + $0x38] sm:$0x1] }
  0xba   : > { %7442 = vmatmul.mubr.bf16.vlgmr.msra.gmra.mrb[0].mxu1 %v6395_v17  ;;  %v1589_v18 = vsel %vm8619_vm5, %v1587_v60, %v1588_v55  ;;  %v6370_v17 = vrot.slane %v1466_v7, 9  ;;  %v4449_v58 = vshrl.u32 %v6758_v50, 16  ;;  %v1473_v7 = vld [vmem:[%s8496_s24 + $0x7c] sm:$0xf]  ;;  %v1475_v26 = vld [vmem:[%s8496_s24 + $0x84] sm:$0xe] }
  0xbb   : > { %7474 = vmatpush3.bf16.msra.mxu1 %v8865_v27  ;;  %7445 = vmatprep.mubr.bf16.mxu1 %v6396_v23  ;;  %v1572_v27 = vsel %vm8619_vm5, %v6366_v28, %v1571_v29  ;;  %v6400_v14 = vcombine.low %v1586_v3, %v1589_v18  ;;  %v9054_v15 = vsel %vm8619_vm5, %v1594_v5, %v1595_v2  ;;  %v1602_v23 = vrot.slane %v1468_v11, 5  ;;  %v1472_v3 = vld [vmem:[%s8496_s24 + $0x78] sm:$0xe] }
  0xbc   : > { %7475 = vmatprep.subr.bf16.mxu1 %v8182_v22  ;;  %v6398_v53 = vcombine.low %v1572_v27, %v1575_v41  ;;  %v4414_v28 = vrot.slane %v4412_v21, 4  ;;  %v4425_v29 = vshrl.u32 %v6755_v19, 16  ;;  %v6401_v38 = vcombine.low %v9048_v10, %v9054_v15  ;;  %v8197_v41 = vld [vmem:[%s9705_s1 + $0xf0] sm:$0xff]   ;;  %v8199_v10 = vld [vmem:[%s9705_s1 + $0xf8] sm:$0xff]  }
  0xbd   : > { %v1600_v39 = vsel %vm8619_vm5, %v6370_v17, %v1599_v12  ;;  %v1609_v27 = vrot.slane %v1471_v36, 5  ;;  %v4447_v0 = vrot.slane %v4445_v57, 5  ;;  %v4451_v1 = vrot.slane %v4449_v58, 4  ;;  %v6760_v15 = vld [vmem:[%s8496_s24 + $0x30] sm:$0xf] }
  0xbe   : > { %v4418_v43 = vor.u32 %v4417_v34, %v4414_v28  ;;  %v4455_v2 = vshll.u32 %v6759_v51, 16  ;;  %v1616_v19 = vrot.slane %v1474_v8, 5  ;;  %v4460_v21 = vshrl.u32 %v6760_v15, 16 }
  0xbf   : > { %7476 = vmatpush3.bf16.msra.mxu1 %v8182_v22  ;;  %v8195_v22 = vld [vmem:[%s9705_s1 + $0xe8] sm:$0xff]  }
  0xc0   : > { %7654 = vmatmul.mubr.bf16.gmra.mrb[20].mxu0 %v8183_v47  ;;  %7477 = vmatprep.subr.bf16.mxu1 %v8186_v40  ;;  %v1601_v47 = vrot.slane %v1599_v12, 4  ;;  %v4419_v54 = vrot.slane %v4418_v43, 4  ;;  %v4452_v12 = vor.u32 %v4451_v1, %v4447_v0  ;;  %v4457_v13 = vrot.slane %v4455_v2, 5  ;;  %v6763_v43 = vld [vmem:[%s8496_s24 + $0x3c] sm:$0xf] }
  0xc1   : > { %7657 = vmatprep.mubr.bf16.mxu0 %v8185_v31  ;;  %v1470_v31 = vld [vmem:[%s8496_s24 + $0x70] sm:$0xf] }
  0xc2   : > { %7446 = vmatmul.mubr.bf16.gmra.mrb[4].mxu1 %v6397_v45  ;;  %v1606_v37 = vrot.slane %v1470_v31, 5  ;;  %v1603_v42 = vsel %vm8619_vm5, %v1601_v47, %v1602_v23  ;;  %v4424_v63 = vsel %vm8519_vm2, %v4419_v54, %v4423_v35  ;;  %v4453_v47 = vrot.slane %v4452_v12, 4  ;;  %v8200_v12 = vld [vmem:[%s9705_s1 + $0x218] sm:$0xff]  }
  0xc3   : > { %7449 = vmatprep.mubr.bf16.mxu1 %v6398_v53  ;;  %7478 = vmatpush3.bf16.msra.mxu1 %v8186_v40  ;;  %v4427_v40 = vrot.slane %v4425_v29, 4  ;;  %v4439_v53 = vshll.u32 %v6757_v46, 16  ;;  %v6402_v59 = vcombine.low %v1600_v39, %v1603_v42  ;;  %v4462_v29 = vrot.slane %v4460_v21, 4 }
  0xc4   : > { %7479 = vmatprep.subr.bf16.mxu1 %v8190_v52  ;;  %v1608_v45 = vrot.slane %v1606_v37, 4  ;;  %v9077_v49 = vsel %vm8619_vm5, %v6371_v32, %v1606_v37  ;;  %v1476_v32 = vld [vmem:[%s8496_s24 + $0x88] sm:$0xf]  ;;  %v4458_v34 = vsel %vm8519_vm2, %v4453_v47, %v4457_v13  ;;  %v4479_v37 = vshll.u32 %v6762_v20, 16 }
  0xc5   : > { %v4441_v62 = vrot.slane %v4439_v53, 5  ;;  %v4484_v53 = vshrl.u32 %v6763_v43, 16  ;;  %v4487_v54 = vshll.u32 %v6763_v43, 16 }
  0xc6   : > { %v9083_v55 = vsel %vm8619_vm5, %v1608_v45, %v1609_v27  ;;  %v6373_v45 = vrot.slane %v1475_v26, 9 }
  0xc7   : > { %7480 = vmatpush3.bf16.msra.mxu1 %v8190_v52  ;;  %v4436_v52 = vshrl.u32 %v6757_v46, 16  ;;  %v6403_v5 = vcombine.low %v9077_v49, %v9083_v55  ;;  %v1620_v46 = vrot.slane %v1476_v32, 5  ;;  %v6764_v49 = vld [vmem:[%s8496_s24 + $0x40] sm:$0xf] }
  0xc8   : > { %7658 = vmatmul.mubr.bf16.gmra.mrb[24].mxu0 %v8187_v48  ;;  %7481 = vmatprep.subr.bf16.mxu1 %v8193_v6  ;;  %v4428_v48 = vor.u32 %v4427_v40, %v4423_v35  ;;  %v4493_v58 = vshll.u32 %v6764_v49, 16 }
  0xc9   : > { %7661 = vmatprep.mubr.bf16.mxu0 %v8189_v61  ;;  %v4438_v61 = vrot.slane %v4436_v52, 4  ;;  %v6765_v52 = vld [vmem:[%s8496_s24 + $0x44] sm:$0x1]  ;;  %v1621_v55 = vsel %vm8619_vm5, %v6373_v45, %v1620_v46  ;;  %v1622_v57 = vrot.slane %v1620_v46, 4 }
  0xca   : > { %7450 = vmatmul.mubr.bf16.gmra.mrb[8].mxu1 %v6399_v9  ;;  %v4429_v60 = vrot.slane %v4428_v48, 4  ;;  %v6372_v9 = vrot.slane %v1472_v3, 9  ;;  %v4495_v2 = vrot.slane %v4493_v58, 5  ;;  %v8203_v45 = vld [vmem:[%s9705_s1 + $0x220] sm:$0xff]  }
  0xcb   : > { %7453 = vmatprep.mubr.bf16.mxu1 %v6400_v14  ;;  %7482 = vmatpush3.bf16.msra.mxu1 %v8193_v6  ;;  %v4442_v6 = vor.u32 %v4441_v62, %v4438_v61  ;;  %v1613_v14 = vrot.slane %v1473_v7, 5  ;;  %v4486_v62 = vrot.slane %v4484_v53, 4 }
  0xcc   : > { %7483 = vmatprep.subr.bf16.mxu1 %v8195_v22  ;;  %v4434_v18 = vsel %vm8519_vm2, %v4429_v60, %v4433_v44  ;;  %v4481_v44 = vrot.slane %v4479_v37, 5  ;;  %v9123_v60 = vld [vmem:[%s9705_s1 + $0x100] sm:$0xff]  }
  0xcd   : > { %v6818_v11 = vcombine.low %v4424_v63, %v4434_v18  ;;  %v4443_v17 = vrot.slane %v4442_v6, 4  ;;  %v1614_v23 = vsel %vm8619_vm5, %v6372_v9, %v1613_v14  ;;  %v1615_v24 = vrot.slane %v1613_v14, 4  ;;  %v1479_v9 = vld [vmem:[%s8496_s24 + $0x94] sm:$0xf] }
  0xce   : > { %v4489_v63 = vrot.slane %v4487_v54, 5  ;;  %v4503_v18 = vshll.u32 %v6765_v52, 16  ;;  %v6771_v54 = vld [vmem:[%s8496_s24 + $0x5c] sm:$0x1] }
  0xcf   : > { %7484 = vmatpush3.bf16.msra.mxu1 %v8195_v22  ;;  %v4463_v22 = vshll.u32 %v6760_v15, 16  ;;  %v4448_v28 = vsel %vm8519_vm2, %v4443_v17, %v4447_v0  ;;  %v1617_v35 = vsel %vm8619_vm5, %v1615_v24, %v1616_v19  ;;  %v8198_v0 = vld [vmem:[%s9705_s1 + $0x210] sm:$0xff]   ;;  %v6766_v17 = vld [vmem:[%s8496_s24 + $0x48] sm:$0xf]  ;;  %v6767_v19 = vld [vmem:[%s8496_s24 + $0x4c] sm:$0xf] }
  0xd0   : > { %7662 = vmatmul.mubr.bf16.gmra.mrb[28].mxu0 %v8191_v16  ;;  %7485 = vmatprep.subr.bf16.mxu1 %v8197_v41  ;;  %v6761_v16 = vld [vmem:[%s8496_s24 + $0x34] sm:$0xf]  ;;  %v6819_v39 = vcombine.low %v4448_v28, %v4458_v34  ;;  %v6404_v40 = vcombine.low %v1614_v23, %v1617_v35  ;;  %v4490_v8 = vor.u32 %v4489_v63, %v4486_v62  ;;  %v4505_v15 = vrot.slane %v4503_v18, 5  ;;  %v1482_v35 = vld [vmem:[%s8496_s24 + $0xa0] sm:$0xf] }
  0xd1   : > { %7681 = vmatprep.mubr.bf16.mxu0 %v6818_v11  ;;  %v4469_v25 = vshll.u32 %v6761_v16, 16  ;;  %v4465_v30 = vrot.slane %v4463_v22, 5  ;;  %v4473_v31 = vshrl.u32 %v6761_v16, 16  ;;  %v1627_v16 = vrot.slane %v1479_v9, 5  ;;  %v6768_v22 = vld [vmem:[%s8496_s24 + $0x50] sm:$0x1] }
  0xd2   : > { %7454 = vmatmul.mubr.bf16.gmra.mrb[12].mxu1 %v6401_v38  ;;  %v1477_v38 = vld [vmem:[%s8496_s24 + $0x8c] sm:$0x1]  ;;  %v4491_v20 = vrot.slane %v4490_v8, 4  ;;  %v4508_v47 = vshrl.u32 %v6766_v17, 16  ;;  %v4511_v23 = vshll.u32 %v6766_v17, 16  ;;  %v4517_v28 = vshll.u32 %v6767_v19, 16 }
  0xd3   : > { %7457 = vmatprep.mubr.bf16.mxu1 %v6402_v59  ;;  %7486 = vmatpush3.bf16.msra.mxu1 %v8197_v41  ;;  %v4471_v36 = vrot.slane %v4469_v25, 5  ;;  %v4466_v27 = vor.u32 %v4465_v30, %v4462_v29  ;;  %v4475_v42 = vrot.slane %v4473_v31, 4  ;;  %v8196_v41 = vld [vmem:[%s9705_s1 + $0x208] sm:$0xff]   ;;  %v1623_v48 = vrot.slane %v1477_v38, 5  ;;  %v1481_v29 = vld [vmem:[%s8496_s24 + $0x9c] sm:$0xe] }
  0xd4   : > { %7487 = vmatprep.subr.bf16.mxu1 %v8199_v10  ;;  %v4497_v59 = vshrl.u32 %v6764_v49, 16  ;;  %v1629_v26 = vrot.slane %v1627_v16, 4  ;;  %v4496_v30 = vsel %vm8519_vm2, %v4491_v20, %v4495_v2  ;;  %v4510_v31 = vrot.slane %v4508_v47, 4  ;;  %v6772_v20 = vld [vmem:[%s8496_s24 + $0x60] sm:$0xf] }
  0xd5   : > { %v4467_v50 = vrot.slane %v4466_v27, 4  ;;  %v4476_v51 = vor.u32 %v4475_v42, %v4471_v36  ;;  %v1624_v1 = vsel %vm8619_vm5, %v1622_v57, %v1623_v48  ;;  %v4513_v32 = vrot.slane %v4511_v23, 5  ;;  %v6774_v23 = vld [vmem:[%s8496_s24 + $0x68] sm:$0x1] }
  0xd6   : > { %v4499_v3 = vrot.slane %v4497_v59, 4  ;;  %v6405_v7 = vcombine.low %v1621_v55, %v1624_v1  ;;  %v4521_v34 = vshrl.u32 %v6767_v19, 16  ;;  %v4519_v38 = vrot.slane %v4517_v28, 5 }
  0xd7   : > { %7488 = vmatpush3.bf16.msra.mxu1 %v8199_v10  ;;  %v4472_v61 = vsel %vm8519_vm2, %v4467_v50, %v4471_v36  ;;  %v1480_v10 = vld [vmem:[%s8496_s24 + $0x98] sm:$0x1]  ;;  %v4514_v43 = vor.u32 %v4513_v32, %v4510_v31  ;;  %v6375_v48 = vrot.slane %v1481_v29, 9  ;;  %v1634_v49 = vrot.slane %v1482_v35, 5  ;;  %v1487_v31 = vld [vmem:[%s8496_s24 + $0xb4] sm:$0xe] }
  0xd8   : > { %7682 = vmatmul.mubr.bf16.vlgmr.msra.gmra.mrb[0].mxu0 %v6819_v39  ;;  %7761 = vmatprep.subr.bf16.mxu1 %v9123_v60  ;;  %v4500_v14 = vor.u32 %v4499_v3, %v4495_v2  ;;  %v1630_v21 = vrot.slane %v1480_v10, 5  ;;  %v4527_v39 = vshll.u32 %v6768_v22, 16  ;;  %v8206_v2 = vld [vmem:[%s9705_s1 + $0x228] sm:$0xff]  }
  0xd9   : > { %7714 = vmatpush3.bf16.msra.mxu0 %v8975_v56  ;;  %v4477_v56 = vrot.slane %v4476_v51, 4  ;;  %v6770_v51 = vld [vmem:[%s8496_s24 + $0x58] sm:$0xf]  ;;  %v4515_v52 = vrot.slane %v4514_v43, 4  ;;  %v1635_v58 = vsel %vm8619_vm5, %v6375_v48, %v1634_v49  ;;  %v1636_v59 = vrot.slane %v1634_v49, 4 }
  0xda   : > { %7458 = vmatmul.mubr.bf16.gmra.mrb[16].mxu1 %v6403_v5  ;;  %7715 = vmatprep.subr.bf16.mxu0 %v8196_v41  ;;  %v1478_v5 = vld [vmem:[%s8496_s24 + $0x90] sm:$0xe]  ;;  %v4501_v24 = vrot.slane %v4500_v14, 4  ;;  %v1631_v37 = vsel %vm8619_vm5, %v1629_v26, %v1630_v21  ;;  %v4529_v46 = vrot.slane %v4527_v39, 5  ;;  %v6773_v21 = vld [vmem:[%s8496_s24 + $0x64] sm:$0xf] }
  0xdb   : > { %7461 = vmatprep.mubr.bf16.mxu1 %v6404_v40  ;;  %v4482_v6 = vsel %vm8519_vm2, %v4477_v56, %v4481_v44  ;;  %v6374_v11 = vrot.slane %v1478_v5, 9  ;;  %v1483_v40 = vld [vmem:[%s8496_s24 + $0xa4] sm:$0x1]  ;;  %v6769_v44 = vld [vmem:[%s8496_s24 + $0x54] sm:$0xf]  ;;  %v4545_v56 = vshrl.u32 %v6770_v51, 16  ;;  %v4520_v62 = vsel %vm8519_vm2, %v4515_v52, %v4519_v38 }
  0xdc   : > { %v6820_v13 = vcombine.low %v4472_v61, %v4482_v6  ;;  %v4506_v36 = vsel %vm8519_vm2, %v4501_v24, %v4505_v15  ;;  %v1637_v50 = vrot.slane %v1483_v40, 5  ;;  %v4532_v55 = vshrl.u32 %v6769_v44, 16  ;;  %v8209_v14 = vld [vmem:[%s9705_s1 + $0x230] sm:$0xff]   ;;  %v8212_v48 = vld [vmem:[%s9705_s1 + $0x238] sm:$0xff]  }
  0xdd   : > { %7716 = vmatpush3.bf16.msra.mxu0 %v8196_v41  ;;  %v1628_v25 = vsel %vm8619_vm5, %v6374_v11, %v1627_v16  ;;  %v6821_v27 = vcombine.low %v4496_v30, %v4506_v36  ;;  %v4523_v41 = vrot.slane %v4521_v34, 4  ;;  %v4535_v57 = vshll.u32 %v6769_v44, 16  ;;  %v1485_v11 = vld [vmem:[%s8496_s24 + $0xac] sm:$0xf] }
  0xde   : > { %7717 = vmatprep.subr.bf16.mxu0 %v8198_v0  ;;  %7685 = vmatprep.mubr.bf16.mxu0 %v6820_v13  ;;  %v6406_v42 = vcombine.low %v1628_v25, %v1631_v37  ;;  %v4541_v61 = vshll.u32 %v6770_v51, 16  ;;  %v1638_v3 = vsel %vm8619_vm5, %v1636_v59, %v1637_v50  ;;  %v4547_v5 = vrot.slane %v4545_v56, 4  ;;  %v1488_v37 = vld [vmem:[%s8496_s24 + $0xb8] sm:$0xf] }
  0xdf   : > { %v4524_v53 = vor.u32 %v4523_v41, %v4519_v38  ;;  %v4537_v1 = vrot.slane %v4535_v57, 5  ;;  %v4551_v6 = vshll.u32 %v6771_v54, 16  ;;  %v6407_v9 = vcombine.low %v1635_v58, %v1638_v3  ;;  %v6777_v57 = vld [vmem:[%s8496_s24 + $0x74] sm:$0x1] }
  0xe0   : > { %7686 = vmatmul.mubr.bf16.gmra.mrb[4].mxu0 %v6821_v27  ;;  %v4543_v18 = vrot.slane %v4541_v61, 5  ;;  %v1641_v19 = vrot.slane %v1485_v11, 5  ;;  %v4556_v24 = vshrl.u32 %v6772_v20, 16  ;;  %v4559_v25 = vshll.u32 %v6772_v20, 16 }
  0xe1   : > { %7718 = vmatpush3.bf16.msra.mxu0 %v8198_v0  ;;  %v4525_v63 = vrot.slane %v4524_v53, 4  ;;  %v4534_v0 = vrot.slane %v4532_v55, 4  ;;  %v4553_v17 = vrot.slane %v4551_v6, 5  ;;  %v4565_v30 = vshll.u32 %v6773_v21, 16  ;;  %v6776_v53 = vld [vmem:[%s8496_s24 + $0x70] sm:$0xf] }
  0xe2   : > { %7462 = vmatmul.mubr.bf16.gmra.mrb[20].mxu1 %v6405_v7  ;;  %7719 = vmatprep.subr.bf16.mxu0 %v8200_v12  ;;  %v1484_v7 = vld [vmem:[%s8496_s24 + $0xa8] sm:$0xe]  ;;  %v4548_v16 = vor.u32 %v4547_v5, %v4543_v18  ;;  %v1643_v29 = vrot.slane %v1641_v19, 4  ;;  %v4558_v34 = vrot.slane %v4556_v24, 4  ;;  %v4561_v35 = vrot.slane %v4559_v25, 5 }
  0xe3   : > { %7465 = vmatprep.mubr.bf16.mxu1 %v6406_v42  ;;  %v4530_v8 = vsel %vm8519_vm2, %v4525_v63, %v4529_v46  ;;  %v4538_v10 = vor.u32 %v4537_v1, %v4534_v0  ;;  %v6376_v13 = vrot.slane %v1484_v7, 9  ;;  %v4569_v36 = vshrl.u32 %v6773_v21, 16  ;;  %v1489_v42 = vld [vmem:[%s8496_s24 + $0xbc] sm:$0x1]  ;;  %v6775_v46 = vld [vmem:[%s8496_s24 + $0x6c] sm:$0xf] }
  0xe4   : > { %v6822_v15 = vcombine.low %v4520_v62, %v4530_v8  ;;  %v4549_v26 = vrot.slane %v4548_v16, 4  ;;  %v4567_v40 = vrot.slane %v4565_v30, 5  ;;  %v4575_v27 = vshll.u32 %v6774_v23, 16  ;;  %v8201_v8 = vld [vmem:[%s8496_s24 + $0xc] sm:$0xff]  }
  0xe5   : > { %7720 = vmatpush3.bf16.msra.mxu0 %v8200_v12  ;;  %v1486_v12 = vld [vmem:[%s8496_s24 + $0xb0] sm:$0x1]  ;;  %v4539_v22 = vrot.slane %v4538_v10, 4  ;;  %v1642_v28 = vsel %vm8619_vm5, %v6376_v13, %v1641_v19  ;;  %v4562_v44 = vor.u32 %v4561_v35, %v4558_v34  ;;  %v6377_v50 = vrot.slane %v1487_v31, 9  ;;  %v6779_v13 = vld [vmem:[%s8496_s24 + $0x7c] sm:$0xf] }
  0xe6   : > { %7721 = vmatprep.subr.bf16.mxu0 %v8203_v45  ;;  %v1644_v47 = vrot.slane %v1486_v12, 5  ;;  %7689 = vmatprep.mubr.bf16.mxu0 %v6822_v15  ;;  %v4554_v38 = vsel %vm8519_vm2, %v4549_v26, %v4553_v17  ;;  %v4577_v49 = vrot.slane %v4575_v27, 5  ;;  %v1648_v51 = vrot.slane %v1488_v37, 5  ;;  %v6778_v12 = vld [vmem:[%s8496_s24 + $0x78] sm:$0xf] }
  0xe7   : > { %v4544_v32 = vsel %vm8519_vm2, %v4539_v22, %v4543_v18  ;;  %v1651_v52 = vrot.slane %v1489_v42, 5  ;;  %v4563_v54 = vrot.slane %v4562_v44, 4  ;;  %v4580_v58 = vshrl.u32 %v6775_v46, 16  ;;  %v6780_v17 = vld [vmem:[%s8496_s24 + $0x80] sm:$0x1] }
  0xe8   : > { %v1645_v39 = vsel %vm8619_vm5, %v1643_v29, %v1644_v47  ;;  %v6823_v43 = vcombine.low %v4544_v32, %v4554_v38  ;;  %v4583_v59 = vshll.u32 %v6775_v46, 16  ;;  %v1649_v61 = vsel %vm8619_vm5, %v6377_v50, %v1648_v51  ;;  %v6781_v26 = vld [vmem:[%s8496_s24 + $0x84] sm:$0xf]  ;;  %v6782_v32 = vld [vmem:[%s8496_s24 + $0x88] sm:$0xf] }
  0xe9   : > { %7722 = vmatpush3.bf16.msra.mxu0 %v8203_v45  ;;  %v6408_v41 = vcombine.low %v1642_v28, %v1645_v39  ;;  %v4571_v45 = vrot.slane %v4569_v36, 4  ;;  %v1650_v56 = vrot.slane %v1648_v51, 4  ;;  %v4589_v62 = vshll.u32 %v6776_v53, 16  ;;  %v8202_v36 = vld [vmem:[%s8496_s24 + $0x18] sm:$0xff]   ;;  %v6783_v37 = vld [vmem:[%s8496_s24 + $0x8c] sm:$0x1] }
  0xea   : > { %7466 = vmatmul.mubr.bf16.gmra.mrb[24].mxu1 %v6407_v9  ;;  %7723 = vmatprep.subr.bf16.mxu0 %v8206_v2  ;;  %v4593_v63 = vshrl.u32 %v6776_v53, 16  ;;  %v4568_v0 = vsel %vm8519_vm2, %v4563_v54, %v4567_v40  ;;  %v4585_v3 = vrot.slane %v4583_v59, 5  ;;  %v4599_v7 = vshll.u32 %v6777_v57, 16  ;;  %v6785_v57 = vld [vmem:[%s8496_s24 + $0x94] sm:$0xf] }
  0xeb   : > { %7690 = vmatmul.mubr.bf16.gmra.mrb[8].mxu0 %v6823_v43  ;;  %7469 = vmatprep.mubr.bf16.mxu1 %v6408_v41  ;;  %v4572_v55 = vor.u32 %v4571_v45, %v4567_v40  ;;  %v1652_v18 = vsel %vm8619_vm5, %v1650_v56, %v1651_v52  ;;  %v4591_v5 = vrot.slane %v4589_v62, 5  ;;  %v4604_v19 = vshrl.u32 %v6778_v12, 16  ;;  %v8204_v41 = vld [vmem:[%s8496_s24 + $0x24] sm:$0xff]  }
  0xec   : > { %v4595_v6 = vrot.slane %v4593_v63, 4  ;;  %v6409_v10 = vcombine.low %v1649_v61, %v1652_v18  ;;  %v4601_v16 = vrot.slane %v4599_v7, 5  ;;  %v4607_v21 = vshll.u32 %v6778_v12, 16  ;;  %v6786_v61 = vld [vmem:[%s8496_s24 + $0x98] sm:$0x1] }
  0xed   : > { %7724 = vmatpush3.bf16.msra.mxu0 %v8206_v2  ;;  %v4573_v1 = vrot.slane %v4572_v55, 4  ;;  %v4582_v2 = vrot.slane %v4580_v58, 4  ;;  %v4613_v22 = vshll.u32 %v6779_v13, 16  ;;  %v4617_v47 = vshrl.u32 %v6779_v13, 16  ;;  %v6784_v55 = vld [vmem:[%s8496_s24 + $0x90] sm:$0xf] }
  0xee   : > { %7725 = vmatprep.subr.bf16.mxu0 %v8209_v14  ;;  %v4596_v15 = vor.u32 %v4595_v6, %v4591_v5  ;;  %v4606_v24 = vrot.slane %v4604_v19, 4  ;;  %v4623_v25 = vshll.u32 %v6780_v17, 16  ;;  %v4609_v29 = vrot.slane %v4607_v21, 5  ;;  %v6789_v12 = vld [vmem:[%s8496_s24 + $0xa4] sm:$0x1]  ;;  %v8205_v17 = vld [vmem:[%s8496_s24 + $0x30] sm:$0xff]  }
  0xef   : > { %v4578_v9 = vsel %vm8519_vm2, %v4573_v1, %v4577_v49  ;;  %v4586_v11 = vor.u32 %v4585_v3, %v4582_v2  ;;  %v4615_v30 = vrot.slane %v4613_v22, 5  ;;  %v4619_v31 = vrot.slane %v4617_v47, 4  ;;  %v6787_v3 = vld [vmem:[%s8496_s24 + $0x9c] sm:$0xf] }
  0xf0   : > { %v4597_v23 = vrot.slane %v4596_v15, 4  ;;  %v4625_v35 = vrot.slane %v4623_v25, 5  ;;  %v4628_v38 = vshrl.u32 %v6781_v26, 16  ;;  %v4631_v39 = vshll.u32 %v6781_v26, 16 }
  0xf1   : > { %7726 = vmatpush3.bf16.msra.mxu0 %v8209_v14  ;;  %v6824_v14 = vcombine.low %v4568_v0, %v4578_v9  ;;  %v4587_v20 = vrot.slane %v4586_v11, 4  ;;  %v4610_v27 = vor.u32 %v4609_v29, %v4606_v24  ;;  %v4620_v42 = vor.u32 %v4619_v31, %v4615_v30  ;;  %v6788_v9 = vld [vmem:[%s8496_s24 + $0xa0] sm:$0xf]  ;;  %v8223_v29 = vld [vmem:[%s9705_s1 + $0x110] sm:$0xff]  }
  0xf2   : > { %7727 = vmatprep.subr.bf16.mxu0 %v8212_v48  ;;  %7470 = vmatmul.mubr.bf16.gmra.mrb[28].mxu1 %v6409_v10  ;;  %v4602_v34 = vsel %vm8519_vm2, %v4597_v23, %v4601_v16  ;;  %v4637_v43 = vshll.u32 %v6782_v32, 16  ;;  %v4630_v44 = vrot.slane %v4628_v38, 4  ;;  %v4633_v45 = vrot.slane %v4631_v39, 5  ;;  %v8207_v23 = vld [vmem:[%s8496_s24 + $0x3c] sm:$0xff]   ;;  %v6791_v38 = vld [vmem:[%s8496_s24 + $0xac] sm:$0xf] }
  0xf3   : > { %7693 = vmatprep.mubr.bf16.mxu0 %v6824_v14  ;;  %7489 = vmatprep.mubr.bf16.mxu1 %v8201_v8  ;;  %v4592_v28 = vsel %vm8519_vm2, %v4587_v20, %v4591_v5  ;;  %v4641_v46 = vshrl.u32 %v6782_v32, 16  ;;  %v4611_v49 = vrot.slane %v4610_v27, 4  ;;  %v4621_v50 = vrot.slane %v4620_v42, 4  ;;  %v8222_v8 = vld [vmem:[%s9705_s1 + $0x108] sm:$0xff]   ;;  %v6792_v39 = vld [vmem:[%s8496_s24 + $0xb0] sm:$0x1] }
  0xf4   : > { %v6825_v40 = vcombine.low %v4592_v28, %v4602_v34  ;;  %v4639_v51 = vrot.slane %v4637_v43, 5  ;;  %v4634_v52 = vor.u32 %v4633_v45, %v4630_v44  ;;  %v4652_v56 = vshrl.u32 %v6784_v55, 16  ;;  %v6790_v34 = vld [vmem:[%s8496_s24 + $0xa8] sm:$0xf] }
  0xf5   : > { %7728 = vmatpush3.bf16.msra.mxu0 %v8212_v48  ;;  %v4647_v48 = vshll.u32 %v6783_v37, 16  ;;  %v4643_v53 = vrot.slane %v4641_v46, 4  ;;  %v4616_v58 = vsel %vm8519_vm2, %v4611_v49, %v4615_v30  ;;  %v4626_v59 = vsel %vm8519_vm2, %v4621_v50, %v4625_v35  ;;  %v8208_v49 = vld [vmem:[%s8496_s24 + $0x48] sm:$0xff]   ;;  %v8224_v50 = vld [vmem:[%s9705_s1 + $0x118] sm:$0xff]  }
  0xf6   : > { %7694 = vmatmul.mubr.bf16.gmra.mrb[12].mxu0 %v6825_v40  ;;  %v4655_v62 = vshll.u32 %v6784_v55, 16  ;;  %v6826_v63 = vcombine.low %v4616_v58, %v4626_v59  ;;  %v4635_v0 = vrot.slane %v4634_v52, 4  ;;  %v4661_v2 = vshll.u32 %v6785_v57, 16  ;;  %v6793_v55 = vld [vmem:[%s8496_s24 + $0xb4] sm:$0xf] }
  0xf7   : > { %v4649_v54 = vrot.slane %v4647_v48, 5  ;;  %v4644_v1 = vor.u32 %v4643_v53, %v4639_v51  ;;  %v4654_v18 = vrot.slane %v4652_v56, 4  ;;  %v4665_v6 = vshrl.u32 %v6785_v57, 16  ;;  %v8210_v57 = vld [vmem:[%s8496_s24 + $0x54] sm:$0xff]  }
  0xf8   : > { %v4657_v5 = vrot.slane %v4655_v62, 5  ;;  %v4671_v7 = vshll.u32 %v6786_v61, 16  ;;  %7697 = vmatprep.mubr.bf16.mxu0 %v6826_v63  ;;  %v4640_v10 = vsel %vm8519_vm2, %v4635_v0, %v4639_v51  ;;  %v4663_v11 = vrot.slane %v4661_v2, 5  ;;  %v6794_v56 = vld [vmem:[%s8496_s24 + $0xb8] sm:$0xf] }
  0xf9   : > { %v4676_v13 = vshrl.u32 %v6787_v3, 16  ;;  %v4667_v15 = vrot.slane %v4665_v6, 4  ;;  %v4679_v19 = vshll.u32 %v6787_v3, 16  ;;  %v4685_v22 = vshll.u32 %v6788_v9, 16  ;;  %v6795_v62 = vld [vmem:[%s8496_s24 + $0xbc] sm:$0x1] }
  0xfa   : > { %7490 = vmatmul.mubr.bf16.vlgmr.msra.gmra.mrb[0].mxu1 %v8202_v36  ;;  %v4658_v14 = vor.u32 %v4657_v5, %v4654_v18  ;;  %v4673_v16 = vrot.slane %v4671_v7, 5  ;;  %v4689_v47 = vshrl.u32 %v6788_v9, 16  ;;  %v4695_v32 = vshll.u32 %v6789_v12, 16  ;;  %v8225_v7 = vld [vmem:[%s9705_s1 + $0x120] sm:$0xff]  }
  0xfb   : > { %7769 = vmatpush3.bf16.msra.mxu1 %v9123_v60  ;;  %7493 = vmatprep.mubr.bf16.mxu1 %v8204_v41  ;;  %v4645_v60 = vrot.slane %v4644_v1, 4  ;;  %v4678_v21 = vrot.slane %v4676_v13, 4  ;;  %v4668_v26 = vor.u32 %v4667_v15, %v4663_v11  ;;  %v4681_v28 = vrot.slane %v4679_v19, 5  ;;  %v6797_v15 = vld [vmem:[%s8496_s24 + $0xc4] sm:$0xf] }
  0xfc   : > { %7762 = vmatprep.subr.bf16.mxu1 %v8222_v8  ;;  %v4659_v25 = vrot.slane %v4658_v14, 4  ;;  %v4687_v30 = vrot.slane %v4685_v22, 5  ;;  %v4691_v31 = vrot.slane %v4689_v47, 4  ;;  %v4700_v40 = vshrl.u32 %v6790_v34, 16 }
  0xfd   : > { %v4650_v20 = vsel %vm8519_vm2, %v4645_v60, %v4649_v54  ;;  %v4669_v36 = vrot.slane %v4668_v26, 4  ;;  %v4682_v37 = vor.u32 %v4681_v28, %v4678_v21  ;;  %v4697_v42 = vrot.slane %v4695_v32, 5  ;;  %v6798_v21 = vld [vmem:[%s8496_s24 + $0xc8] sm:$0x1]  ;;  %v8211_v26 = vld [vmem:[%s8496_s24 + $0x60] sm:$0xff]  }
  0xfe   : > { %v6827_v24 = vcombine.low %v4640_v10, %v4650_v20  ;;  %v4664_v35 = vsel %vm8519_vm2, %v4659_v25, %v4663_v11  ;;  %v4692_v27 = vor.u32 %v4691_v31, %v4687_v30  ;;  %v4703_v43 = vshll.u32 %v6790_v34, 16  ;;  %v6796_v11 = vld [vmem:[%s8496_s24 + $0xc0] sm:$0xf]  ;;  %v8226_v28 = vld [vmem:[%s9705_s1 + $0x128] sm:$0xff]  }
  0xff   : > { %7770 = vmatpush3.bf16.msra.mxu1 %v8222_v8  ;;  %v4709_v41 = vshll.u32 %v6791_v38, 16  ;;  %v4674_v44 = vsel %vm8519_vm2, %v4669_v36, %v4673_v16  ;;  %v4683_v45 = vrot.slane %v4682_v37, 4  ;;  %v4702_v46 = vrot.slane %v4700_v40, 4  ;;  %v6799_v34 = vld [vmem:[%s8496_s24 + $0xcc] sm:$0xf] }
 0x100   : > { %7763 = vmatprep.subr.bf16.mxu1 %v8223_v29  ;;  %7698 = vmatmul.mubr.bf16.gmra.mrb[16].mxu0 %v6827_v24  ;;  %v4713_v48 = vshrl.u32 %v6791_v38, 16  ;;  %v6828_v51 = vcombine.low %v4664_v35, %v4674_v44  ;;  %v4693_v52 = vrot.slane %v4692_v27, 4  ;;  %v4705_v53 = vrot.slane %v4703_v43, 5  ;;  %v6800_v35 = vld [vmem:[%s8496_s24 + $0xd0] sm:$0xf] }
 0x101   : > { %v4711_v54 = vrot.slane %v4709_v41, 5  ;;  %v4688_v58 = vsel %vm8519_vm2, %v4683_v45, %v4687_v30  ;;  %v4719_v61 = vshll.u32 %v6792_v39, 16  ;;  %v4724_v1 = vshrl.u32 %v6793_v55, 16  ;;  %v8213_v36 = vld [vmem:[%s8496_s24 + $0x6c] sm:$0xff]   ;;  %v6801_v40 = vld [vmem:[%s8496_s24 + $0xd4] sm:$0x1] }
 0x102   : > { %7494 = vmatmul.mubr.bf16.gmra.mrb[4].mxu1 %v8205_v17  ;;  %v4715_v59 = vrot.slane %v4713_v48, 4  ;;  %7701 = vmatprep.mubr.bf16.mxu0 %v6828_v51  ;;  %v4698_v63 = vsel %vm8519_vm2, %v4693_v52, %v4697_v42  ;;  %v4706_v0 = vor.u32 %v4705_v53, %v4702_v46  ;;  %v4727_v2 = vshll.u32 %v6793_v55, 16 }
 0x103   : > { %7497 = vmatprep.mubr.bf16.mxu1 %v8207_v23  ;;  %7771 = vmatpush3.bf16.msra.mxu1 %v8223_v29  ;;  %v6829_v3 = vcombine.low %v4688_v58, %v4698_v63  ;;  %v4721_v5 = vrot.slane %v4719_v61, 5  ;;  %v4733_v6 = vshll.u32 %v6794_v56, 16  ;;  %v4726_v9 = vrot.slane %v4724_v1, 4  ;;  %v6842_v61 = vld [vmem:[%s8496_s24 + $0x18] sm:$0xe] }
 0x104   : > { %7764 = vmatprep.subr.bf16.mxu1 %v8224_v50  ;;  %v4716_v18 = vor.u32 %v4715_v59, %v4711_v54  ;;  %v4707_v8 = vrot.slane %v4706_v0, 4  ;;  %v4729_v10 = vrot.slane %v4727_v2, 5  ;;  %v4737_v60 = vshrl.u32 %v6794_v56, 16  ;;  %v6843_v56 = vld [vmem:[%s8496_s24 + $0x1c] sm:$0xf] }
 0x105   : > { %v4735_v13 = vrot.slane %v4733_v6, 5  ;;  %v4743_v14 = vshll.u32 %v6795_v62, 16  ;;  %v4748_v16 = vshrl.u32 %v6796_v11, 16  ;;  %v4751_v22 = vshll.u32 %v6796_v11, 16  ;;  %v6844_v0 = vld [vmem:[%s8496_s24 + $0x20] sm:$0x1] }
 0x106   : > { %v4717_v12 = vrot.slane %v4716_v18, 4  ;;  %v4712_v17 = vsel %vm8519_vm2, %v4707_v8, %v4711_v54  ;;  %v4730_v19 = vor.u32 %v4729_v10, %v4726_v9  ;;  %v4739_v20 = vrot.slane %v4737_v60, 4  ;;  %v8214_v6 = vld [vmem:[%s8496_s24 + $0x78] sm:$0xff]   ;;  %v6845_v60 = vld [vmem:[%s8496_s24 + $0x24] sm:$0xe] }
 0x107   : > { %7772 = vmatpush3.bf16.msra.mxu1 %v8224_v50  ;;  %v4745_v23 = vrot.slane %v4743_v14, 5  ;;  %v4750_v24 = vrot.slane %v4748_v16, 4  ;;  %v4757_v25 = vshll.u32 %v6797_v15, 16  ;;  %v4753_v32 = vrot.slane %v4751_v22, 5  ;;  %v8227_v50 = vld [vmem:[%s9705_s1 + $0x130] sm:$0xff]   ;;  %v8215_v16 = vld [vmem:[%s8496_s24 + $0x84] sm:$0xff]  }
 0x108   : > { %7765 = vmatprep.subr.bf16.mxu1 %v8225_v7  ;;  %7702 = vmatmul.mubr.bf16.gmra.mrb[20].mxu0 %v6829_v3  ;;  %v4722_v47 = vsel %vm8519_vm2, %v4717_v12, %v4721_v5  ;;  %v4731_v30 = vrot.slane %v4730_v19, 4  ;;  %v4740_v31 = vor.u32 %v4739_v20, %v4735_v13  ;;  %v4761_v38 = vshrl.u32 %v6797_v15, 16  ;;  %v6846_v11 = vld [vmem:[%s8496_s24 + $0x28] sm:$0xf]  ;;  %v6847_v15 = vld [vmem:[%s8496_s24 + $0x2c] sm:$0x1] }
 0x109   : > { %v6830_v29 = vcombine.low %v4712_v17, %v4722_v47  ;;  %v4759_v37 = vrot.slane %v4757_v25, 5  ;;  %v4767_v39 = vshll.u32 %v6798_v21, 16  ;;  %v4772_v27 = vshrl.u32 %v6799_v34, 16  ;;  %v6848_v22 = vld [vmem:[%s8496_s24 + $0x30] sm:$0xe] }
 0x10a   : > { %7498 = vmatmul.mubr.bf16.gmra.mrb[8].mxu1 %v8208_v49  ;;  %v4736_v42 = vsel %vm8519_vm2, %v4731_v30, %v4735_v13  ;;  %v4741_v43 = vrot.slane %v4740_v31, 4  ;;  %v4754_v41 = vor.u32 %v4753_v32, %v4750_v24  ;;  %v4775_v44 = vshll.u32 %v6799_v34, 16  ;;  %v6849_v25 = vld [vmem:[%s8496_s24 + $0x34] sm:$0xf] }
 0x10b   : > { %7501 = vmatprep.mubr.bf16.mxu1 %v8210_v57  ;;  %7773 = vmatpush3.bf16.msra.mxu1 %v8225_v7  ;;  %v4763_v45 = vrot.slane %v4761_v38, 4  ;;  %v4769_v46 = vrot.slane %v4767_v39, 5  ;;  %v4774_v48 = vrot.slane %v4772_v27, 4  ;;  %v4781_v49 = vshll.u32 %v6800_v35, 16  ;;  %v8228_v7 = vld [vmem:[%s9705_s1 + $0x138] sm:$0xff]  }
 0x10c   : > { %7766 = vmatprep.subr.bf16.mxu1 %v8226_v28  ;;  %7705 = vmatprep.mubr.bf16.mxu0 %v6830_v29  ;;  %v4746_v51 = vsel %vm8519_vm2, %v4741_v43, %v4745_v23  ;;  %v4755_v52 = vrot.slane %v4754_v41, 4  ;;  %v4777_v53 = vrot.slane %v4775_v44, 5  ;;  %v4785_v54 = vshrl.u32 %v6800_v35, 16  ;;  %v6853_v38 = vld [vmem:[%s8496_s24 + $0x44] sm:$0x1] }
 0x10d   : > { %v6831_v55 = vcombine.low %v4736_v42, %v4746_v51  ;;  %v4764_v57 = vor.u32 %v4763_v45, %v4759_v37  ;;  %v4783_v58 = vrot.slane %v4781_v49, 5  ;;  %v4791_v59 = vshll.u32 %v6801_v40, 16  ;;  %v8216_v42 = vld [vmem:[%s8496_s24 + $0x90] sm:$0xff]   ;;  %v6854_v41 = vld [vmem:[%s8496_s24 + $0x48] sm:$0xe] }
 0x10e   : > { %v4778_v62 = vor.u32 %v4777_v53, %v4774_v48  ;;  %v4787_v63 = vrot.slane %v4785_v54, 4  ;;  %v6890_v1 = vrot.slane %v6842_v61, 9  ;;  %v4760_v2 = vsel %vm8519_vm2, %v4755_v52, %v4759_v37  ;;  %v6852_v37 = vld [vmem:[%s8496_s24 + $0x40] sm:$0xf]  ;;  %v6855_v49 = vld [vmem:[%s8496_s24 + $0x4c] sm:$0xf] }
 0x10f   : > { %7774 = vmatpush3.bf16.msra.mxu1 %v8226_v28  ;;  %v4765_v3 = vrot.slane %v4764_v57, 4  ;;  %v5281_v18 = vrot.slane %v6843_v56, 5  ;;  %v5284_v5 = vrot.slane %v6844_v0, 5  ;;  %v4793_v10 = vrot.slane %v4791_v59, 5  ;;  %v8217_v48 = vld [vmem:[%s8496_s24 + $0x9c] sm:$0xff]  }
 0x110   : > { %7767 = vmatprep.subr.bf16.mxu1 %v8227_v50  ;;  %7706 = vmatmul.mubr.bf16.gmra.mrb[24].mxu0 %v6831_v55  ;;  %v4779_v8 = vrot.slane %v4778_v62, 4  ;;  %v4788_v9 = vor.u32 %v4787_v63, %v4783_v58  ;;  %v5288_v21 = vrot.slane %v6846_v11, 5  ;;  %v6891_v23 = vrot.slane %v6845_v60, 9  ;;  %v6857_v57 = vld [vmem:[%s8496_s24 + $0x54] sm:$0xe] }
 0x111   : > { %v4770_v12 = vsel %vm8519_vm2, %v4765_v3, %v4769_v46  ;;  %v5282_v13 = vsel %vm8619_vm5, %v6890_v1, %v5281_v18  ;;  %v5283_v14 = vrot.slane %v5281_v18, 4  ;;  %v5291_v24 = vrot.slane %v6847_v15, 5  ;;  %v6859_v59 = vld [vmem:[%s8496_s24 + $0x5c] sm:$0x1]  ;;  %v6860_v18 = vld [vmem:[%s8496_s24 + $0x60] sm:$0xe] }
 0x112   : > { %7502 = vmatmul.mubr.bf16.gmra.mrb[12].mxu1 %v8211_v26  ;;  %v6832_v17 = vcombine.low %v4760_v2, %v4770_v12  ;;  %v4784_v19 = vsel %vm8519_vm2, %v4779_v8, %v4783_v58  ;;  %v4789_v20 = vrot.slane %v4788_v9, 4  ;;  %v6850_v26 = vld [vmem:[%s8496_s24 + $0x38] sm:$0x1]  ;;  %v5290_v30 = vrot.slane %v5288_v21, 4  ;;  %v6862_v8 = vld [vmem:[%s8496_s24 + $0x68] sm:$0x1] }
 0x113   : > { %7505 = vmatprep.mubr.bf16.mxu1 %v8213_v36  ;;  %7775 = vmatpush3.bf16.msra.mxu1 %v8227_v50  ;;  %v5285_v47 = vsel %vm8619_vm5, %v5283_v14, %v5284_v5  ;;  %v6892_v31 = vrot.slane %v6848_v22, 9  ;;  %v5295_v34 = vrot.slane %v6849_v25, 5  ;;  %v5298_v35 = vrot.slane %v6850_v26, 5  ;;  %v6851_v36 = vld [vmem:[%s8496_s24 + $0x3c] sm:$0xe]  ;;  %v8218_v15 = vld [vmem:[%s8496_s24 + $0xa8] sm:$0xff]  }
 0x114   : > { %7768 = vmatprep.subr.bf16.mxu1 %v8228_v7  ;;  %7709 = vmatprep.mubr.bf16.mxu0 %v6832_v17  ;;  %v4794_v28 = vsel %vm8519_vm2, %v4789_v20, %v4793_v10  ;;  %v6922_v29 = vcombine.low %v5282_v13, %v5285_v47  ;;  %v6893_v39 = vrot.slane %v6851_v36, 9  ;;  %v5302_v40 = vrot.slane %v6852_v37, 5  ;;  %v6856_v50 = vld [vmem:[%s8496_s24 + $0x50] sm:$0x1]  ;;  %v6858_v58 = vld [vmem:[%s8496_s24 + $0x58] sm:$0xf] }
 0x115   : > { %v6833_v32 = vcombine.low %v4784_v19, %v4794_v28  ;;  %v5297_v27 = vrot.slane %v5295_v34, 4  ;;  %v5305_v43 = vrot.slane %v6853_v38, 5  ;;  %v5289_v44 = vsel %vm8619_vm5, %v6891_v23, %v5288_v21  ;;  %v6861_v5 = vld [vmem:[%s8496_s24 + $0x64] sm:$0xf]  ;;  %v6863_v13 = vld [vmem:[%s8496_s24 + $0x6c] sm:$0xe] }
 0x116   : > { %v5292_v45 = vsel %vm8619_vm5, %v5290_v30, %v5291_v24  ;;  %v5304_v46 = vrot.slane %v5302_v40, 4  ;;  %v6894_v51 = vrot.slane %v6854_v41, 9  ;;  %v5296_v52 = vsel %vm8619_vm5, %v6892_v31, %v5295_v34  ;;  %v6864_v19 = vld [vmem:[%s8496_s24 + $0x70] sm:$0xf]  ;;  %v6865_v20 = vld [vmem:[%s8496_s24 + $0x74] sm:$0x1] }
 0x117   : > { %7776 = vmatpush3.bf16.msra.mxu1 %v8228_v7  ;;  %v5299_v53 = vsel %vm8619_vm5, %v5297_v27, %v5298_v35  ;;  %v5309_v54 = vrot.slane %v6855_v49, 5  ;;  %v5312_v55 = vrot.slane %v6856_v50, 5  ;;  %v6923_v61 = vcombine.low %v5289_v44, %v5292_v45  ;;  %v8219_v23 = vld [vmem:[%s8496_s24 + $0xb4] sm:$0xff]   ;;  %v6514_v26 = vld [vmem:[%s8496_s24 + $0x6c] sm:$0xf] }
 0x118   : > { %7710 = vmatmul.mubr.bf16.gmra.mrb[28].mxu0 %v6833_v32  ;;  %v9333_v56 = vsel %vm8619_vm5, %v6893_v39, %v5302_v40  ;;  %v6895_v63 = vrot.slane %v6857_v57, 9  ;;  %v6924_v0 = vcombine.low %v5296_v52, %v5299_v53  ;;  %v9337_v1 = vsel %vm8619_vm5, %v5304_v46, %v5305_v43  ;;  %v6515_v28 = vld [vmem:[%s8496_s24 + $0x70] sm:$0xf]  ;;  %v6516_v31 = vld [vmem:[%s8496_s24 + $0x74] sm:$0x1] }
 0x119   : > { %7729 = vmatprep.mubr.bf16.mxu0 %v6922_v29  ;;  %v5311_v62 = vrot.slane %v5309_v54, 4  ;;  %v5316_v2 = vrot.slane %v6858_v58, 5  ;;  %v5319_v3 = vrot.slane %v6859_v59, 5  ;;  %v6896_v9 = vrot.slane %v6860_v18, 9  ;;  %v6866_v35 = vld [vmem:[%s8496_s24 + $0x78] sm:$0xe] }
 0x11a   : > { %7506 = vmatmul.mubr.bf16.gmra.mrb[16].mxu1 %v8214_v6  ;;  %v9343_v6 = vsel %vm8619_vm5, %v6894_v51, %v5309_v54  ;;  %v5323_v10 = vrot.slane %v6861_v5, 5  ;;  %v5326_v12 = vrot.slane %v6862_v8, 5  ;;  %v6925_v14 = vcombine.low %v9333_v56, %v9337_v1  ;;  %v6867_v40 = vld [vmem:[%s8496_s24 + $0x7c] sm:$0xf]  ;;  %v6868_v27 = vld [vmem:[%s8496_s24 + $0x80] sm:$0x1] }
 0x11b   : > { %7509 = vmatprep.mubr.bf16.mxu1 %v8215_v16  ;;  %v9347_v7 = vsel %vm8619_vm5, %v5311_v62, %v5312_v55  ;;  %v9352_v60 = vsel %vm8619_vm5, %v6895_v63, %v5316_v2  ;;  %v5318_v11 = vrot.slane %v5316_v2, 4  ;;  %v6897_v21 = vrot.slane %v6863_v13, 9  ;;  %v6517_v45 = vld [vmem:[%s8496_s24 + $0x78] sm:$0xf]  ;;  %v6518_v51 = vld [vmem:[%s8496_s24 + $0x7c] sm:$0xf] }
 0x11c   : > { %v9360_v16 = vsel %vm8619_vm5, %v6896_v9, %v5323_v10  ;;  %v5325_v17 = vrot.slane %v5323_v10, 4  ;;  %v6926_v22 = vcombine.low %v9343_v6, %v9347_v7  ;;  %v5330_v24 = vrot.slane %v6864_v19, 5  ;;  %v6519_v57 = vld [vmem:[%s8496_s24 + $0x80] sm:$0x1]  ;;  %v6869_v62 = vld [vmem:[%s8496_s24 + $0x84] sm:$0xe] }
 0x11d   : > { %v9368_v47 = vsel %vm8619_vm5, %v5318_v11, %v5319_v3  ;;  %v5333_v25 = vrot.slane %v6865_v20, 5  ;;  %v2735_v32 = vshrl.u32 %v6514_v26, 16  ;;  %v2738_v34 = vshll.u32 %v6514_v26, 16  ;;  %v6870_v3 = vld [vmem:[%s8496_s24 + $0x88] sm:$0xf]  ;;  %v8220_v9 = vld [vmem:[%s8496_s24 + $0xc0] sm:$0xff]  }
 0x11e   : > { %v6927_v29 = vcombine.low %v9352_v60, %v9368_v47  ;;  %v9377_v30 = vsel %vm8619_vm5, %v5325_v17, %v5326_v12  ;;  %v9385_v37 = vsel %vm8619_vm5, %v6897_v21, %v5330_v24  ;;  %v5332_v38 = vrot.slane %v5330_v24, 4  ;;  %v6871_v8 = vld [vmem:[%s8496_s24 + $0x8c] sm:$0x1]  ;;  %v6521_v21 = vld [vmem:[%s8496_s24 + $0x88] sm:$0xf] }
 0x11f   : > { %v6928_v36 = vcombine.low %v9360_v16, %v9377_v30  ;;  %v2744_v39 = vshll.u32 %v6515_v28, 16  ;;  %v2740_v43 = vrot.slane %v2738_v34, 5  ;;  %v2748_v41 = vshrl.u32 %v6515_v28, 16 }
 0x120   : > { %7730 = vmatmul.mubr.bf16.vlgmr.msra.gmra.mrb[0].mxu0 %v6923_v61  ;;  %v2754_v44 = vshll.u32 %v6516_v31, 16  ;;  %v9392_v46 = vsel %vm8619_vm5, %v5332_v38, %v5333_v25  ;;  %v6898_v49 = vrot.slane %v6866_v35, 9  ;;  %v5337_v50 = vrot.slane %v6867_v40, 5  ;;  %v6522_v31 = vld [vmem:[%s8496_s24 + $0x8c] sm:$0x1] }
 0x121   : > { %7733 = vmatprep.mubr.bf16.mxu0 %v6924_v0  ;;  %v6929_v52 = vcombine.low %v9385_v37, %v9392_v46  ;;  %v2750_v54 = vrot.slane %v2748_v41, 4  ;;  %v5340_v61 = vrot.slane %v6868_v27, 5  ;;  %v2759_v56 = vshrl.u32 %v6517_v45, 16  ;;  %v6872_v27 = vld [vmem:[%s8496_s24 + $0x90] sm:$0xe] }
 0x122   : > { %7510 = vmatmul.mubr.bf16.gmra.mrb[20].mxu1 %v8216_v42  ;;  %v2737_v42 = vrot.slane %v2735_v32, 4  ;;  %v2756_v55 = vrot.slane %v2754_v44, 5  ;;  %v9400_v58 = vsel %vm8619_vm5, %v6898_v49, %v5337_v50  ;;  %v5339_v59 = vrot.slane %v5337_v50, 4 }
 0x123   : > { %7513 = vmatprep.mubr.bf16.mxu1 %v8217_v48  ;;  %v2746_v48 = vrot.slane %v2744_v39, 5  ;;  %v2762_v1 = vshll.u32 %v6517_v45, 16  ;;  %v2768_v2 = vshll.u32 %v6518_v51, 16  ;;  %v2761_v5 = vrot.slane %v2759_v56, 4  ;;  %v6873_v45 = vld [vmem:[%s8496_s24 + $0x94] sm:$0xf] }
 0x124   : > { %v2741_v53 = vor.u32 %v2740_v43, %v2737_v42  ;;  %v9406_v18 = vsel %vm8619_vm5, %v5339_v59, %v5340_v61  ;;  %v2772_v6 = vshrl.u32 %v6518_v51, 16  ;;  %v2778_v7 = vshll.u32 %v6519_v57, 16  ;;  %v6524_v57 = vld [vmem:[%s8496_s24 + $0x94] sm:$0xf] }
 0x125   : > { %v2751_v0 = vor.u32 %v2750_v54, %v2746_v48  ;;  %v6930_v12 = vcombine.low %v9400_v58, %v9406_v18  ;;  %v2764_v13 = vrot.slane %v2762_v1, 5  ;;  %v6899_v20 = vrot.slane %v6869_v62, 9  ;;  %v6523_v54 = vld [vmem:[%s8496_s24 + $0x90] sm:$0xf]  ;;  %v6875_v1 = vld [vmem:[%s8496_s24 + $0x9c] sm:$0xe] }
 0x126   : > { %v2742_v63 = vrot.slane %v2741_v53, 4  ;;  %v2774_v17 = vrot.slane %v2772_v6, 4  ;;  %v2780_v19 = vrot.slane %v2778_v7, 5  ;;  %v5344_v24 = vrot.slane %v6870_v3, 5  ;;  %v6874_v53 = vld [vmem:[%s8496_s24 + $0x98] sm:$0x1] }
 0x127   : > { %v2752_v11 = vrot.slane %v2751_v0, 4  ;;  %v5347_v25 = vrot.slane %v6871_v8, 5  ;;  %v2792_v40 = vshll.u32 %v6521_v21, 16  ;;  %v2796_v44 = vshrl.u32 %v6521_v21, 16  ;;  %v6876_v7 = vld [vmem:[%s8496_s24 + $0xa0] sm:$0xf] }
 0x128   : > { %7734 = vmatmul.mubr.bf16.gmra.mrb[4].mxu0 %v6925_v14  ;;  %v2747_v10 = vsel %vm8519_vm2, %v2742_v63, %v2746_v48  ;;  %v6520_v14 = vld [vmem:[%s8496_s24 + $0x84] sm:$0xf]  ;;  %v9421_v38 = vsel %vm8619_vm5, %v6899_v20, %v5344_v24  ;;  %v5346_v39 = vrot.slane %v5344_v24, 4  ;;  %v2802_v51 = vshll.u32 %v6522_v31, 16  ;;  %v6525_v63 = vld [vmem:[%s8496_s24 + $0x98] sm:$0x1] }
 0x129   : > { %7737 = vmatprep.mubr.bf16.mxu0 %v6926_v22  ;;  %v2757_v22 = vsel %vm8519_vm2, %v2752_v11, %v2756_v55  ;;  %v2783_v32 = vshrl.u32 %v6520_v14, 16  ;;  %v2786_v34 = vshll.u32 %v6520_v14, 16  ;;  %v2794_v50 = vrot.slane %v2792_v40, 5  ;;  %v6526_v20 = vld [vmem:[%s8496_s24 + $0x9c] sm:$0xf] }
 0x12a   : > { %7514 = vmatmul.mubr.bf16.gmra.mrb[24].mxu1 %v8218_v15  ;;  %v2770_v15 = vrot.slane %v2768_v2, 5  ;;  %v6562_v26 = vcombine.low %v2747_v10, %v2757_v22  ;;  %v9432_v49 = vsel %vm8619_vm5, %v5346_v39, %v5347_v25  ;;  %v2798_v55 = vrot.slane %v2796_v44, 4  ;;  %v6527_v25 = vld [vmem:[%s8496_s24 + $0xa0] sm:$0xf]  ;;  %v6528_v39 = vld [vmem:[%s8496_s24 + $0xa4] sm:$0x1] }
 0x12b   : > { %7517 = vmatprep.mubr.bf16.mxu1 %v8219_v23  ;;  %v2765_v23 = vor.u32 %v2764_v13, %v2761_v5  ;;  %v2785_v43 = vrot.slane %v2783_v32, 4  ;;  %v2788_v41 = vrot.slane %v2786_v34, 5  ;;  %v6931_v47 = vcombine.low %v9421_v38, %v9432_v49  ;;  %v6877_v13 = vld [vmem:[%s8496_s24 + $0xa4] sm:$0x1]  ;;  %v6879_v44 = vld [vmem:[%s8496_s24 + $0xac] sm:$0xf] }
 0x12c   : > { %v2775_v28 = vor.u32 %v2774_v17, %v2770_v15  ;;  %v2804_v61 = vrot.slane %v2802_v51, 5  ;;  %v6900_v56 = vrot.slane %v6872_v27, 9  ;;  %v5351_v62 = vrot.slane %v6873_v45, 5 }
 0x12d   : > { %v2766_v35 = vrot.slane %v2765_v23, 4  ;;  %v2799_v16 = vor.u32 %v2798_v55, %v2794_v50  ;;  %v5354_v30 = vrot.slane %v6874_v53, 5  ;;  %v2810_v5 = vshll.u32 %v6523_v54, 16  ;;  %v6880_v53 = vld [vmem:[%s8496_s24 + $0xb0] sm:$0x1] }
 0x12e   : > { %v2776_v42 = vrot.slane %v2775_v28, 4  ;;  %v9448_v2 = vsel %vm8619_vm5, %v6900_v56, %v5351_v62  ;;  %v5353_v3 = vrot.slane %v5351_v62, 4  ;;  %v2816_v6 = vshll.u32 %v6524_v57, 16 }
 0x12f   : > { %v2771_v48 = vsel %vm8519_vm2, %v2766_v35, %v2770_v15  ;;  %v2820_v11 = vshrl.u32 %v6524_v57, 16  ;;  %v2812_v15 = vrot.slane %v2810_v5, 5  ;;  %v6901_v24 = vrot.slane %v6875_v1, 9 }
 0x130   : > { %7738 = vmatmul.mubr.bf16.gmra.mrb[8].mxu0 %v6927_v29  ;;  %v2781_v60 = vsel %vm8519_vm2, %v2776_v42, %v2780_v19  ;;  %v2789_v29 = vor.u32 %v2788_v41, %v2785_v43  ;;  %v5355_v14 = vsel %vm8619_vm5, %v5353_v3, %v5354_v30  ;;  %v2818_v17 = vrot.slane %v2816_v6, 5  ;;  %v6878_v43 = vld [vmem:[%s8496_s24 + $0xa8] sm:$0xe] }
 0x131   : > { %7741 = vmatprep.mubr.bf16.mxu0 %v6928_v36  ;;  %v6563_v59 = vcombine.low %v2771_v48, %v2781_v60  ;;  %v2807_v36 = vshrl.u32 %v6523_v54, 16  ;;  %v2826_v19 = vshll.u32 %v6525_v63, 16  ;;  %v6932_v22 = vcombine.low %v9448_v2, %v5355_v14  ;;  %v6529_v54 = vld [vmem:[%s8496_s24 + $0xa8] sm:$0xf]  ;;  %v6881_v2 = vld [vmem:[%s8496_s24 + $0xb4] sm:$0xe] }
 0x132   : > { %7518 = vmatmul.mubr.bf16.gmra.mrb[28].mxu1 %v8220_v9  ;;  %v2790_v0 = vrot.slane %v2789_v29, 4  ;;  %v2800_v9 = vrot.slane %v2799_v16, 4  ;;  %v2822_v23 = vrot.slane %v2820_v11, 4  ;;  %v5358_v32 = vrot.slane %v6876_v7, 5  ;;  %v6883_v14 = vld [vmem:[%s8496_s24 + $0xbc] sm:$0x1] }
 0x133   : > { %7553 = vmatprep.mubr.bf16.mxu1 %v6562_v26  ;;  %v2809_v10 = vrot.slane %v2807_v36, 4  ;;  %v2828_v31 = vrot.slane %v2826_v19, 5  ;;  %v5361_v35 = vrot.slane %v6877_v13, 5  ;;  %v2831_v40 = vshrl.u32 %v6526_v20, 16 }
 0x134   : > { %v2795_v8 = vsel %vm8519_vm2, %v2790_v0, %v2794_v50  ;;  %v2805_v21 = vsel %vm8519_vm2, %v2800_v9, %v2804_v61  ;;  %v2823_v34 = vor.u32 %v2822_v23, %v2818_v17  ;;  %v2834_v27 = vshll.u32 %v6526_v20, 16  ;;  %v6531_v0 = vld [vmem:[%s8496_s24 + $0xb0] sm:$0x1]  ;;  %v6533_v23 = vld [vmem:[%s8496_s24 + $0xb8] sm:$0xf] }
 0x135   : > { %v6564_v26 = vcombine.low %v2795_v8, %v2805_v21  ;;  %v2813_v28 = vor.u32 %v2812_v15, %v2809_v10  ;;  %v9470_v46 = vsel %vm8619_vm5, %v6901_v24, %v5358_v32  ;;  %v2840_v42 = vshll.u32 %v6527_v25, 16  ;;  %v6882_v8 = vld [vmem:[%s8496_s24 + $0xb8] sm:$0xf] }
 0x136   : > { %v2824_v58 = vrot.slane %v2823_v34, 4  ;;  %v2833_v18 = vrot.slane %v2831_v40, 4  ;;  %v2844_v41 = vshrl.u32 %v6527_v25, 16  ;;  %v2850_v51 = vshll.u32 %v6528_v39, 16  ;;  %v6534_v34 = vld [vmem:[%s8496_s24 + $0xbc] sm:$0x1] }
 0x137   : > { %v2814_v37 = vrot.slane %v2813_v28, 4  ;;  %v2842_v50 = vrot.slane %v2840_v42, 5  ;;  %v6902_v62 = vrot.slane %v6878_v43, 9  ;;  %v5365_v63 = vrot.slane %v6879_v44, 5 }
 0x138   : > { %7742 = vmatmul.mubr.bf16.gmra.mrb[12].mxu0 %v6929_v52  ;;  %v5360_v52 = vrot.slane %v5358_v32, 4  ;;  %v2829_v60 = vsel %vm8519_vm2, %v2824_v58, %v2828_v31  ;;  %v2846_v57 = vrot.slane %v2844_v41, 4  ;;  %v2852_v56 = vrot.slane %v2850_v51, 5  ;;  %v6535_v51 = vld [vmem:[%s8496_s24 + $0xc0] sm:$0xf] }
 0x139   : > { %7745 = vmatprep.mubr.bf16.mxu0 %v6930_v12  ;;  %v2836_v12 = vrot.slane %v2834_v27, 5  ;;  %v2819_v45 = vsel %vm8519_vm2, %v2814_v37, %v2818_v17  ;;  %v5368_v36 = vrot.slane %v6880_v53, 5  ;;  %v2855_v1 = vshrl.u32 %v6529_v54, 16  ;;  %v6532_v17 = vld [vmem:[%s8496_s24 + $0xb4] sm:$0xf] }
 0x13a   : > { %7554 = vmatmul.mubr.bf16.vlgmr.msra.gmra.mrb[16].mxu1 %v6563_v59  ;;  %v9478_v48 = vsel %vm8619_vm5, %v5360_v52, %v5361_v35  ;;  %v6530_v59 = vld [vmem:[%s8496_s24 + $0xac] sm:$0xf]  ;;  %v6565_v61 = vcombine.low %v2819_v45, %v2829_v60  ;;  %v2847_v30 = vor.u32 %v2846_v57, %v2842_v50  ;;  %v5366_v3 = vsel %vm8619_vm5, %v6902_v62, %v5365_v63  ;;  %v6884_v52 = vld [vmem:[%s8496_s24 + $0xc0] sm:$0xe] }
 0x13b   : > { %7557 = vmatprep.mubr.bf16.mxu1 %v6564_v26  ;;  %v6933_v29 = vcombine.low %v9470_v46, %v9478_v48  ;;  %v2837_v55 = vor.u32 %v2836_v12, %v2833_v18  ;;  %v5367_v5 = vrot.slane %v5365_v63, 4  ;;  %v2858_v6 = vshll.u32 %v6529_v54, 16  ;;  %v6885_v12 = vld [vmem:[%s8496_s24 + $0xc4] sm:$0xf] }
 0x13c   : > { %v2864_v7 = vshll.u32 %v6530_v59, 16  ;;  %v2848_v10 = vrot.slane %v2847_v30, 4  ;;  %v2857_v11 = vrot.slane %v2855_v1, 4  ;;  %v2868_v13 = vshrl.u32 %v6530_v59, 16 }
 0x13d   : > { %v2838_v16 = vrot.slane %v2837_v55, 4  ;;  %v5369_v38 = vsel %vm8619_vm5, %v5367_v5, %v5368_v36  ;;  %v2860_v49 = vrot.slane %v2858_v6, 5  ;;  %v2874_v15 = vshll.u32 %v6531_v0, 16  ;;  %v6887_v5 = vld [vmem:[%s8496_s24 + $0xcc] sm:$0xe] }
 0x13e   : > { %v2853_v19 = vsel %vm8519_vm2, %v2848_v10, %v2852_v56  ;;  %v6934_v20 = vcombine.low %v5366_v3, %v5369_v38  ;;  %v2870_v21 = vrot.slane %v2868_v13, 4  ;;  %v5372_v28 = vrot.slane %v6882_v8, 5  ;;  %v6888_v10 = vld [vmem:[%s8496_s24 + $0xd0] sm:$0xf] }
 0x13f   : > { %v2843_v9 = vsel %vm8519_vm2, %v2838_v16, %v2842_v50  ;;  %v2861_v25 = vor.u32 %v2860_v49, %v2857_v11  ;;  %v2876_v26 = vrot.slane %v2874_v15, 5  ;;  %v5375_v32 = vrot.slane %v6883_v14, 5  ;;  %v6886_v50 = vld [vmem:[%s8496_s24 + $0xc8] sm:$0x1]  ;;  %v6889_v49 = vld [vmem:[%s8496_s24 + $0xd4] sm:$0x1] }
 0x140   : > { %7746 = vmatmul.mubr.bf16.gmra.mrb[16].mxu0 %v6931_v47  ;;  %v2866_v47 = vrot.slane %v2864_v7, 5  ;;  %v6566_v24 = vcombine.low %v2843_v9, %v2853_v19  ;;  %v2879_v35 = vshrl.u32 %v6532_v17, 16  ;;  %v2882_v39 = vshll.u32 %v6532_v17, 16  ;;  %v6537_v16 = vld [vmem:[%s8496_s24 + $0xc8] sm:$0x1] }
 0x141   : > { %7749 = vmatprep.mubr.bf16.mxu0 %v6932_v22  ;;  %v6903_v22 = vrot.slane %v6881_v2, 9  ;;  %v2862_v40 = vrot.slane %v2861_v25, 4  ;;  %v5374_v37 = vrot.slane %v5372_v28, 4  ;;  %v2888_v46 = vshll.u32 %v6533_v23, 16 }
 0x142   : > { %7558 = vmatmul.mubr.bf16.gmra.mrb[20].mxu1 %v6565_v61  ;;  %v2871_v31 = vor.u32 %v2870_v21, %v2866_v47  ;;  %v2881_v43 = vrot.slane %v2879_v35, 4  ;;  %v2884_v58 = vrot.slane %v2882_v39, 5  ;;  %v2892_v18 = vshrl.u32 %v6533_v23, 16 }
 0x143   : > { %7561 = vmatprep.mubr.bf16.mxu1 %v6566_v24  ;;  %v5373_v27 = vsel %vm8619_vm5, %v6903_v22, %v5372_v28  ;;  %v2867_v41 = vsel %vm8519_vm2, %v2862_v40, %v2866_v47  ;;  %v5376_v44 = vsel %vm8619_vm5, %v5374_v37, %v5375_v32  ;;  %v2890_v45 = vrot.slane %v2888_v46, 5 }
 0x144   : > { %v2872_v42 = vrot.slane %v2871_v31, 4  ;;  %v2898_v48 = vshll.u32 %v6534_v34, 16  ;;  %v6935_v54 = vcombine.low %v5373_v27, %v5376_v44  ;;  %v2885_v60 = vor.u32 %v2884_v58, %v2881_v43 }
 0x145   : > { %v2894_v55 = vrot.slane %v2892_v18, 4  ;;  %v6904_v61 = vrot.slane %v6884_v52, 9  ;;  %v5379_v56 = vrot.slane %v6885_v12, 5  ;;  %v5382_v0 = vrot.slane %v6886_v50, 5 }
 0x146   : > { %v2877_v53 = vsel %vm8519_vm2, %v2872_v42, %v2876_v26  ;;  %v2900_v59 = vrot.slane %v2898_v48, 5  ;;  %v2886_v62 = vrot.slane %v2885_v60, 4  ;;  %v2903_v30 = vshrl.u32 %v6535_v51, 16 }
 0x147   : > { %v6567_v57 = vcombine.low %v2867_v41, %v2877_v53  ;;  %v2895_v63 = vor.u32 %v2894_v55, %v2890_v45  ;;  %v5380_v36 = vsel %vm8619_vm5, %v6904_v61, %v5379_v56  ;;  %v5381_v1 = vrot.slane %v5379_v56, 4 }
 0x148   : > { %7750 = vmatmul.mubr.bf16.gmra.mrb[20].mxu0 %v6933_v29  ;;  %v6536_v29 = vld [vmem:[%s8496_s24 + $0xc4] sm:$0xf]  ;;  %v2906_v2 = vshll.u32 %v6535_v51, 16  ;;  %v2891_v6 = vsel %vm8519_vm2, %v2886_v62, %v2890_v45  ;;  %v2905_v8 = vrot.slane %v2903_v30, 4  ;;  %v2922_v38 = vshll.u32 %v6537_v16, 16  ;;  %s9549_s24 = sand.u32 1, %s8351_s16  }
 0x149   : > { %7753 = vmatprep.mubr.bf16.mxu0 %v6934_v20  ;;  %v2912_v3 = vshll.u32 %v6536_v29, 16  ;;  %v2896_v7 = vrot.slane %v2895_v63, 4  ;;  %v2916_v9 = vshrl.u32 %v6536_v29, 16  ;;  %v5383_v11 = vsel %vm8619_vm5, %v5381_v1, %v5382_v0  ;;  %s6296_s10 = sshll.u32 %s9549_s24, 7  ;;  %s6080_s30 = scalar_lea.sflag [#allocation4], %s9549_s24 }
 0x14a   : > { %7562 = vmatmul.mubr.bf16.gmra.mrb[24].mxu1 %v6567_v57  ;;  %v2908_v13 = vrot.slane %v2906_v2, 5  ;;  %v6936_v15 = vcombine.low %v5380_v36, %v5383_v11  ;;  %v6905_v19 = vrot.slane %v6887_v5, 9  ;;  %v5386_v22 = vrot.slane %v6888_v10, 5  ;;  %s9552_s11 = scalar_lea.vmem [#allocation3], %s6296_s10 }
 0x14b   : > { %v2914_v14 = vrot.slane %v2912_v3, 5  ;;  %v2901_v47 = vsel %vm8519_vm2, %v2896_v7, %v2900_v59  ;;  %v2918_v17 = vrot.slane %v2916_v9, 4  ;;  %v2924_v24 = vrot.slane %v2922_v38, 5  ;;  %s6102_s13 = sshll.u32 %s9552_s11, 4  ;;  %s9580_s13 = int_to_ptr.vmem [resolvable:$true] %s6102_s13 }
 0x14c   : > { %v6568_v20 = vcombine.low %v2891_v6, %v2901_v47  ;;  %v2909_v21 = vor.u32 %v2908_v13, %v2905_v8  ;;  %v5389_v25 = vrot.slane %v6889_v49, 5  ;;  %v5387_v28 = vsel %vm8619_vm5, %v6905_v19, %v5386_v22  ;;  %s8229_s5 = scalar_lea.vmem %s9580_s13, 2048  ;;  %p8236_p1 = scmp.lt.s32.totalorder %s9580_s13, %s8234_s7 }
 0x14d   : > { %v2919_v23 = vor.u32 %v2918_v17, %v2914_v14  ;;  %v5388_v31 = vrot.slane %v5386_v22, 4  ;;  %p8230_p12 = scmp.ne.s32.totalorder %s9580_s13, %s8229_s5  ;;  %p8237_p2 = scmp.lt.s32.totalorder %s8235_s8, %s8229_s5 }
 0x14e   : > { %7565 = vmatprep.mubr.bf16.mxu1 %v6568_v20  ;;  %v2910_v26 = vrot.slane %v2909_v21, 4 }
 0x14f   : > { %v2920_v32 = vrot.slane %v2919_v23, 4  ;;  %v5390_v35 = vsel %vm8619_vm5, %v5388_v31, %v5389_v25  ;;  %p8231_p13 = pnand %p8230_p12, %p8441_p4  ;;  %p8238_p3 = por %p8237_p2, %p8236_p1 }
 0x150   : > { %7754 = vmatmul.mubr.bf16.gmra.mrb[24].mxu0 %v6935_v54  ;;  %v2915_v34 = vsel %vm8519_vm2, %v2910_v26, %v2914_v14  ;;  %v6937_v40 = vcombine.low %v5387_v28, %v5390_v35 }
 0x151   : > { %7757 = vmatprep.mubr.bf16.mxu0 %v6936_v15  ;;  %v2925_v39 = vsel %vm8519_vm2, %v2920_v32, %v2924_v24  ;;  %p8232_p0 = pneg %p8231_p13 }
 0x152   : > { %v6569_v27 = vcombine.low %v2915_v34, %v2925_v39 }
 0x153   : > { %p8239_p5 = pnand %p8238_p3, %p8232_p0 }
 0x154   : > { %7566 = vmatmul.mubr.bf16.gmra.mrb[28].mxu1 %v6569_v27 }
 0x158   : > { %7758 = vmatmul.mubr.bf16.gmra.mrb[28].mxu0 %v6937_v40 }
 0x1cd   : > { %v7491_v37 = vpop.f32.mrb[0].mxu1 }
 0x1ce   : > { %v2271_v46 = vpop.f32.mrb[1].mxu1 }
 0x1cf   : > { %v7492_v52 = vpop.f32.mrb[2].mxu1 }
 0x1d0   : > { %v2274_v42 = vpop.f32.mrb[3].mxu1 }
 0x1d5   : > { %v7495_v43 = vpop.f32.mrb[4].mxu1 }
 0x1d6   : > { %v2287_v58 = vpop.f32.mrb[5].mxu1 }
 0x1d7   : > { %v7496_v18 = vpop.f32.mrb[6].mxu1 }
 0x1d8   : > { %v2290_v12 = vpop.f32.mrb[7].mxu1 }
 0x1dd   : > { %v7499_v41 = vpop.f32.mrb[8].mxu1 }
 0x1de   : > { %v2303_v44 = vpop.f32.mrb[9].mxu1 }
 0x1df   : > { %v7500_v4 = vpop.f32.mrb[10].mxu1 }
 0x1e0   : > { %v9538_v45 = vpop.f32.mrb[11].mxu1 }
 0x1e5   : > { %v9540_v33 = vpop.f32.mrb[12].mxu1 }
 0x1e6   : > { %v9542_v48 = vpop.f32.mrb[13].mxu1 }
 0x1e7   : > { %v9544_v50 = vpop.f32.mrb[14].mxu1 }
 0x1e8   : > { %v9546_v51 = vpop.f32.mrb[15].mxu1 }
 0x1f3   : > { %v7731_v53 = vpop.f32.mrb[0].mxu0 }
 0x1f4   : > { %v7777_v54 = vadd.f32 %v7731_v53, %v7491_v37  ;;  %v5556_v60 = vpop.f32.mrb[1].mxu0 }
 0x1f5   : > { %v7778_v55 = vadd.f32 %v5556_v60, %v2271_v46  ;;  %v7732_v29 = vpop.f32.mrb[2].mxu0 }
 0x1f6   : > { %v7779_v57 = vadd.f32 %v7732_v29, %v7492_v52  ;;  %v5559_v59 = vpop.f32.mrb[3].mxu0  ;;  %v5851_v30 = vmul.f32 %v7777_v54, %v7777_v54 }
 0x1f7   : > { %v7780_v61 = vadd.f32 %v5559_v59, %v2274_v42  ;;  %v5849_v62 = vmul.f32 %v7778_v55, %v7778_v55 }
 0x1f8   : > { %v7026_v56 = vpack.c.bf16 %v7779_v57, %v7777_v54  ;;  %v5852_v6 = vmul.f32 %v7779_v57, %v7779_v57 }
 0x1f9   : > { %v5811_v63 = vadd.f32 %v7780_v61, %v7778_v55  ;;  %v5850_v0 = vmul.f32 %v7780_v61, %v7780_v61  ;;  %v7021_v16 = vpack.c.bf16 %v7780_v61, %v7778_v55 }
 0x1fa   : > { %7098 = vst [vmem:[%s9552_s11 + $0x8] sm:$0xff] %v7026_v56  }
 0x1fb   : > { %v5812_v36 = vadd.f32 %v7777_v54, %v5811_v63  ;;  %v5881_v1 = vadd.f32 %v5850_v0, %v5849_v62  ;;  %7022 = vst [vmem:[%s9552_s11] sm:$0xff] %v7021_v16   ;;  %v7735_v2 = vpop.f32.mrb[4].mxu0 }
 0x1fc   : > { %v7781_v3 = vadd.f32 %v7735_v2, %v7495_v43  ;;  %v5572_v5 = vpop.f32.mrb[5].mxu0 }
 0x1fd   : > { %v5882_v7 = vadd.f32 %v5881_v1, %v5851_v30  ;;  %v7782_v8 = vadd.f32 %v5572_v5, %v2287_v58  ;;  %v5813_v9 = vadd.f32 %v7779_v57, %v5812_v36  ;;  %v7736_v10 = vpop.f32.mrb[6].mxu0 }
 0x1fe   : > { %v7783_v11 = vadd.f32 %v7736_v10, %v7496_v18  ;;  %v5575_v13 = vpop.f32.mrb[7].mxu0  ;;  %v5855_v22 = vmul.f32 %v7781_v3, %v7781_v3 }
 0x1ff   : > { %v5814_v14 = vadd.f32 %v7782_v8, %v5813_v9  ;;  %v5853_v38 = vmul.f32 %v7782_v8, %v7782_v8  ;;  %v5883_v49 = vadd.f32 %v5882_v7, %v5852_v6  ;;  %v7784_v47 = vadd.f32 %v5575_v13, %v2290_v12 }
 0x200   : > { %v7036_v15 = vpack.c.bf16 %v7783_v11, %v7781_v3  ;;  %v5856_v31 = vmul.f32 %v7783_v11, %v7783_v11 }
 0x201   : > { %v5884_v17 = vadd.f32 %v5883_v49, %v5853_v38  ;;  %v5815_v19 = vadd.f32 %v7784_v47, %v5814_v14  ;;  %v5854_v20 = vmul.f32 %v7784_v47, %v7784_v47  ;;  %v7031_v21 = vpack.c.bf16 %v7784_v47, %v7782_v8 }
 0x202   : > { %7100 = vst [vmem:[%s9552_s11 + $0x18] sm:$0xff] %v7036_v15  }
 0x203   : > { %v5816_v23 = vadd.f32 %v7781_v3, %v5815_v19  ;;  %v5885_v24 = vadd.f32 %v5884_v17, %v5854_v20  ;;  %7099 = vst [vmem:[%s9552_s11 + $0x10] sm:$0xff] %v7031_v21   ;;  %v7739_v25 = vpop.f32.mrb[8].mxu0 }
 0x204   : > { %v7785_v26 = vadd.f32 %v7739_v25, %v7499_v41  ;;  %v5588_v28 = vpop.f32.mrb[9].mxu0 }
 0x205   : > { %v5886_v32 = vadd.f32 %v5885_v24, %v5855_v22  ;;  %v7786_v34 = vadd.f32 %v5588_v28, %v2303_v44  ;;  %v5817_v35 = vadd.f32 %v7783_v11, %v5816_v23  ;;  %v7740_v39 = vpop.f32.mrb[10].mxu0 }
 0x206   : > { %v7787_v40 = vadd.f32 %v7740_v39, %v7500_v4  ;;  %v5591_v27 = vpop.f32.mrb[11].mxu0  ;;  %v5859_v60 = vmul.f32 %v7785_v26, %v7785_v26 }
 0x207   : > { %v5818_v37 = vadd.f32 %v7786_v34, %v5817_v35  ;;  %v5857_v46 = vmul.f32 %v7786_v34, %v7786_v34  ;;  %v5887_v52 = vadd.f32 %v5886_v32, %v5856_v31  ;;  %v7788_v42 = vadd.f32 %v5591_v27, %v9538_v45 }
 0x208   : > { %v7046_v43 = vpack.c.bf16 %v7787_v40, %v7785_v26  ;;  %v5860_v56 = vmul.f32 %v7787_v40, %v7787_v40 }
 0x209   : > { %v5888_v58 = vadd.f32 %v5887_v52, %v5857_v46  ;;  %v5819_v18 = vadd.f32 %v7788_v42, %v5818_v37  ;;  %v5858_v12 = vmul.f32 %v7788_v42, %v7788_v42  ;;  %v7041_v41 = vpack.c.bf16 %v7788_v42, %v7786_v34 }
 0x20a   : > { %7102 = vst [vmem:[%s9552_s11 + $0x28] sm:$0xff] %v7046_v43  }
 0x20b   : > { %v5820_v44 = vadd.f32 %v7785_v26, %v5819_v18  ;;  %v5889_v55 = vadd.f32 %v5888_v58, %v5858_v12  ;;  %7101 = vst [vmem:[%s9552_s11 + $0x20] sm:$0xff] %v7041_v41   ;;  %v7743_v4 = vpop.f32.mrb[12].mxu0 }
 0x20c   : > { %v7789_v57 = vadd.f32 %v7743_v4, %v9540_v33  ;;  %v5604_v59 = vpop.f32.mrb[13].mxu0 }
 0x20d   : > { %v7555_v53 = vpop.f32.mrb[16].mxu1  ;;  %v5890_v45 = vadd.f32 %v5889_v55, %v5859_v60  ;;  %v7790_v62 = vadd.f32 %v5604_v59, %v9542_v48  ;;  %v5821_v63 = vadd.f32 %v7787_v40, %v5820_v44  ;;  %v7744_v0 = vpop.f32.mrb[14].mxu0 }
 0x20e   : > { %v3155_v54 = vpop.f32.mrb[17].mxu1  ;;  %v7791_v16 = vadd.f32 %v7744_v0, %v9544_v50  ;;  %v5607_v30 = vpop.f32.mrb[15].mxu0  ;;  %v5863_v9 = vmul.f32 %v7789_v57, %v7789_v57 }
 0x20f   : > { %v7556_v29 = vpop.f32.mrb[18].mxu1  ;;  %v5822_v36 = vadd.f32 %v7790_v62, %v5821_v63  ;;  %v5861_v1 = vmul.f32 %v7790_v62, %v7790_v62  ;;  %v5891_v2 = vadd.f32 %v5890_v45, %v5860_v56  ;;  %v7792_v3 = vadd.f32 %v5607_v30, %v9546_v51 }
 0x210   : > { %v3158_v61 = vpop.f32.mrb[19].mxu1  ;;  %v7056_v5 = vpack.c.bf16 %v7791_v16, %v7789_v57  ;;  %v5864_v49 = vmul.f32 %v7791_v16, %v7791_v16 }
 0x211   : > { %v5892_v33 = vadd.f32 %v5891_v2, %v5861_v1  ;;  %v5823_v6 = vadd.f32 %v7792_v3, %v5822_v36  ;;  %v5862_v7 = vmul.f32 %v7792_v3, %v7792_v3  ;;  %v7051_v8 = vpack.c.bf16 %v7792_v3, %v7790_v62 }
 0x212   : > { %7104 = vst [vmem:[%s9552_s11 + $0x38] sm:$0xff] %v7056_v5  }
 0x213   : > { %v5824_v10 = vadd.f32 %v7789_v57, %v5823_v6  ;;  %v5893_v48 = vadd.f32 %v5892_v33, %v5862_v7  ;;  %7103 = vst [vmem:[%s9552_s11 + $0x30] sm:$0xff] %v7051_v8   ;;  %v7747_v11 = vpop.f32.mrb[16].mxu0 }
 0x214   : > { %v7793_v14 = vadd.f32 %v7747_v11, %v7555_v53  ;;  %v5620_v50 = vpop.f32.mrb[17].mxu0 }
 0x215   : > { %v7559_v13 = vpop.f32.mrb[20].mxu1  ;;  %v5894_v47 = vadd.f32 %v5893_v48, %v5863_v9  ;;  %v7794_v15 = vadd.f32 %v5620_v50, %v3155_v54  ;;  %v5825_v51 = vadd.f32 %v7791_v16, %v5824_v10  ;;  %v7748_v17 = vpop.f32.mrb[18].mxu0 }
 0x216   : > { %v3171_v38 = vpop.f32.mrb[21].mxu1  ;;  %v7795_v20 = vadd.f32 %v7748_v17, %v7556_v29  ;;  %v5623_v21 = vpop.f32.mrb[19].mxu0  ;;  %v5867_v39 = vmul.f32 %v7793_v14, %v7793_v14 }
 0x217   : > { %v7560_v19 = vpop.f32.mrb[22].mxu1  ;;  %v5826_v23 = vadd.f32 %v7794_v15, %v5825_v51  ;;  %v5865_v24 = vmul.f32 %v7794_v15, %v7794_v15  ;;  %v5895_v25 = vadd.f32 %v5894_v47, %v5864_v49  ;;  %v7796_v26 = vadd.f32 %v5623_v21, %v3158_v61 }
 0x218   : > { %v3174_v22 = vpop.f32.mrb[23].mxu1  ;;  %v7066_v28 = vpack.c.bf16 %v7795_v20, %v7793_v14  ;;  %v5868_v42 = vmul.f32 %v7795_v20, %v7795_v20 }
 0x219   : > { %v5896_v31 = vadd.f32 %v5895_v25, %v5865_v24  ;;  %v5827_v32 = vadd.f32 %v7796_v26, %v5826_v23  ;;  %v5866_v34 = vmul.f32 %v7796_v26, %v7796_v26  ;;  %v7061_v35 = vpack.c.bf16 %v7796_v26, %v7794_v15 }
 0x21a   : > { %7106 = vst [vmem:[%s9552_s11 + $0x48] sm:$0xff] %v7066_v28  }
 0x21b   : > { %v5828_v40 = vadd.f32 %v7793_v14, %v5827_v32  ;;  %v5897_v27 = vadd.f32 %v5896_v31, %v5866_v34  ;;  %7105 = vst [vmem:[%s9552_s11 + $0x40] sm:$0xff] %v7061_v35   ;;  %v7751_v37 = vpop.f32.mrb[20].mxu0 }
 0x21c   : > { %v7797_v46 = vadd.f32 %v7751_v37, %v7559_v13  ;;  %v5636_v52 = vpop.f32.mrb[21].mxu0 }
 0x21d   : > { %v5898_v43 = vadd.f32 %v5897_v27, %v5867_v39  ;;  %v7798_v58 = vadd.f32 %v5636_v52, %v3171_v38  ;;  %v5829_v18 = vadd.f32 %v7795_v20, %v5828_v40  ;;  %v7752_v12 = vpop.f32.mrb[22].mxu0  ;;  %v7563_v4 = vpop.f32.mrb[24].mxu1 }
 0x21e   : > { %v7799_v41 = vadd.f32 %v7752_v12, %v7560_v19  ;;  %v5639_v53 = vpop.f32.mrb[23].mxu0  ;;  %v3187_v57 = vpop.f32.mrb[25].mxu1  ;;  %v5871_v0 = vmul.f32 %v7797_v46, %v7797_v46 }
 0x21f   : > { %v5830_v54 = vadd.f32 %v7798_v58, %v5829_v18  ;;  %v5869_v60 = vmul.f32 %v7798_v58, %v7798_v58  ;;  %v5899_v44 = vadd.f32 %v5898_v43, %v5868_v42  ;;  %v7800_v55 = vadd.f32 %v5639_v53, %v3174_v22  ;;  %v7564_v62 = vpop.f32.mrb[26].mxu1 }
 0x220   : > { %v7076_v29 = vpack.c.bf16 %v7799_v41, %v7797_v46  ;;  %v3190_v63 = vpop.f32.mrb[27].mxu1  ;;  %v5872_v3 = vmul.f32 %v7799_v41, %v7799_v41 }
 0x221   : > { %v5900_v59 = vadd.f32 %v5899_v44, %v5869_v60  ;;  %v5831_v61 = vadd.f32 %v7800_v55, %v5830_v54  ;;  %v5870_v56 = vmul.f32 %v7800_v55, %v7800_v55  ;;  %v7071_v45 = vpack.c.bf16 %v7800_v55, %v7798_v58 }
 0x222   : > { %7108 = vst [vmem:[%s9552_s11 + $0x58] sm:$0xff] %v7076_v29  }
 0x223   : > { %v5832_v16 = vadd.f32 %v7797_v46, %v5831_v61  ;;  %v5901_v30 = vadd.f32 %v5900_v59, %v5870_v56  ;;  %7107 = vst [vmem:[%s9552_s11 + $0x50] sm:$0xff] %v7071_v45   ;;  %v7755_v36 = vpop.f32.mrb[24].mxu0 }
 0x224   : > { %v7801_v1 = vadd.f32 %v7755_v36, %v7563_v4  ;;  %v5652_v2 = vpop.f32.mrb[25].mxu0 }
 0x225   : > { %v5902_v5 = vadd.f32 %v5901_v30, %v5871_v0  ;;  %v7802_v33 = vadd.f32 %v5652_v2, %v3187_v57  ;;  %v5833_v6 = vadd.f32 %v7799_v41, %v5832_v16  ;;  %v7756_v7 = vpop.f32.mrb[26].mxu0 }
 0x226   : > { %v7803_v8 = vadd.f32 %v7756_v7, %v7564_v62  ;;  %v5655_v9 = vpop.f32.mrb[27].mxu0  ;;  %v5875_v15 = vmul.f32 %v7801_v1, %v7801_v1 }
 0x227   : > { %v5834_v10 = vadd.f32 %v7802_v33, %v5833_v6  ;;  %v5873_v48 = vmul.f32 %v7802_v33, %v7802_v33  ;;  %v5903_v11 = vadd.f32 %v5902_v5, %v5872_v3  ;;  %v7804_v13 = vadd.f32 %v5655_v9, %v3190_v63  ;;  %v7567_v19 = vpop.f32.mrb[28].mxu1 }
 0x228   : > { %v7086_v14 = vpack.c.bf16 %v7803_v8, %v7801_v1  ;;  %v3203_v22 = vpop.f32.mrb[29].mxu1  ;;  %v5876_v24 = vmul.f32 %v7803_v8, %v7803_v8 }
 0x229   : > { %v5904_v50 = vadd.f32 %v5903_v11, %v5873_v48  ;;  %v5835_v38 = vadd.f32 %v7804_v13, %v5834_v10  ;;  %v5874_v49 = vmul.f32 %v7804_v13, %v7804_v13  ;;  %v7081_v47 = vpack.c.bf16 %v7804_v13, %v7802_v33  ;;  %v7568_v31 = vpop.f32.mrb[30].mxu1 }
 0x22a   : > { %7110 = vst [vmem:[%s9552_s11 + $0x68] sm:$0xff] %v7086_v14   ;;  %v3206_v35 = vpop.f32.mrb[31].mxu1 }
 0x22b   : > { %v5836_v51 = vadd.f32 %v7801_v1, %v5835_v38  ;;  %v5905_v17 = vadd.f32 %v5904_v50, %v5874_v49  ;;  %7109 = vst [vmem:[%s9552_s11 + $0x60] sm:$0xff] %v7081_v47   ;;  %v7759_v20 = vpop.f32.mrb[28].mxu0 }
 0x22c   : > { %v7805_v21 = vadd.f32 %v7759_v20, %v7567_v19  ;;  %v5668_v23 = vpop.f32.mrb[29].mxu0 }
 0x22d   : > { %v5906_v25 = vadd.f32 %v5905_v17, %v5875_v15  ;;  %v7806_v26 = vadd.f32 %v5668_v23, %v3203_v22  ;;  %v5837_v28 = vadd.f32 %v7803_v8, %v5836_v51  ;;  %v7760_v32 = vpop.f32.mrb[30].mxu0 }
 0x22e   : > { %v7807_v34 = vadd.f32 %v7760_v32, %v7568_v31  ;;  %v5671_v39 = vpop.f32.mrb[31].mxu0  ;;  %v5879_v12 = vmul.f32 %v7805_v21, %v7805_v21 }
 0x22f   : > { %v5838_v40 = vadd.f32 %v7806_v26, %v5837_v28  ;;  %v5877_v27 = vmul.f32 %v7806_v26, %v7806_v26  ;;  %v5907_v37 = vadd.f32 %v5906_v25, %v5876_v24  ;;  %v7808_v46 = vadd.f32 %v5671_v39, %v3206_v35 }
 0x230   : > { %v7096_v52 = vpack.c.bf16 %v7807_v34, %v7805_v21 }
 0x231   : > { %v5908_v42 = vadd.f32 %v5907_v37, %v5877_v27  ;;  %v5839_v43 = vadd.f32 %v7808_v46, %v5838_v40  ;;  %v5878_v58 = vmul.f32 %v7808_v46, %v7808_v46  ;;  %v7091_v18 = vpack.c.bf16 %v7808_v46, %v7806_v26 }
 0x232   : > { %7112 = vst [vmem:[%s9552_s11 + $0x78] sm:$0xff] %v7096_v52  }
 0x233   : > { %v5840_v41 = vadd.f32 %v7805_v21, %v5839_v43  ;;  %v5909_v53 = vadd.f32 %v5908_v42, %v5878_v58  ;;  %7111 = vst [vmem:[%s9552_s11 + $0x70] sm:$0xff] %v7091_v18  }
 0x234   : > { %8242 = shalt.err (!%p8239_p5)
}
 0x235   : > { %s8243_s9 = scalar_lea.hbm %s9578_s29, 2048  ;;  %s8247_s12 = scalar_lea.hbm %s9706_s2, 4096 }
 0x236   : > { %p8244_p6 = scmp.ne.s32.totalorder %s9578_s29, %s8243_s9  ;;  %p8248_p10 = scmp.lt.u32.totalorder %s9578_s29, %s9706_s2 }
 0x237   : > { %p8249_p11 = scmp.lt.u32.totalorder %s8247_s12, %s8243_s9  ;;  %p8251_p13 = scmp.lt.u32.totalorder %s8243_s9, %s9578_s29 }
 0x238   : > { %p8245_p7 = pnand %p8244_p6, %p8441_p4 }
 0x239   : > { %p8250_p12 = por %p8249_p11, %p8248_p10 }
 0x23a   : > { %p8246_p9 = pneg %p8245_p7 }
 0x23b   : > { %p8252_p0 = por %p8251_p13, %p8250_p12 }
 0x23d   : > { %p8253_p1 = pnand %p8252_p0, %p8246_p9 }
 0x23f   : > { %8256 = shalt.err (!%p8253_p1)
}
 0x240   : > { %s8370_s5 = smov 64   ;;  %s8371_s6 = smov 4   ;;  %v5880_v54 = vmul.f32 %v7807_v34, %v7807_v34  ;;  %v5841_v60 = vadd.f32 %v7807_v34, %v5840_v41  ;;  %v5910_v44 = vadd.f32 %v5909_v53, %v5879_v12 }
 0x241   : > { %8034 = dma.vmem_to_hbm [thread:$0]  (%p8441_p4), %s9580_s13, 2048, %s9578_s29, %s6080_s30, %s8370_s5, %s8370_s5, %s8371_s6  }
 0x242   : > { %v5842_v55 = vrot.slane %v5841_v60, 4  ;;  %v5911_v4 = vadd.f32 %v5910_v44, %v5880_v54  ;;  %s9610_s7 = sand.u32 1, %s6291_s21   ;;  %s6981_s8 = sshll.u32 %s8359_s18, 4 }
 0x243   : > { %s218_s9 = scalar_lea.vmem [#allocation5], %s9549_s24  ;;  %s224_s29 = scalar_lea.vmem [#allocation7], %s9549_s24 }
 0x244   : > { %v5912_v29 = vrot.slane %v5911_v4, 4  ;;  %v5843_v57 = vadd.f32 %v5842_v55, %v5841_v60  ;;  %s6119_s13 = sshll.u32 %s218_s9, 4  ;;  %s6133_s30 = sshll.u32 %s224_s29, 4  ;;  %s9622_s13 = int_to_ptr.vmem [resolvable:$true] %s6119_s13  ;;  %s9629_s30 = int_to_ptr.vmem [resolvable:$true] %s6133_s30 }
 0x245   : > { %s9620_s12 = scalar_lea.hbm %s9707_s3, %s6981_s8  ;;  %s9627_s14 = scalar_lea.hbm %s9708_s4, %s6981_s8 }
 0x246   : > { %v5844_v59 = vrot.slane %v5843_v57, 2  ;;  %v5913_v61 = vadd.f32 %v5912_v29, %v5911_v4  ;;  %s6085_s26 = scalar_lea.sflag [#allocation6], %s9610_s7  ;;  %s8257_s5 = scalar_lea.vmem %s9622_s13, 16 }
 0x247   : > { %p8258_p2 = scmp.ne.s32.totalorder %s9622_s13, %s8257_s5  ;;  %s8372_s6 = smov [#allocation5]  }
 0x248   : > { %v5845_v56 = vadd.f32 %v5844_v59, %v5843_v57  ;;  %v5914_v45 = vrot.slane %v5913_v61, 2  ;;  %s8261_s10 = sshll.u32 %s8372_s6, 4  ;;  %s8262_s10 = int_to_ptr.vmem [resolvable:$false] %s8261_s10 }
 0x249   : > { %p8259_p3 = pnand %p8258_p2, %p8441_p4  ;;  %s8263_s11 = scalar_lea.vmem %s8262_s10, 32 }
 0x24a   : > { %v5846_v62 = vrot.slane %v5845_v56, 1  ;;  %v5915_v63 = vadd.f32 %v5914_v45, %v5913_v61  ;;  %p8264_p6 = scmp.lt.s32.totalorder %s9622_s13, %s8262_s10  ;;  %p8265_p7 = scmp.lt.s32.totalorder %s8263_s11, %s8257_s5 }
 0x24b   : > { %p8260_p5 = pneg %p8259_p3 }
 0x24c   : > { %v5847_v0 = vadd.f32 %v5846_v62, %v5845_v56  ;;  %v5916_v16 = vrot.slane %v5915_v63, 1  ;;  %p8266_p9 = por %p8265_p7, %p8264_p6 }
 0x24e   : > { %5848 = vst [vmem:[%s218_s9] sm:$0x1] %v5847_v0  ;;  %v5917_v30 = vadd.f32 %v5916_v16, %v5915_v63  ;;  %p8267_p10 = pnand %p8266_p9, %p8260_p5 }
 0x250   : > { %8270 = shalt.err (!%p8267_p10)
}
 0x251   : > { %s8271_s8 = scalar_lea.hbm %s9620_s12, 16  ;;  %s8275_s21 = scalar_lea.hbm %s9707_s3, 32 }
 0x252   : > { %p8272_p11 = scmp.ne.s32.totalorder %s9620_s12, %s8271_s8  ;;  %p8276_p0 = scmp.lt.u32.totalorder %s9620_s12, %s9707_s3 }
 0x253   : > { %p8277_p1 = scmp.lt.u32.totalorder %s8275_s21, %s8271_s8  ;;  %p8279_p3 = scmp.lt.u32.totalorder %s8271_s8, %s9620_s12 }
 0x254   : > { %p8273_p12 = pnand %p8272_p11, %p8441_p4 }
 0x255   : > { %p8278_p2 = por %p8277_p1, %p8276_p0 }
 0x256   : > { %p8274_p13 = pneg %p8273_p12 }
 0x257   : > { %p8280_p5 = por %p8279_p3, %p8278_p2 }
 0x259   : > { %p8281_p6 = pnand %p8280_p5, %p8274_p13 }
 0x25b   : > { %8284 = shalt.err (!%p8281_p6)
}
 0x25c   : > { %8035 = dma.vmem_to_hbm [thread:$0]  (%p8441_p4), %s9622_s13, 16, %s9620_s12, %s6085_s26   ;;  %5918 = vst [vmem:[%s224_s29] sm:$0x1] %v5917_v30 }
 0x25d   : > { %s8285_s5 = scalar_lea.vmem %s9629_s30, 16  ;;  %s8373_s11 = smov [#allocation7]  }
 0x25e   : > { %p8286_p7 = scmp.ne.s32.totalorder %s9629_s30, %s8285_s5  ;;  %s8289_s8 = sshll.u32 %s8373_s11, 4  ;;  %s8290_s8 = int_to_ptr.vmem [resolvable:$false] %s8289_s8 }
 0x25f   : > { %s8291_s9 = scalar_lea.vmem %s8290_s8, 32  ;;  %p8292_p11 = scmp.lt.s32.totalorder %s9629_s30, %s8290_s8 }
 0x260   : > { %p8287_p9 = pnand %p8286_p7, %p8441_p4  ;;  %p8293_p12 = scmp.lt.s32.totalorder %s8291_s9, %s8285_s5 }
 0x262   : > { %p8288_p10 = pneg %p8287_p9  ;;  %p8294_p13 = por %p8293_p12, %p8292_p11 }
 0x264   : > { %p8295_p0 = pnand %p8294_p13, %p8288_p10 }
 0x266   : > { %8298 = shalt.err (!%p8295_p0)
}
 0x267   : > { %s8299_s24 = scalar_lea.hbm %s9627_s14, 16  ;;  %s8303_s12 = scalar_lea.hbm %s9708_s4, 32 }
 0x268   : > { %p8300_p1 = scmp.ne.s32.totalorder %s9627_s14, %s8299_s24  ;;  %p8304_p5 = scmp.lt.u32.totalorder %s9627_s14, %s9708_s4 }
 0x269   : > { %p8305_p6 = scmp.lt.u32.totalorder %s8303_s12, %s8299_s24  ;;  %p8307_p9 = scmp.lt.u32.totalorder %s8299_s24, %s9627_s14 }
 0x26a   : > { %p8301_p2 = pnand %p8300_p1, %p8441_p4 }
 0x26b   : > { %p8306_p7 = por %p8305_p6, %p8304_p5 }
 0x26c   : > { %p8302_p3 = pneg %p8301_p2 }
 0x26d   : > { %p8308_p10 = por %p8307_p9, %p8306_p7 }
 0x26f   : > { %p8309_p11 = pnand %p8308_p10, %p8302_p3 }
 0x271   : > { %8312 = shalt.err (!%p8309_p11)
}
 0x272   : > { %8036 = dma.vmem_to_hbm [thread:$0]  (%p8441_p4), %s9629_s30, 16, %s9627_s14, %s6085_s26  }
 0x273 PF: > { %p8050_p12 = scmp.ge.s32.totalorder %s8367_s20, 2  ;;  %s6145_s6 = sand.u32 1, %s8347_s15  }
 0x274   : > { %s6146_s10 = scalar_lea.sflag [#allocation4], %s6145_s6 }
 0x275   : > { %p8041_p13 = pnand %p8050_p12, %p8450_p8 }
 0x277   : > { %8338 = dma.done.wait (!%p8041_p13), %s6146_s10, 2048  }
 0x278   : > { %8340 = vsyncadd (!%p8041_p13), %s6146_s10, 4294965248  ;;  %s6154_s5 = sand.u32 1, %s6292_s22  }
 0x279   : > { %s6155_s25 = scalar_lea.sflag [#allocation6], %s6154_s5 }
 0x27a   : > { %8342 = dma.done.wait (!%p8041_p13), %s6155_s25, 32  }
 0x27b   : > { %8344 = vsyncadd (!%p8041_p13), %s6155_s25, 4294967264  ;;  %s21_s20 = sadd.s32 1, %s8367_s20   ;;  %s9715_s15 = smov %s8351_s16 }
 0x27c   : > { %p18_p4 = scmp.ge.s32.totalorder %s21_s20, 4   ;;  %s9716_s16 = smov %s8355_s17 }
 0x27d   : > { %s9717_s17 = smov %s8456_s28  ;;  %s9718_s18 = smov %s8363_s19 }
 0x27e   : > { %s9719_s19 = smov %s9721_s23  ;;  %20 = sbr.rel (!%p18_p4) target bundleno = 6 (0x6), region = 106 }
 0x285   :  { %6167 = vsyncpa [#allocation4], 1 }
 0x286   :  { %6169 = vsyncpa [#allocation4 + $0x1], 1 }
 0x287   :  { %6170 = vsyncpa [#allocation6], 1 }
 0x288   :  { %6172 = vsyncpa [#allocation6 + $0x1], 1 }

</bundles_post_ra>
